<compile_context>
chip_gen: v6e
topology: v6e:2x2x1
jax: 0.10.0
libtpu: 0.0.40
codegen_flags: <defaults>
</compile_context>

<pallas_src>
import jax
import jax.numpy as jnp
from jax import lax
from jax.experimental import pallas as pl
from jax.experimental.pallas import tpu as pltpu


# ------------------------------ fused kernel -------------------------------- #

def _make_fused_kernel(H, W, C1, C2, B_TILE, K1P):
    """Per-grid-step fused conv->relu->pool->conv->relu->pool kernel."""
    H2, W2 = H // 2, W // 2
    H4, W4 = H2 // 2, W2 // 2
    M1 = B_TILE * H * W        # conv1 matmul M
    M2 = B_TILE * H2 * W2      # conv2 matmul M

    def pool2x2(y, rows_out, w_in, c):
        # y: (rows_out * 2 * w_in, c), rows ordered (..., h, w) with w fastest.
        # Returns (rows_out, w_in // 2, c) — MaxPool2d(2,2) on values.
        yw = jnp.max(y.reshape(rows_out * 2 * (w_in // 2), 2, c), axis=1)
        return jnp.max(yw.reshape(rows_out, 2, w_in // 2, c), axis=1)

    def kernel(x1_ref, w1_ref, b1_ref, w2_ref, b2_ref, out_ref, p1p_ref):
        # x1_ref : (M1, K1P)       wrapper-built im2col (lane-dense, contiguous)
        # w1_ref : (K1P, C1)       b1_ref: (1, C1)
        # w2_ref : (9*C1, C2)      b2_ref: (1, C2)
        # out_ref: (B_TILE, H4, W4*C2)   lane-dense output block
        # p1p_ref: (B_TILE, H2+2, W2+2, C1) VMEM scratch (halo-padded pool1)

        # ---- conv1 + ReLU: ONE K-stacked matmul --------------------------- #
        y1 = jnp.dot(x1_ref[...], w1_ref[...],
                     preferred_element_type=jnp.float32)
        y1 = jnp.maximum(y1 + b1_ref[...], 0.0)               # (M1, C1)

        # ---- MaxPool2d(2,2) #1 on values ----------------------------------- #
        p1 = pool2x2(y1, B_TILE * H2, W, C1)                  # (B*H2, W2, C1)

        # ---- stage halo-padded pooled map for conv2 ------------------------- #
        # Re-zero only the halo each step (cheap, and safe when the batch grid
        # is split across TensorCores); interior is fully overwritten.
        zrow = jnp.zeros((B_TILE, 1, W2 + 2, C1), jnp.float32)
        zcol = jnp.zeros((B_TILE, H2, 1, C1), jnp.float32)
        p1p_ref[:, 0:1, :, :] = zrow
        p1p_ref[:, H2 + 1:H2 + 2, :, :] = zrow
        p1p_ref[:, 1:H2 + 1, 0:1, :] = zcol
        p1p_ref[:, 1:H2 + 1, W2 + 1:W2 + 2, :] = zcol
        p1p_ref[:, 1:H2 + 1, 1:W2 + 1, :] = p1.reshape(B_TILE, H2, W2, C1)

        # ---- conv2 + ReLU: K-stacked operand, ONE matmul (K = 9*C1) --------- #
        taps = [
            p1p_ref[:, kh:kh + H2, kw:kw + W2, :].reshape(M2, C1)
            for kh in range(3) for kw in range(3)
        ]
        x2 = jnp.concatenate(taps, axis=-1)                    # (M2, 9*C1)
        y2 = jnp.dot(x2, w2_ref[...], preferred_element_type=jnp.float32)
        y2 = jnp.maximum(y2 + b2_ref[...], 0.0)                # (M2, C2)

        # ---- MaxPool2d(2,2) #2 + lane-dense writeback ----------------------- #
        p2 = pool2x2(y2, B_TILE * H4, W2, C2)                  # (B*H4, W4, C2)
        out_ref[...] = p2.reshape(B_TILE, H4, W4 * C2).astype(out_ref.dtype)

    return kernel


# --------------------------- full module forward ---------------------------- #

def _choose_batch_tile(N, max_tile=8):
    """Largest divisor of N (<= max_tile) that still leaves >= 2 grid steps."""
    for cand in range(min(max_tile, N), 0, -1):
        if N % cand == 0 and N // cand >= 2:
            return cand
    return 1


def binary_image_classification_forward(x_nchw, params):
    """x_nchw: (N, 3, H, W) float32 (PyTorch convention)."""
    N, Cin, H, W = x_nchw.shape
    C1 = params["b1"].shape[0]
    C2 = params["b2"].shape[0]
    assert H % 4 == 0 and W % 4 == 0, "fused kernel assumes H, W divisible by 4"
    H2, W2, H4, W4 = H // 2, W // 2, H // 4, W // 4
    K1 = 9 * Cin
    K1P = pl.cdiv(K1, 128) * 128     # pad conv1's K -> contiguous lane-dense DMA
    K2 = 9 * C1

    B_TILE = _choose_batch_tile(N)
    num_steps = N // B_TILE

    # ---- wrapper-side layout glue (tiny tensors only) ------------------------
    # conv1 im2col: (N, H*W, 9*Cin) zero-padded to K1P lanes.
    x_nhwc = jnp.transpose(x_nchw, (0, 2, 3, 1)).astype(jnp.float32)
    xp = jnp.pad(x_nhwc, ((0, 0), (1, 1), (1, 1), (0, 0)))
    cols = [xp[:, kh:kh + H, kw:kw + W, :]
            for kh in range(3) for kw in range(3)]
    x1 = jnp.concatenate(cols, axis=-1)                        # (N, H, W, 9*Cin)
    x1 = jnp.pad(x1, ((0, 0), (0, 0), (0, 0), (0, K1P - K1)))
    x1 = x1.reshape(num_steps, B_TILE * H * W, K1P)

    # PyTorch weights (Cout, Cin, KH, KW) -> K-stacked (9*Cin, Cout), tap order
    # (kh, kw) matching the im2col / in-kernel concatenation order.
    w1 = jnp.transpose(params["w1"], (2, 3, 1, 0)).reshape(K1, C1)
    w1 = jnp.pad(w1, ((0, K1P - K1), (0, 0)))
    w2 = jnp.transpose(params["w2"], (2, 3, 1, 0)).reshape(K2, C2)
    b1 = params["b1"].reshape(1, C1).astype(jnp.float32)
    b2 = params["b2"].reshape(1, C2).astype(jnp.float32)

    kernel = _make_fused_kernel(H, W, C1, C2, B_TILE, K1P)

    # TODO(synk): for large images, add an H-tile grid axis (and re-derive the
    # VMEM budget for v7x's 64 MiB) instead of keeping whole images per step.
    out = pl.pallas_call(
        kernel,
        out_shape=jax.ShapeDtypeStruct((N, H4, W4 * C2), jnp.float32),
        grid_spec=pltpu.PrefetchScalarGridSpec(
            num_scalar_prefetch=0,
            grid=(num_steps,),
            in_specs=[
                pl.BlockSpec((None, B_TILE * H * W, K1P), lambda s: (s, 0, 0)),
                pl.BlockSpec((K1P, C1), lambda s: (0, 0)),
                pl.BlockSpec((1, C1), lambda s: (0, 0)),
                pl.BlockSpec((K2, C2), lambda s: (0, 0)),
                pl.BlockSpec((1, C2), lambda s: (0, 0)),
            ],
            out_specs=pl.BlockSpec((B_TILE, H4, W4 * C2), lambda s: (s, 0, 0)),
            scratch_shapes=[
                pltpu.VMEM((B_TILE, H2 + 2, W2 + 2, C1), jnp.float32),
            ],
        ),
        compiler_params=pltpu.CompilerParams(
            dimension_semantics=("parallel",),
            vmem_limit_bytes=32 * 1024 * 1024,
        ),
    )(x1, w1, b1, w2, b2)

    out = out.reshape(N, H4, W4, C2)
    return jnp.transpose(out, (0, 3, 1, 2)).astype(x_nchw.dtype)   # -> NCHW


def init_params(key):
    k1, k2, k3, k4 = jax.random.split(key, 4)
    # Same shapes as nn.Conv2d(3,16,3) / nn.Conv2d(16,32,3); deterministic init.
    return {
        "w1": 0.1 * jax.random.normal(k1, (16, 3, 3, 3), jnp.float32),
        "b1": 0.01 * jax.random.normal(k2, (16,), jnp.float32),
        "w2": 0.1 * jax.random.normal(k3, (32, 16, 3, 3), jnp.float32),
        "b2": 0.01 * jax.random.normal(k4, (32,), jnp.float32),
    }


# Pure-JAX reference (lax conv / reduce_window) for a correctness check.
def _reference_forward(x_nchw, params):
    def conv(x, w, b):
        y = lax.conv_general_dilated(
            x, w, window_strides=(1, 1), padding=((1, 1), (1, 1)),
            dimension_numbers=("NCHW", "OIHW", "NCHW"))
        return jnp.maximum(y + b[None, :, None, None], 0.0)

    def pool(x):
        return lax.reduce_window(
            x, -jnp.inf, lax.max,
            window_dimensions=(1, 1, 2, 2), window_strides=(1, 1, 2, 2),
            padding="VALID")

    x = conv(x_nchw, params["w1"], params["b1"])
    x = pool(x)
    x = conv(x, params["w2"], params["b2"])
    x = pool(x)
    return x


if __name__ == "__main__":
    key = jax.random.PRNGKey(0)
    kx, kp = jax.random.split(key)
    x = jax.random.normal(kx, (2, 3, 16, 16), jnp.float32)   # NCHW input
    params = init_params(kp)

    fwd = jax.jit(binary_image_classification_forward)
    out = jax.block_until_ready(fwd(x, params))
    assert out.shape == (2, 32, 4, 4), out.shape

    ref = _reference_forward(x, params)
    err = float(jnp.max(jnp.abs(out - ref)))
    assert jnp.allclose(out, ref, atol=1e-4, rtol=1e-4), err

    print("KERNEL_OK")
</pallas_src>

<mosaic_0001>
module attributes {stable_mosaic.version = 11 : i64} {
  func.func @kernel(%arg0: i32, %arg1: memref<1x256x128xf32, #tpu.memory_space<vmem>>, %arg2: memref<128x16xf32, #tpu.memory_space<vmem>>, %arg3: memref<1x16xf32, #tpu.memory_space<vmem>>, %arg4: memref<144x32xf32, #tpu.memory_space<vmem>>, %arg5: memref<1x32xf32, #tpu.memory_space<vmem>>, %arg6: memref<1x4x128xf32, #tpu.memory_space<vmem>>, %arg7: memref<1x10x10x16xf32, #tpu.memory_space<vmem>>) attributes {dimension_semantics = [#tpu.dimension_semantics<parallel>], iteration_bounds = array<i64: 2>, scalar_prefetch = 0 : i64, scratch_operands = 1 : i64, tpu.core_type = #tpu.core_type<tc>, window_params = [{transform_indices = @transform_0, window_bounds = array<i64: 1, 256, 128>}, {pipeline_mode = #tpu.pipeline_mode<synchronous>, transform_indices = @transform_1, window_bounds = array<i64: 128, 16>}, {pipeline_mode = #tpu.pipeline_mode<synchronous>, transform_indices = @transform_2, window_bounds = array<i64: 1, 16>}, {pipeline_mode = #tpu.pipeline_mode<synchronous>, transform_indices = @transform_3, window_bounds = array<i64: 144, 32>}, {pipeline_mode = #tpu.pipeline_mode<synchronous>, transform_indices = @transform_4, window_bounds = array<i64: 1, 32>}, {transform_indices = @transform_5, window_bounds = array<i64: 1, 4, 128>}]} {
    %c0 = arith.constant 0 : index
    %c0_0 = arith.constant 0 : index
    %c0_1 = arith.constant 0 : index
    %0 = vector.load %arg1[%c0, %c0_0, %c0_1] : memref<1x256x128xf32, #tpu.memory_space<vmem>>, vector<1x256x128xf32>
    %1 = vector.shape_cast %0 : vector<1x256x128xf32> to vector<256x128xf32>
    %c0_2 = arith.constant 0 : index
    %c0_3 = arith.constant 0 : index
    %2 = vector.load %arg2[%c0_2, %c0_3] : memref<128x16xf32, #tpu.memory_space<vmem>>, vector<128x16xf32>
    %cst = arith.constant dense<0.000000e+00> : vector<256x16xf32>
    %3 = tpu.matmul %1, %2, %cst {dimension_numbers = #tpu.dot_dimension_numbers<[1], [0], [0], [1], [0, 0, 1, 1], [], []>} : vector<256x128xf32>, vector<128x16xf32>, vector<256x16xf32> -> vector<256x16xf32>
    %c0_4 = arith.constant 0 : index
    %c0_5 = arith.constant 0 : index
    %4 = vector.load %arg3[%c0_4, %c0_5] : memref<1x16xf32, #tpu.memory_space<vmem>>, vector<1x16xf32>
    %5 = vector.broadcast %4 : vector<1x16xf32> to vector<256x16xf32>
    %6 = arith.addf %3, %5 : vector<256x16xf32>
    %cst_6 = arith.constant 0.000000e+00 : f32
    %7 = vector.broadcast %cst_6 : f32 to vector<256x16xf32>
    %8 = arith.maximumf %6, %7 : vector<256x16xf32>
    %9 = vector.shape_cast %8 : vector<256x16xf32> to vector<128x2x16xf32>
    %cst_7 = arith.constant dense<0xFF800000> : vector<128x16xf32>
    %10 = vector.multi_reduction <maximumf>, %9, %cst_7 [1] : vector<128x2x16xf32> to vector<128x16xf32>
    %11 = vector.shape_cast %10 : vector<128x16xf32> to vector<8x2x8x16xf32>
    %cst_8 = arith.constant dense<0xFF800000> : vector<8x8x16xf32>
    %12 = vector.multi_reduction <maximumf>, %11, %cst_8 [1] : vector<8x2x8x16xf32> to vector<8x8x16xf32>
    %cst_9 = arith.constant 0.000000e+00 : f32
    %13 = vector.broadcast %cst_9 : f32 to vector<1x1x10x16xf32>
    %cst_10 = arith.constant 0.000000e+00 : f32
    %14 = vector.broadcast %cst_10 : f32 to vector<1x8x1x16xf32>
    %c0_11 = arith.constant 0 : index
    %c0_12 = arith.constant 0 : index
    %c0_13 = arith.constant 0 : index
    %c0_14 = arith.constant 0 : index
    %15 = vector.load %arg7[%c0_11, %c0_12, %c0_13, %c0_14] : memref<1x10x10x16xf32, #tpu.memory_space<vmem>>, vector<1x1x10x16xf32>
    tpu.vector_store %arg7[%c0_11, %c0_12, %c0_13, %c0_14], %13 {strides = array<i32>} : memref<1x10x10x16xf32, #tpu.memory_space<vmem>>, vector<1x1x10x16xf32>,
    %c0_15 = arith.constant 0 : index
    %c9 = arith.constant 9 : index
    %c0_16 = arith.constant 0 : index
    %c0_17 = arith.constant 0 : index
    %16 = vector.load %arg7[%c0_15, %c9, %c0_16, %c0_17] : memref<1x10x10x16xf32, #tpu.memory_space<vmem>>, vector<1x1x10x16xf32>
    tpu.vector_store %arg7[%c0_15, %c9, %c0_16, %c0_17], %13 {strides = array<i32>} : memref<1x10x10x16xf32, #tpu.memory_space<vmem>>, vector<1x1x10x16xf32>,
    %c0_18 = arith.constant 0 : index
    %c1 = arith.constant 1 : index
    %c0_19 = arith.constant 0 : index
    %c0_20 = arith.constant 0 : index
    %17 = vector.load %arg7[%c0_18, %c1, %c0_19, %c0_20] : memref<1x10x10x16xf32, #tpu.memory_space<vmem>>, vector<1x8x1x16xf32>
    tpu.vector_store %arg7[%c0_18, %c1, %c0_19, %c0_20], %14 {strides = array<i32>} : memref<1x10x10x16xf32, #tpu.memory_space<vmem>>, vector<1x8x1x16xf32>,
    %c0_21 = arith.constant 0 : index
    %c1_22 = arith.constant 1 : index
    %c9_23 = arith.constant 9 : index
    %c0_24 = arith.constant 0 : index
    %18 = vector.load %arg7[%c0_21, %c1_22, %c9_23, %c0_24] : memref<1x10x10x16xf32, #tpu.memory_space<vmem>>, vector<1x8x1x16xf32>
    tpu.vector_store %arg7[%c0_21, %c1_22, %c9_23, %c0_24], %14 {strides = array<i32>} : memref<1x10x10x16xf32, #tpu.memory_space<vmem>>, vector<1x8x1x16xf32>,
    %19 = vector.shape_cast %12 : vector<8x8x16xf32> to vector<1x8x8x16xf32>
    %c0_25 = arith.constant 0 : index
    %c1_26 = arith.constant 1 : index
    %c1_27 = arith.constant 1 : index
    %c0_28 = arith.constant 0 : index
    %20 = vector.load %arg7[%c0_25, %c1_26, %c1_27, %c0_28] : memref<1x10x10x16xf32, #tpu.memory_space<vmem>>, vector<1x8x8x16xf32>
    tpu.vector_store %arg7[%c0_25, %c1_26, %c1_27, %c0_28], %19 {strides = array<i32>} : memref<1x10x10x16xf32, #tpu.memory_space<vmem>>, vector<1x8x8x16xf32>,
    %c0_29 = arith.constant 0 : index
    %c0_30 = arith.constant 0 : index
    %c0_31 = arith.constant 0 : index
    %c0_32 = arith.constant 0 : index
    %21 = vector.load %arg7[%c0_29, %c0_30, %c0_31, %c0_32] : memref<1x10x10x16xf32, #tpu.memory_space<vmem>>, vector<1x8x8x16xf32>
    %22 = vector.shape_cast %21 : vector<1x8x8x16xf32> to vector<64x16xf32>
    %c0_33 = arith.constant 0 : index
    %c0_34 = arith.constant 0 : index
    %c1_35 = arith.constant 1 : index
    %c0_36 = arith.constant 0 : index
    %23 = vector.load %arg7[%c0_33, %c0_34, %c1_35, %c0_36] : memref<1x10x10x16xf32, #tpu.memory_space<vmem>>, vector<1x8x8x16xf32>
    %24 = vector.shape_cast %23 : vector<1x8x8x16xf32> to vector<64x16xf32>
    %c0_37 = arith.constant 0 : index
    %c0_38 = arith.constant 0 : index
    %c2 = arith.constant 2 : index
    %c0_39 = arith.constant 0 : index
    %25 = vector.load %arg7[%c0_37, %c0_38, %c2, %c0_39] : memref<1x10x10x16xf32, #tpu.memory_space<vmem>>, vector<1x8x8x16xf32>
    %26 = vector.shape_cast %25 : vector<1x8x8x16xf32> to vector<64x16xf32>
    %c0_40 = arith.constant 0 : index
    %c1_41 = arith.constant 1 : index
    %c0_42 = arith.constant 0 : index
    %c0_43 = arith.constant 0 : index
    %27 = vector.load %arg7[%c0_40, %c1_41, %c0_42, %c0_43] : memref<1x10x10x16xf32, #tpu.memory_space<vmem>>, vector<1x8x8x16xf32>
    %28 = vector.shape_cast %27 : vector<1x8x8x16xf32> to vector<64x16xf32>
    %c0_44 = arith.constant 0 : index
    %c1_45 = arith.constant 1 : index
    %c1_46 = arith.constant 1 : index
    %c0_47 = arith.constant 0 : index
    %29 = vector.load %arg7[%c0_44, %c1_45, %c1_46, %c0_47] : memref<1x10x10x16xf32, #tpu.memory_space<vmem>>, vector<1x8x8x16xf32>
    %30 = vector.shape_cast %29 : vector<1x8x8x16xf32> to vector<64x16xf32>
    %c0_48 = arith.constant 0 : index
    %c1_49 = arith.constant 1 : index
    %c2_50 = arith.constant 2 : index
    %c0_51 = arith.constant 0 : index
    %31 = vector.load %arg7[%c0_48, %c1_49, %c2_50, %c0_51] : memref<1x10x10x16xf32, #tpu.memory_space<vmem>>, vector<1x8x8x16xf32>
    %32 = vector.shape_cast %31 : vector<1x8x8x16xf32> to vector<64x16xf32>
    %c0_52 = arith.constant 0 : index
    %c2_53 = arith.constant 2 : index
    %c0_54 = arith.constant 0 : index
    %c0_55 = arith.constant 0 : index
    %33 = vector.load %arg7[%c0_52, %c2_53, %c0_54, %c0_55] : memref<1x10x10x16xf32, #tpu.memory_space<vmem>>, vector<1x8x8x16xf32>
    %34 = vector.shape_cast %33 : vector<1x8x8x16xf32> to vector<64x16xf32>
    %c0_56 = arith.constant 0 : index
    %c2_57 = arith.constant 2 : index
    %c1_58 = arith.constant 1 : index
    %c0_59 = arith.constant 0 : index
    %35 = vector.load %arg7[%c0_56, %c2_57, %c1_58, %c0_59] : memref<1x10x10x16xf32, #tpu.memory_space<vmem>>, vector<1x8x8x16xf32>
    %36 = vector.shape_cast %35 : vector<1x8x8x16xf32> to vector<64x16xf32>
    %c0_60 = arith.constant 0 : index
    %c2_61 = arith.constant 2 : index
    %c2_62 = arith.constant 2 : index
    %c0_63 = arith.constant 0 : index
    %37 = vector.load %arg7[%c0_60, %c2_61, %c2_62, %c0_63] : memref<1x10x10x16xf32, #tpu.memory_space<vmem>>, vector<1x8x8x16xf32>
    %38 = vector.shape_cast %37 : vector<1x8x8x16xf32> to vector<64x16xf32>
    %39 = tpu.concatenate %22, %24, %26, %28, %30, %32, %34, %36, %38 in 1 : vector<64x16xf32>, vector<64x16xf32>, vector<64x16xf32>, vector<64x16xf32>, vector<64x16xf32>, vector<64x16xf32>, vector<64x16xf32>, vector<64x16xf32>, vector<64x16xf32> -> vector<64x144xf32>
    %c0_64 = arith.constant 0 : index
    %c0_65 = arith.constant 0 : index
    %40 = vector.load %arg4[%c0_64, %c0_65] : memref<144x32xf32, #tpu.memory_space<vmem>>, vector<144x32xf32>
    %cst_66 = arith.constant dense<0.000000e+00> : vector<64x32xf32>
    %41 = tpu.matmul %39, %40, %cst_66 {dimension_numbers = #tpu.dot_dimension_numbers<[1], [0], [0], [1], [0, 0, 1, 1], [], []>} : vector<64x144xf32>, vector<144x32xf32>, vector<64x32xf32> -> vector<64x32xf32>
    %c0_67 = arith.constant 0 : index
    %c0_68 = arith.constant 0 : index
    %42 = vector.load %arg5[%c0_67, %c0_68] : memref<1x32xf32, #tpu.memory_space<vmem>>, vector<1x32xf32>
    %43 = vector.broadcast %42 : vector<1x32xf32> to vector<64x32xf32>
    %44 = arith.addf %41, %43 : vector<64x32xf32>
    %cst_69 = arith.constant 0.000000e+00 : f32
    %45 = vector.broadcast %cst_69 : f32 to vector<64x32xf32>
    %46 = arith.maximumf %44, %45 : vector<64x32xf32>
    %47 = vector.shape_cast %46 : vector<64x32xf32> to vector<32x2x32xf32>
    %cst_70 = arith.constant dense<0xFF800000> : vector<32x32xf32>
    %48 = vector.multi_reduction <maximumf>, %47, %cst_70 [1] : vector<32x2x32xf32> to vector<32x32xf32>
    %49 = vector.shape_cast %48 : vector<32x32xf32> to vector<4x2x4x32xf32>
    %cst_71 = arith.constant dense<0xFF800000> : vector<4x4x32xf32>
    %50 = vector.multi_reduction <maximumf>, %49, %cst_71 [1] : vector<4x2x4x32xf32> to vector<4x4x32xf32>
    %51 = vector.shape_cast %50 : vector<4x4x32xf32> to vector<1x4x128xf32>
    %c0_72 = arith.constant 0 : index
    %c0_73 = arith.constant 0 : index
    %c0_74 = arith.constant 0 : index
    %52 = vector.load %arg6[%c0_72, %c0_73, %c0_74] : memref<1x4x128xf32, #tpu.memory_space<vmem>>, vector<1x4x128xf32>
    tpu.vector_store %arg6[%c0_72, %c0_73, %c0_74], %51 {strides = array<i32>} : memref<1x4x128xf32, #tpu.memory_space<vmem>>, vector<1x4x128xf32>,
    return
  }
  func.func @transform_0(%arg0: i32) -> (i32, i32, i32) {
    %c0_i32 = arith.constant 0 : i32
    %c0_i32_0 = arith.constant 0 : i32
    %c0_i32_1 = arith.constant 0 : i32
    return %arg0, %c0_i32, %c0_i32_0 : i32, i32, i32
  }
  func.func @transform_1(%arg0: i32) -> (i32, i32) {
    %c0_i32 = arith.constant 0 : i32
    %c0_i32_0 = arith.constant 0 : i32
    %c0_i32_1 = arith.constant 0 : i32
    return %c0_i32, %c0_i32_0 : i32, i32
  }
  func.func @transform_2(%arg0: i32) -> (i32, i32) {
    %c0_i32 = arith.constant 0 : i32
    %c0_i32_0 = arith.constant 0 : i32
    %c0_i32_1 = arith.constant 0 : i32
    return %c0_i32, %c0_i32_0 : i32, i32
  }
  func.func @transform_3(%arg0: i32) -> (i32, i32) {
    %c0_i32 = arith.constant 0 : i32
    %c0_i32_0 = arith.constant 0 : i32
    %c0_i32_1 = arith.constant 0 : i32
    return %c0_i32, %c0_i32_0 : i32, i32
  }
  func.func @transform_4(%arg0: i32) -> (i32, i32) {
    %c0_i32 = arith.constant 0 : i32
    %c0_i32_0 = arith.constant 0 : i32
    %c0_i32_1 = arith.constant 0 : i32
    return %c0_i32, %c0_i32_0 : i32, i32
  }
  func.func @transform_5(%arg0: i32) -> (i32, i32, i32) {
    %c0_i32 = arith.constant 0 : i32
    %c0_i32_0 = arith.constant 0 : i32
    %c0_i32_1 = arith.constant 0 : i32
    return %arg0, %c0_i32, %c0_i32_0 : i32, i32, i32
  }
}

</mosaic_0001>

<bundles_post_ra>
// kernel: binary_image_classification_forward.1
= control target key start
LH: loop header
LB: loop body
LE: loop exit
PB: predicated region body
PF: predicated region fallthrough
CT: control target
= control target key end

     0   :  { %s3942_s18 = smov 0   ;;  %s5201_s0 = inlined_call_operand.vmem [shape: f32[2,256,128], index: 0, kind: input, shape index: {}]   ;;  %s5202_s1 = inlined_call_operand.vmem [shape: f32[128,16], index: 1, kind: input, shape index: {}]   ;;  %s5203_s2 = inlined_call_operand.vmem [shape: f32[1,16], index: 2, kind: input, shape index: {}]   ;;  %s5204_s3 = inlined_call_operand.vmem [shape: f32[144,32], index: 3, kind: input, shape index: {}]   ;;  %s5205_s4 = inlined_call_operand.vmem [shape: f32[1,32], index: 4, kind: input, shape index: {}]   ;;  %s5206_s5 = inlined_call_operand.vmem [shape: f32[2,4,128], index: 5, kind: output, shape index: {}]  }
   0x1 LB: > { %s3600_s19 = sadd.s32 4294967295, %s3900_s18   ;;  %p3604_p0 = scmp.ge.s32.totalorder %s3900_s18, 1  ;;  %s3900_s18 = sphi %s3942_s18, %s15_s18  }
   0x2   : > { %p187_p1 = scmp.lt.s32.totalorder %s3900_s18, 3 }
   0x4   : > { %p188_p2 = pnand %p3604_p0, %p187_p1 }
   0x5   : > { %p214_p3 = scmp.lt.s32.totalorder (!%p188_p2), %s3600_s19, 1  ;;  %s3904_s22 = smov (!%p188_p2), 16  }
   0x6   : > { %191 = sbr.rel (%p188_p2) target bundleno = 1107 (0x453), region = 40  ;;  %s3905_s16 = smov (!%p188_p2), 32  }
   0x7   : > { %s3906_s17 = smov (!%p188_p2), 48   ;;  %s3907_s25 = smov (!%p188_p2), 80  }
   0x8   : > { %s3908_s30 = smov (!%p188_p2), 64   ;;  %s3910_s11 = smov (!%p188_p2), 112  }
   0xb   : > { %v270_v0 = vld [vmem:[%s5202_s1 + $0x78] sm:$0xff]  ;;  %v269_v1 = vld [vmem:[%s5202_s1 + $0x70] sm:$0xff]  ;;  %v268_v2 = vld [vmem:[%s5202_s1 + $0x68] sm:$0xff]  ;;  %s5208_s19 = smov (!%p214_p3, %s3600_s19), 1  ;;  %v3902_v48 = vmov 1983009808   ;;  %v571_v50 = vlaneseq }
   0xc   : > { %3669 = vmatprep.subr.mxu0 %v270_v0  ;;  %v267_v3 = vld [vmem:[%s5202_s1 + $0x60] sm:$0xff]  ;;  %s3620_s28 = sshll.u32 %s5208_s19, 8  ;;  %v266_v4 = vld [vmem:[%s5202_s1 + $0x58] sm:$0xff]  ;;  %v265_v6 = vld [vmem:[%s5202_s1 + $0x50] sm:$0xff]  ;;  %v569_v49 = vunpack.c.l.s4 %v3902_v48  ;;  %vm1239_vm0 = vcmask 123904   ;;  %vm2136_vm1 = vcmask 130048  }
   0xd   : > { %3670 = vmatpush3.msra.mxu0 %v270_v0  ;;  %s3968_s6 = scalar_lea.vmem %s5201_s0, %s3620_s28  ;;  %v264_v7 = vld [vmem:[%s5202_s1 + $0x48] sm:$0xff]  ;;  %v263_v8 = vld [vmem:[%s5202_s1 + $0x40] sm:$0xff]  ;;  %v262_v9 = vld [vmem:[%s5202_s1 + $0x38] sm:$0xff]  ;;  %v4038_v52 = vshrl.u32 %v571_v50, 7  ;;  %vm2416_vm2 = vcmask 1041409   ;;  %vm2418_vm3 = vcmask 1042434  }
   0xe   : > { %3671 = vmatprep.subr.mxu0 %v269_v1  ;;  %v223_v5 = vld [vmem:[%s3968_s6] sm:$0xff]  ;;  %v261_v10 = vld [vmem:[%s5202_s1 + $0x30] sm:$0xff]  ;;  %v260_v11 = vld [vmem:[%s5202_s1 + $0x28] sm:$0xff]  ;;  %v570_v51 = vunpack.c.0.s8 %v569_v49  ;;  %vm2420_vm4 = vcmask 1043459   ;;  %vm2422_vm5 = vcmask 1044484   ;;  %vm2424_vm6 = vcmask 1045509  }
   0xf   : > { %3672 = vmatpush3.msra.mxu0 %v269_v1  ;;  %3701 = vmatprep.mubr.f32.mxu0 %v223_v5  ;;  %v259_v12 = vld [vmem:[%s5202_s1 + $0x20] sm:$0xff]  ;;  %v258_v13 = vld [vmem:[%s5202_s1 + $0x18] sm:$0xff]  ;;  %v257_v14 = vld [vmem:[%s5202_s1 + $0x10] sm:$0xff]  ;;  %vm2426_vm7 = vcmask 1046534   ;;  %vm2428_vm8 = vcmask 1047559   ;;  %vm2335_vm9 = vcmask 122880  }
  0x10   : > { %3673 = vmatprep.subr.mxu0 %v268_v2  ;;  %v256_v15 = vld [vmem:[%s5202_s1 + $0x8] sm:$0xff]  ;;  %v255_v16 = vld [vmem:[%s5202_s1] sm:$0xff]  ;;  %v225_v18 = vld [vmem:[%s3968_s6 + $0x10] sm:$0xff]  ;;  %v4047_v56 = vsub.s32 %v570_v51, %v4038_v52  ;;  %vm2800_vm10 = vcmask 261120   ;;  %vm2809_vm11 = vcmask 392192   ;;  %vm2818_vm12 = vcmask 523264  }
  0x11   : > { %3674 = vmatpush3.msra.mxu0 %v268_v2  ;;  %v224_v17 = vld [vmem:[%s3968_s6 + $0x8] sm:$0xff]  ;;  %v226_v19 = vld [vmem:[%s3968_s6 + $0x18] sm:$0xff]  ;;  %v227_v20 = vld [vmem:[%s3968_s6 + $0x20] sm:$0xff]  ;;  %vm2827_vm13 = vcmask 654336   ;;  %vm2836_vm14 = vcmask 785408   ;;  %vm2845_vm15 = vcmask 916480  }
  0x12   : > { %3675 = vmatprep.subr.mxu0 %v267_v3  ;;  %v228_v21 = vld [vmem:[%s3968_s6 + $0x28] sm:$0xff]  ;;  %v229_v22 = vld [vmem:[%s3968_s6 + $0x30] sm:$0xff]  ;;  %v230_v23 = vld [vmem:[%s3968_s6 + $0x38] sm:$0xff]  ;;  %s3607_s13 = sshll.u32 %s5208_s19, 2 }
  0x13   : > { %3676 = vmatpush3.msra.mxu0 %v267_v3  ;;  %v231_v24 = vld [vmem:[%s3968_s6 + $0x40] sm:$0xff]  ;;  %v232_v25 = vld [vmem:[%s3968_s6 + $0x48] sm:$0xff]  ;;  %v233_v26 = vld [vmem:[%s3968_s6 + $0x50] sm:$0xff] }
  0x14   : > { %3677 = vmatprep.subr.mxu0 %v266_v4  ;;  %v234_v27 = vld [vmem:[%s3968_s6 + $0x58] sm:$0xff]  ;;  %v235_v28 = vld [vmem:[%s3968_s6 + $0x60] sm:$0xff]  ;;  %v236_v29 = vld [vmem:[%s3968_s6 + $0x68] sm:$0xff] }
  0x15   : > { %3678 = vmatpush3.msra.mxu0 %v266_v4  ;;  %v237_v30 = vld [vmem:[%s3968_s6 + $0x70] sm:$0xff]  ;;  %v238_v31 = vld [vmem:[%s3968_s6 + $0x78] sm:$0xff]  ;;  %v239_v32 = vld [vmem:[%s3968_s6 + $0x80] sm:$0xff] }
  0x16   : > { %3679 = vmatprep.subr.mxu0 %v265_v6  ;;  %v240_v33 = vld [vmem:[%s3968_s6 + $0x88] sm:$0xff]  ;;  %v241_v34 = vld [vmem:[%s3968_s6 + $0x90] sm:$0xff]  ;;  %v242_v35 = vld [vmem:[%s3968_s6 + $0x98] sm:$0xff] }
  0x17   : > { %3680 = vmatpush3.msra.mxu0 %v265_v6  ;;  %v243_v36 = vld [vmem:[%s3968_s6 + $0xa0] sm:$0xff]  ;;  %v244_v37 = vld [vmem:[%s3968_s6 + $0xa8] sm:$0xff]  ;;  %v245_v38 = vld [vmem:[%s3968_s6 + $0xb0] sm:$0xff] }
  0x18   : > { %3681 = vmatprep.subr.mxu0 %v264_v7  ;;  %v246_v39 = vld [vmem:[%s3968_s6 + $0xb8] sm:$0xff]  ;;  %v247_v40 = vld [vmem:[%s3968_s6 + $0xc0] sm:$0xff]  ;;  %v248_v41 = vld [vmem:[%s3968_s6 + $0xc8] sm:$0xff] }
  0x19   : > { %3682 = vmatpush3.msra.mxu0 %v264_v7  ;;  %v249_v42 = vld [vmem:[%s3968_s6 + $0xd0] sm:$0xff]  ;;  %v250_v43 = vld [vmem:[%s3968_s6 + $0xd8] sm:$0xff]  ;;  %v251_v44 = vld [vmem:[%s3968_s6 + $0xe0] sm:$0xff] }
  0x1a   : > { %3683 = vmatprep.subr.mxu0 %v263_v8  ;;  %v252_v45 = vld [vmem:[%s3968_s6 + $0xe8] sm:$0xff]  ;;  %v253_v46 = vld [vmem:[%s3968_s6 + $0xf0] sm:$0xff]  ;;  %v254_v47 = vld [vmem:[%s3968_s6 + $0xf8] sm:$0xff]  ;;  %s3909_s6 = smov 96  }
  0x1b   : > { %3684 = vmatpush3.msra.mxu0 %v263_v8  ;;  %v4043_v53 = vld [vmem:[%s5203_s2] ss:$0 sm:$0xff] }
  0x1c   : > { %3685 = vmatprep.subr.mxu0 %v262_v9 }
  0x1d   : > { %3686 = vmatpush3.msra.mxu0 %v262_v9 }
  0x1e   : > { %3687 = vmatprep.subr.mxu0 %v261_v10 }
  0x1f   : > { %3688 = vmatpush3.msra.mxu0 %v261_v10 }
  0x20   : > { %3689 = vmatprep.subr.mxu0 %v260_v11 }
  0x21   : > { %3690 = vmatpush3.msra.mxu0 %v260_v11 }
  0x22   : > { %3691 = vmatprep.subr.mxu0 %v259_v12 }
  0x23   : > { %3692 = vmatpush3.msra.mxu0 %v259_v12 }
  0x24   : > { %3693 = vmatprep.subr.mxu0 %v258_v13 }
  0x25   : > { %3694 = vmatpush3.msra.mxu0 %v258_v13 }
  0x26   : > { %3695 = vmatprep.subr.mxu0 %v257_v14 }
  0x27   : > { %3696 = vmatpush3.msra.mxu0 %v257_v14 }
  0x28   : > { %3697 = vmatprep.subr.mxu0 %v256_v15 }
  0x29   : > { %3698 = vmatpush3.msra.mxu0 %v256_v15 }
  0x2a   : > { %3699 = vmatprep.subr.mxu0 %v255_v16 }
  0x2b   : > { %3700 = vmatpush3.msra.mxu0 %v255_v16 }
  0x2c   : > { %3702 = vmatmul.mubr.f32.vlgmr.msra.gmra.mxu0 %v224_v17 }
  0x2d   : > { %3704 = vmatprep.mubr.f32.mxu0 %v225_v18 }
  0x30   : > { %3705 = vmatmul.mubr.f32.gmra.mxu0 %v226_v19 }
  0x31   : > { %3707 = vmatprep.mubr.f32.mxu0 %v227_v20 }
  0x34   : > { %3708 = vmatmul.mubr.f32.gmra.mxu0 %v228_v21 }
  0x35   : > { %3710 = vmatprep.mubr.f32.mxu0 %v229_v22 }
  0x38   : > { %3711 = vmatmul.mubr.f32.gmra.mxu0 %v230_v23 }
  0x39   : > { %3713 = vmatprep.mubr.f32.mxu0 %v231_v24 }
  0x3c   : > { %3714 = vmatmul.mubr.f32.gmra.mxu0 %v232_v25 }
  0x3d   : > { %3716 = vmatprep.mubr.f32.mxu0 %v233_v26 }
  0x40   : > { %3717 = vmatmul.mubr.f32.gmra.mxu0 %v234_v27 }
  0x41   : > { %3719 = vmatprep.mubr.f32.mxu0 %v235_v28 }
  0x44   : > { %3720 = vmatmul.mubr.f32.gmra.mxu0 %v236_v29 }
  0x45   : > { %3722 = vmatprep.mubr.f32.mxu0 %v237_v30 }
  0x48   : > { %3723 = vmatmul.mubr.f32.gmra.mxu0 %v238_v31 }
  0x49   : > { %3725 = vmatprep.mubr.f32.mxu0 %v239_v32 }
  0x4c   : > { %3726 = vmatmul.mubr.f32.gmra.mxu0 %v240_v33 }
  0x4d   : > { %3728 = vmatprep.mubr.f32.mxu0 %v241_v34 }
  0x50   : > { %3729 = vmatmul.mubr.f32.gmra.mxu0 %v242_v35 }
  0x51   : > { %3731 = vmatprep.mubr.f32.mxu0 %v243_v36 }
  0x54   : > { %3732 = vmatmul.mubr.f32.gmra.mxu0 %v244_v37 }
  0x55   : > { %3734 = vmatprep.mubr.f32.mxu0 %v245_v38 }
  0x58   : > { %3735 = vmatmul.mubr.f32.gmra.mxu0 %v246_v39 }
  0x59   : > { %3737 = vmatprep.mubr.f32.mxu0 %v247_v40 }
  0x5c   : > { %3738 = vmatmul.mubr.f32.gmra.mxu0 %v248_v41 }
  0x5d   : > { %3740 = vmatprep.mubr.f32.mxu0 %v249_v42 }
  0x60   : > { %3741 = vmatmul.mubr.f32.gmra.mxu0 %v250_v43 }
  0x61   : > { %3743 = vmatprep.mubr.f32.mxu0 %v251_v44 }
  0x64   : > { %3744 = vmatmul.mubr.f32.gmra.mxu0 %v252_v45 }
  0x65   : > { %3746 = vmatprep.mubr.f32.mxu0 %v253_v46 }
  0x68   : > { %3747 = vmatmul.mubr.f32.gmra.mxu0 %v254_v47 }
  0xec   : > { %v3703_v54 = vpop.f32.mrf.mxu0 }
  0xed   : > { %v350_v55 = vadd.f32 %v3703_v54, %v4043_v53 }
  0xee   : > { %v344_v57 = vpop.f32.mrf.mxu0 }
  0xef   : > { %v504_v58 = vmax.f32 %v350_v55, 0.0  ;;  %v345_v59 = vadd.f32 %v4043_v53, %v344_v57 }
  0xf0   : > { %v3706_v60 = vpop.f32.mrf.mxu0 }
  0xf1   : > { %v584_v61 = vcombine.high %v504_v58, %v504_v58  ;;  %v591_v62 = vrot.slane %v504_v58, %v4047_v56  ;;  %v503_v63 = vmax.f32 %v345_v59, 0.0  ;;  %v360_v0 = vadd.f32 %v3706_v60, %v4043_v53 }
  0xf2   : > { %v354_v44 = vpop.f32.mrf.mxu0 }
  0xf3   : > { %v598_v1 = vrot.slane %v584_v61, %v4047_v56  ;;  %v599_v2 = vcombine.high %v591_v62, %v591_v62  ;;  %v1268_v3 = vsel %vm1239_vm0, %v591_v62, -inf  ;;  %v567_v4 = vcombine.high %v503_v63, %v503_v63 }
  0xf4   : > { %v1269_v5 = vrot.slane %v1268_v3, 4  ;;  %v574_v6 = vrot.slane %v503_v63, %v4047_v56  ;;  %v4055_v7 = vmax.f32 %v360_v0, 0.0  ;;  %v355_v59 = vadd.f32 %v4043_v53, %v354_v44 }
  0xf5   : > { %v600_v8 = vcombine.high %v598_v1, %v598_v1  ;;  %v1275_v9 = vsel %vm1239_vm0, %v599_v2, -inf  ;;  %v1282_v10 = vsel %vm1239_vm0, %v598_v1, -inf  ;;  %v581_v11 = vrot.slane %v567_v4, %v4047_v56 }
  0xf6   : > { %v1270_v12 = vmax.f32 %v1268_v3, %v1269_v5  ;;  %v1276_v13 = vrot.slane %v1275_v9, 4  ;;  %v1283_v14 = vrot.slane %v1282_v10, 4  ;;  %v582_v15 = vcombine.high %v574_v6, %v574_v6 }
  0xf7   : > { %v1289_v16 = vsel %vm1239_vm0, %v600_v8, -inf  ;;  %v583_v17 = vcombine.high %v581_v11, %v581_v11  ;;  %v1240_v18 = vsel %vm1239_vm0, %v574_v6, -inf  ;;  %v1254_v19 = vsel %vm1239_vm0, %v581_v11, -inf }
  0xf8   : > { %v1271_v20 = vrot.slane %v1270_v12, 2  ;;  %v1277_v21 = vmax.f32 %v1275_v9, %v1276_v13  ;;  %v1284_v22 = vmax.f32 %v1282_v10, %v1283_v14  ;;  %v1290_v23 = vrot.slane %v1289_v16, 4 }
  0xf9   : > { %v1241_v24 = vrot.slane %v1240_v18, 4  ;;  %v1247_v25 = vsel %vm1239_vm0, %v582_v15, -inf  ;;  %v1255_v26 = vrot.slane %v1254_v19, 4  ;;  %v1261_v27 = vsel %vm1239_vm0, %v583_v17, -inf }
  0xfa   : > { %v1272_v28 = vmax.f32 %v1270_v12, %v1271_v20  ;;  %v1278_v29 = vrot.slane %v1277_v21, 2  ;;  %v1285_v30 = vrot.slane %v1284_v22, 2  ;;  %v1291_v31 = vmax.f32 %v1289_v16, %v1290_v23 }
  0xfb   : > { %v1242_v32 = vmax.f32 %v1240_v18, %v1241_v24  ;;  %v1248_v33 = vrot.slane %v1247_v25, 4  ;;  %v1256_v34 = vmax.f32 %v1254_v19, %v1255_v26  ;;  %v1262_v35 = vrot.slane %v1261_v27, 4  ;;  %v3709_v24 = vpop.f32.mrf.mxu0 }
  0xfc   : > { %v1273_v36 = vrot.slane %v1272_v28, 1  ;;  %v1279_v37 = vmax.f32 %v1277_v21, %v1278_v29  ;;  %v1286_v38 = vmax.f32 %v1284_v22, %v1285_v30  ;;  %v1292_v39 = vrot.slane %v1291_v31, 2 }
  0xfd   : > { %v1243_v40 = vrot.slane %v1242_v32, 2  ;;  %v1249_v41 = vmax.f32 %v1247_v25, %v1248_v33  ;;  %v1257_v42 = vrot.slane %v1256_v34, 2  ;;  %v1263_v43 = vmax.f32 %v1261_v27, %v1262_v35 }
  0xfe   : > { %v1274_v45 = vmax.f32 %v1272_v28, %v1273_v36  ;;  %v1280_v46 = vrot.slane %v1279_v37, 1  ;;  %v1287_v47 = vrot.slane %v1286_v38, 1  ;;  %v1293_v48 = vmax.f32 %v1291_v31, %v1292_v39 }
  0xff   : > { %v1244_v49 = vmax.f32 %v1242_v32, %v1243_v40  ;;  %v1250_v50 = vrot.slane %v1249_v41, 2  ;;  %v1258_v51 = vmax.f32 %v1256_v34, %v1257_v42  ;;  %v1264_v54 = vrot.slane %v1263_v43, 2 }
 0x100   : > { %v1281_v55 = vmax.f32 %v1279_v37, %v1280_v46  ;;  %v1288_v57 = vmax.f32 %v1286_v38, %v1287_v47  ;;  %v1294_v58 = vrot.slane %v1293_v48, 1  ;;  %v4067_v1 = vsel %vm2136_vm1, %v1274_v45, -inf }
 0x101   : > { %v1245_v60 = vrot.slane %v1244_v49, 1  ;;  %v1251_v61 = vmax.f32 %v1249_v41, %v1250_v50  ;;  %v1259_v62 = vrot.slane %v1258_v51, 1  ;;  %v1265_v63 = vmax.f32 %v1263_v43, %v1264_v54 }
 0x102   : > { %v1295_v0 = vmax.f32 %v1293_v48, %v1294_v58  ;;  %v4070_v2 = vsel %vm2136_vm1, %v1281_v55, -inf  ;;  %v618_v3 = vcombine.high %v4055_v7, %v4055_v7  ;;  %v4075_v9 = vsel %vm2136_vm1, %v1288_v57, -inf }
 0x103   : > { %v1246_v4 = vmax.f32 %v1244_v49, %v1245_v60  ;;  %v1252_v5 = vrot.slane %v1251_v61, 1  ;;  %v1260_v6 = vmax.f32 %v1258_v51, %v1259_v62  ;;  %v1266_v8 = vrot.slane %v1265_v63, 1 }
 0x104   : > { %v625_v10 = vrot.slane %v4055_v7, %v4047_v56  ;;  %v632_v11 = vrot.slane %v618_v3, %v4047_v56  ;;  %v505_v12 = vmax.f32 %v355_v59, 0.0  ;;  %v4081_v13 = vsel %vm2136_vm1, %v1295_v0, -inf }
 0x105   : > { %v1253_v14 = vmax.f32 %v1251_v61, %v1252_v5  ;;  %v1267_v15 = vmax.f32 %v1265_v63, %v1266_v8  ;;  %v4084_v16 = vsel %vm2136_vm1, %v1246_v4, -inf  ;;  %v4092_v7 = vsel %vm2136_vm1, %v1260_v6, -inf  ;;  %v364_v6 = vpop.f32.mrf.mxu0 }
 0x106   : > { %v633_v17 = vcombine.high %v625_v10, %v625_v10  ;;  %v634_v18 = vcombine.high %v632_v11, %v632_v11  ;;  %v1324_v19 = vsel %vm1239_vm0, %v625_v10, -inf  ;;  %v1338_v20 = vsel %vm1239_vm0, %v632_v11, -inf }
 0x107   : > { %v4089_v21 = vsel %vm2136_vm1, %v1253_v14, -inf  ;;  %v1325_v22 = vrot.slane %v1324_v19, 4  ;;  %v1339_v23 = vrot.slane %v1338_v20, 4  ;;  %v601_v27 = vcombine.high %v505_v12, %v505_v12 }
 0x108   : > { %v1331_v25 = vsel %vm1239_vm0, %v633_v17, -inf  ;;  %v1345_v26 = vsel %vm1239_vm0, %v634_v18, -inf  ;;  %v608_v28 = vrot.slane %v505_v12, %v4047_v56  ;;  %v370_v36 = vadd.f32 %v3709_v24, %v4043_v53 }
 0x109   : > { %v1326_v29 = vmax.f32 %v1324_v19, %v1325_v22  ;;  %v1332_v30 = vrot.slane %v1331_v25, 4  ;;  %v1340_v31 = vmax.f32 %v1338_v20, %v1339_v23  ;;  %v1346_v32 = vrot.slane %v1345_v26, 4 }
 0x10a   : > { %v615_v33 = vrot.slane %v601_v27, %v4047_v56  ;;  %v616_v34 = vcombine.high %v608_v28, %v608_v28  ;;  %v1296_v35 = vsel %vm1239_vm0, %v608_v28, -inf  ;;  %v2146_v20 = vsel %vm2136_vm1, %v1267_v15, -inf }
 0x10b   : > { %v1327_v37 = vrot.slane %v1326_v29, 2  ;;  %v1333_v38 = vmax.f32 %v1331_v25, %v1332_v30  ;;  %v1341_v39 = vrot.slane %v1340_v31, 2  ;;  %v1347_v40 = vmax.f32 %v1345_v26, %v1346_v32 }
 0x10c   : > { %v617_v41 = vcombine.high %v615_v33, %v615_v33  ;;  %v1297_v42 = vrot.slane %v1296_v35, 4  ;;  %v1303_v43 = vsel %vm1239_vm0, %v616_v34, -inf  ;;  %v1310_v44 = vsel %vm1239_vm0, %v615_v33, -inf }
 0x10d   : > { %v1328_v45 = vmax.f32 %v1326_v29, %v1327_v37  ;;  %v1334_v46 = vrot.slane %v1333_v38, 2  ;;  %v1342_v47 = vmax.f32 %v1340_v31, %v1341_v39  ;;  %v1348_v48 = vrot.slane %v1347_v40, 2  ;;  %v3712_v29 = vpop.f32.mrf.mxu0 }
 0x10e   : > { %v1298_v49 = vmax.f32 %v1296_v35, %v1297_v42  ;;  %v1304_v50 = vrot.slane %v1303_v43, 4  ;;  %v1311_v51 = vrot.slane %v1310_v44, 4  ;;  %v1317_v54 = vsel %vm1239_vm0, %v617_v41, -inf }
 0x10f   : > { %v1329_v55 = vrot.slane %v1328_v45, 1  ;;  %v1335_v57 = vmax.f32 %v1333_v38, %v1334_v46  ;;  %v1343_v58 = vrot.slane %v1342_v47, 1  ;;  %v1349_v59 = vmax.f32 %v1347_v40, %v1348_v48 }
 0x110   : > { %v1299_v60 = vrot.slane %v1298_v49, 2  ;;  %v1305_v61 = vmax.f32 %v1303_v43, %v1304_v50  ;;  %v1312_v62 = vmax.f32 %v1310_v44, %v1311_v51  ;;  %v1318_v63 = vrot.slane %v1317_v54, 4 }
 0x111   : > { %v1330_v0 = vmax.f32 %v1328_v45, %v1329_v55  ;;  %v1336_v3 = vrot.slane %v1335_v57, 1  ;;  %v1344_v4 = vmax.f32 %v1342_v47, %v1343_v58  ;;  %v1350_v5 = vrot.slane %v1349_v59, 1 }
 0x112   : > { %v1300_v8 = vmax.f32 %v1298_v49, %v1299_v60  ;;  %v1306_v10 = vrot.slane %v1305_v61, 2  ;;  %v1313_v11 = vrot.slane %v1312_v62, 2  ;;  %v1319_v12 = vmax.f32 %v1317_v54, %v1318_v63 }
 0x113   : > { %v1337_v14 = vmax.f32 %v1335_v57, %v1336_v3  ;;  %v1351_v17 = vmax.f32 %v1349_v59, %v1350_v5  ;;  %v4104_v18 = vsel %vm2136_vm1, %v1330_v0, -inf  ;;  %v4107_v19 = vsel %vm2136_vm1, %v1344_v4, -inf }
 0x114   : > { %v2151_v22 = vmax.f32 %v4067_v1, %v4104_v18  ;;  %v1301_v23 = vrot.slane %v1300_v8, 1  ;;  %v1307_v24 = vmax.f32 %v1305_v61, %v1306_v10  ;;  %v1314_v27 = vmax.f32 %v1312_v62, %v1313_v11 }
 0x115   : > { %v2153_v25 = vsel %vm2136_vm1, %v1337_v14, -inf  ;;  %v4114_v26 = vsel %vm2136_vm1, %v1351_v17, -inf  ;;  %v1320_v28 = vrot.slane %v1319_v12, 2  ;;  %v2157_v31 = vmax.f32 %v4075_v9, %v4107_v19 }
 0x116   : > { %v2154_v30 = vmax.f32 %v4070_v2, %v2153_v25  ;;  %v1302_v15 = vmax.f32 %v1300_v8, %v1301_v23  ;;  %v1308_v32 = vrot.slane %v1307_v24, 1  ;;  %v1315_v1 = vrot.slane %v1314_v27, 1 }
 0x117   : > { %v1321_v33 = vmax.f32 %v1319_v12, %v1320_v28  ;;  %v508_v34 = vmax.f32 %v370_v36, 0.0  ;;  %v365_v35 = vadd.f32 %v4043_v53, %v364_v6  ;;  %v2160_v37 = vmax.f32 %v4081_v13, %v4114_v26 }
 0x118   : > { %v1309_v38 = vmax.f32 %v1307_v24, %v1308_v32  ;;  %v2138_v39 = vsel %vm2136_vm1, %v1302_v15, -inf  ;;  %v380_v2 = vadd.f32 %v3712_v29, %v4043_v53  ;;  %v1316_v40 = vmax.f32 %v1314_v27, %v1315_v1 }
 0x119   : > { %v1322_v9 = vrot.slane %v1321_v33, 1  ;;  %v2139_v41 = vmax.f32 %v4084_v16, %v2138_v39  ;;  %v652_v42 = vcombine.high %v508_v34, %v508_v34  ;;  %v659_v36 = vrot.slane %v508_v34, %v4047_v56 }
 0x11a   : > { %v2141_v43 = vsel %vm2136_vm1, %v1309_v38, -inf  ;;  %v507_v44 = vmax.f32 %v365_v35, 0.0  ;;  %v4127_v45 = vmax.f32 %v380_v2, 0.0  ;;  %v2144_v47 = vsel %vm2136_vm1, %v1316_v40, -inf  ;;  %v374_v2 = vpop.f32.mrf.mxu0 }
 0x11b   : > { %v1323_v13 = vmax.f32 %v1321_v33, %v1322_v9  ;;  %v2142_v46 = vmax.f32 %v4089_v21, %v2141_v43  ;;  %v666_v48 = vrot.slane %v652_v42, %v4047_v56  ;;  %v2145_v49 = vmax.f32 %v4092_v7, %v2144_v47 }
 0x11c   : > { %v667_v50 = vcombine.high %v659_v36, %v659_v36  ;;  %v1380_v16 = vsel %vm1239_vm0, %v659_v36, -inf  ;;  %v635_v51 = vcombine.high %v507_v44, %v507_v44  ;;  %v642_v5 = vrot.slane %v507_v44, %v4047_v56 }
 0x11d   : > { %v2147_v54 = vsel %vm2136_vm1, %v1323_v13, -inf  ;;  %v2417_v55 = vsel %vm2416_vm2, %v2142_v46, %v2139_v41  ;;  %v668_v57 = vcombine.high %v666_v48, %v666_v48  ;;  %v1381_v58 = vrot.slane %v1380_v16, 4 }
 0x11e   : > { %v2148_v59 = vmax.f32 %v2146_v20, %v2147_v54  ;;  %v2419_v60 = vsel %vm2418_vm3, %v2145_v49, %v2417_v55  ;;  %v1387_v21 = vsel %vm1239_vm0, %v667_v50, -inf  ;;  %v1394_v61 = vsel %vm1239_vm0, %v666_v48, -inf }
 0x11f   : > { %v1382_v62 = vmax.f32 %v1380_v16, %v1381_v58  ;;  %v1388_v63 = vrot.slane %v1387_v21, 4  ;;  %v1395_v7 = vrot.slane %v1394_v61, 4  ;;  %v1401_v0 = vsel %vm1239_vm0, %v668_v57, -inf }
 0x120   : > { %v2421_v3 = vsel %vm2420_vm4, %v2148_v59, %v2419_v60  ;;  %v1402_v4 = vrot.slane %v1401_v0, 4  ;;  %v649_v6 = vrot.slane %v635_v51, %v4047_v56  ;;  %v650_v18 = vcombine.high %v642_v5, %v642_v5 }
 0x121   : > { %v2423_v8 = vsel %vm2422_vm5, %v2151_v22, %v2421_v3  ;;  %v1383_v10 = vrot.slane %v1382_v62, 2  ;;  %v1389_v11 = vmax.f32 %v1387_v21, %v1388_v63  ;;  %v1396_v12 = vmax.f32 %v1394_v61, %v1395_v7 }
 0x122   : > { %v2425_v14 = vsel %vm2424_vm6, %v2154_v30, %v2423_v8  ;;  %v1403_v17 = vmax.f32 %v1401_v0, %v1402_v4  ;;  %v651_v19 = vcombine.high %v649_v6, %v649_v6  ;;  %v1352_v28 = vsel %vm1239_vm0, %v642_v5, -inf }
 0x123   : > { %v2427_v20 = vsel %vm2426_vm7, %v2157_v31, %v2425_v14  ;;  %v1384_v23 = vmax.f32 %v1382_v62, %v1383_v10  ;;  %v1390_v24 = vrot.slane %v1389_v11, 2  ;;  %v1397_v25 = vrot.slane %v1396_v12, 2 }
 0x124   : > { %v2429_v26 = vsel %vm2428_vm8, %v2160_v37, %v2427_v20  ;;  %v1404_v27 = vrot.slane %v1403_v17, 2  ;;  %v1359_v22 = vsel %vm1239_vm0, %v650_v18, -inf  ;;  %v1353_v32 = vrot.slane %v1352_v28, 4 }
 0x125   : > { %2487 = vst.msk [vmem:[#allocation2 + $0x11] sm:$0xff] %vm2136_vm1, %v2429_v26  ;;  %v1385_v29 = vrot.slane %v1384_v23, 1  ;;  %v1391_v15 = vmax.f32 %v1389_v11, %v1390_v24  ;;  %v1398_v30 = vmax.f32 %v1396_v12, %v1397_v25  ;;  %v1360_v33 = vrot.slane %v1359_v22, 4 }
 0x126   : > { %v1405_v1 = vmax.f32 %v1403_v17, %v1404_v27  ;;  %v1366_v31 = vsel %vm1239_vm0, %v649_v6, -inf  ;;  %v1373_v34 = vsel %vm1239_vm0, %v651_v19, -inf  ;;  %v1354_v39 = vmax.f32 %v1352_v28, %v1353_v32  ;;  %v3715_v6 = vpop.f32.mrf.mxu0 }
 0x127   : > { %v1386_v35 = vmax.f32 %v1384_v23, %v1385_v29  ;;  %v1392_v38 = vrot.slane %v1391_v15, 1  ;;  %v1399_v37 = vrot.slane %v1398_v30, 1  ;;  %v1361_v9 = vmax.f32 %v1359_v22, %v1360_v33 }
 0x128   : > { %v1406_v40 = vrot.slane %v1405_v1, 1  ;;  %v1367_v41 = vrot.slane %v1366_v31, 4  ;;  %v1374_v42 = vrot.slane %v1373_v34, 4  ;;  %v1355_v36 = vrot.slane %v1354_v39, 2 }
 0x129   : > { %v1393_v43 = vmax.f32 %v1391_v15, %v1392_v38  ;;  %v1362_v44 = vrot.slane %v1361_v9, 2  ;;  %v375_v47 = vadd.f32 %v4043_v53, %v374_v2  ;;  %v1400_v48 = vmax.f32 %v1398_v30, %v1399_v37 }
 0x12a   : > { %v1368_v13 = vmax.f32 %v1366_v31, %v1367_v41  ;;  %v1375_v46 = vmax.f32 %v1373_v34, %v1374_v42  ;;  %v4154_v49 = vsel %vm2136_vm1, %v1386_v35, -inf  ;;  %v1356_v50 = vmax.f32 %v1354_v39, %v1355_v36 }
 0x12b   : > { %v686_v16 = vcombine.high %v4127_v45, %v4127_v45  ;;  %v1407_v51 = vmax.f32 %v1405_v1, %v1406_v40  ;;  %v1363_v54 = vmax.f32 %v1361_v9, %v1362_v44  ;;  %v4159_v58 = vsel %vm2136_vm1, %v1393_v43, -inf }
 0x12c   : > { %v1369_v55 = vrot.slane %v1368_v13, 2  ;;  %v1376_v57 = vrot.slane %v1375_v46, 2  ;;  %v1357_v59 = vrot.slane %v1356_v50, 1  ;;  %v693_v60 = vrot.slane %v4127_v45, %v4047_v56 }
 0x12d   : > { %v700_v21 = vrot.slane %v686_v16, %v4047_v56  ;;  %v1364_v61 = vrot.slane %v1363_v54, 1  ;;  %v509_v7 = vmax.f32 %v375_v47, 0.0  ;;  %v4166_v8 = vsel %vm2136_vm1, %v1400_v48, -inf }
 0x12e   : > { %v1370_v62 = vmax.f32 %v1368_v13, %v1369_v55  ;;  %v1377_v63 = vmax.f32 %v1375_v46, %v1376_v57  ;;  %v1358_v0 = vmax.f32 %v1356_v50, %v1357_v59  ;;  %v701_v3 = vcombine.high %v693_v60, %v693_v60 }
 0x12f   : > { %v702_v4 = vcombine.high %v700_v21, %v700_v21  ;;  %v1436_v5 = vsel %vm1239_vm0, %v693_v60, -inf  ;;  %v4169_v45 = vsel %vm2136_vm1, %v1407_v51, -inf  ;;  %v1450_v17 = vsel %vm1239_vm0, %v700_v21, -inf }
 0x130   : > { %v1371_v10 = vrot.slane %v1370_v62, 1  ;;  %v1378_v11 = vrot.slane %v1377_v63, 1  ;;  %v1437_v12 = vrot.slane %v1436_v5, 4  ;;  %v1443_v14 = vsel %vm1239_vm0, %v701_v3, -inf }
 0x131   : > { %v1457_v18 = vsel %vm1239_vm0, %v702_v4, -inf  ;;  %v1365_v19 = vmax.f32 %v1363_v54, %v1364_v61  ;;  %v4175_v20 = vsel %vm2136_vm1, %v1358_v0, -inf  ;;  %v390_v24 = vadd.f32 %v3715_v6, %v4043_v53 }
 0x132   : > { %v1438_v23 = vmax.f32 %v1436_v5, %v1437_v12  ;;  %v1444_v25 = vrot.slane %v1443_v14, 4  ;;  %v1451_v26 = vrot.slane %v1450_v17, 4  ;;  %v1458_v27 = vrot.slane %v1457_v18, 4 }
 0x133   : > { %v669_v28 = vcombine.high %v509_v7, %v509_v7  ;;  %v1372_v22 = vmax.f32 %v1370_v62, %v1371_v10  ;;  %v1379_v29 = vmax.f32 %v1377_v63, %v1378_v11  ;;  %v676_v30 = vrot.slane %v509_v7, %v4047_v56 }
 0x134   : > { %v1439_v15 = vrot.slane %v1438_v23, 2  ;;  %v1445_v32 = vmax.f32 %v1443_v14, %v1444_v25  ;;  %v1452_v1 = vmax.f32 %v1450_v17, %v1451_v26  ;;  %v1459_v33 = vmax.f32 %v1457_v18, %v1458_v27  ;;  %v384_v18 = vpop.f32.mrf.mxu0 }
 0x135   : > { %v683_v31 = vrot.slane %v669_v28, %v4047_v56  ;;  %v684_v35 = vcombine.high %v676_v30, %v676_v30  ;;  %v1408_v38 = vsel %vm1239_vm0, %v676_v30, -inf  ;;  %v512_v37 = vmax.f32 %v390_v24, 0.0 }
 0x136   : > { %v1440_v34 = vmax.f32 %v1438_v23, %v1439_v15  ;;  %v1446_v39 = vrot.slane %v1445_v32, 2  ;;  %v1453_v2 = vrot.slane %v1452_v1, 2  ;;  %v1460_v40 = vrot.slane %v1459_v33, 2 }
 0x137   : > { %v685_v9 = vcombine.high %v683_v31, %v683_v31  ;;  %v1409_v42 = vrot.slane %v1408_v38, 4  ;;  %v1415_v43 = vsel %vm1239_vm0, %v684_v35, -inf  ;;  %v1422_v36 = vsel %vm1239_vm0, %v683_v31, -inf }
 0x138   : > { %v1441_v41 = vrot.slane %v1440_v34, 1  ;;  %v1447_v44 = vmax.f32 %v1445_v32, %v1446_v39  ;;  %v1454_v13 = vmax.f32 %v1452_v1, %v1453_v2  ;;  %v1461_v46 = vmax.f32 %v1459_v33, %v1460_v40 }
 0x139   : > { %v1416_v47 = vrot.slane %v1415_v43, 4  ;;  %v1410_v50 = vmax.f32 %v1408_v38, %v1409_v42  ;;  %v1423_v16 = vrot.slane %v1422_v36, 4  ;;  %v1429_v51 = vsel %vm1239_vm0, %v685_v9, -inf }
 0x13a   : > { %v1442_v48 = vmax.f32 %v1440_v34, %v1441_v41  ;;  %v1448_v54 = vrot.slane %v1447_v44, 1  ;;  %v1455_v55 = vrot.slane %v1454_v13, 1  ;;  %v1462_v57 = vrot.slane %v1461_v46, 1 }
 0x13b   : > { %v1417_v59 = vmax.f32 %v1415_v43, %v1416_v47  ;;  %v2164_v60 = vsel %vm2136_vm1, %v1365_v19, -inf  ;;  %v1411_v21 = vrot.slane %v1410_v50, 2  ;;  %v1424_v61 = vmax.f32 %v1422_v36, %v1423_v16 }
 0x13c   : > { %v1430_v62 = vrot.slane %v1429_v51, 4  ;;  %v1449_v63 = vmax.f32 %v1447_v44, %v1448_v54  ;;  %v1456_v7 = vmax.f32 %v1454_v13, %v1455_v55  ;;  %v1463_v0 = vmax.f32 %v1461_v46, %v1462_v57 }
 0x13d   : > { %v4186_v3 = vsel %vm2136_vm1, %v1442_v48, -inf  ;;  %v1412_v4 = vmax.f32 %v1410_v50, %v1411_v21  ;;  %v1418_v5 = vrot.slane %v1417_v59, 2  ;;  %v1425_v6 = vrot.slane %v1424_v61, 2 }
 0x13e   : > { %v1431_v10 = vmax.f32 %v1429_v51, %v1430_v62  ;;  %v2167_v11 = vsel %vm2136_vm1, %v1372_v22, -inf  ;;  %v2170_v12 = vsel %vm2136_vm1, %v1379_v29, -inf  ;;  %v4191_v14 = vsel %vm2136_vm1, %v1449_v63, -inf }
 0x13f   : > { %v720_v17 = vcombine.high %v512_v37, %v512_v37  ;;  %v2175_v19 = vmax.f32 %v4154_v49, %v4186_v3  ;;  %v2180_v23 = vsel %vm2136_vm1, %v1456_v7, -inf  ;;  %v4197_v24 = vsel %vm2136_vm1, %v1463_v0, -inf }
 0x140   : > { %v1413_v25 = vrot.slane %v1412_v4, 1  ;;  %v1419_v26 = vmax.f32 %v1417_v59, %v1418_v5  ;;  %v1426_v27 = vmax.f32 %v1424_v61, %v1425_v6  ;;  %v1432_v28 = vrot.slane %v1431_v10, 2  ;;  %v3718_v6 = vpop.f32.mrf.mxu0 }
 0x141   : > { %v727_v22 = vrot.slane %v512_v37, %v4047_v56  ;;  %v2178_v29 = vmax.f32 %v4159_v58, %v4191_v14  ;;  %v734_v30 = vrot.slane %v720_v17, %v4047_v56  ;;  %v385_v32 = vadd.f32 %v4043_v53, %v384_v18 }
 0x142   : > { %v1414_v15 = vmax.f32 %v1412_v4, %v1413_v25  ;;  %v1420_v49 = vrot.slane %v1419_v26, 1  ;;  %v1427_v1 = vrot.slane %v1426_v27, 1  ;;  %v1433_v33 = vmax.f32 %v1431_v10, %v1432_v28 }
 0x143   : > { %v735_v31 = vcombine.high %v727_v22, %v727_v22  ;;  %v736_v35 = vcombine.high %v734_v30, %v734_v30  ;;  %v1492_v38 = vsel %vm1239_vm0, %v727_v22, -inf  ;;  %v1506_v39 = vsel %vm1239_vm0, %v734_v30, -inf }
 0x144   : > { %v2162_v34 = vsel %vm2136_vm1, %v1414_v15, -inf  ;;  %v1421_v37 = vmax.f32 %v1419_v26, %v1420_v49  ;;  %v1428_v2 = vmax.f32 %v1426_v27, %v1427_v1  ;;  %v1434_v40 = vrot.slane %v1433_v33, 1 }
 0x145   : > { %v2163_v58 = vmax.f32 %v4175_v20, %v2162_v34  ;;  %v1493_v9 = vrot.slane %v1492_v38, 4  ;;  %v1499_v41 = vsel %vm1239_vm0, %v735_v31, -inf  ;;  %v1507_v42 = vrot.slane %v1506_v39, 4  ;;  %v394_v34 = vpop.f32.mrf.mxu0 }
 0x146   : > { %v1513_v43 = vsel %vm1239_vm0, %v736_v35, -inf  ;;  %v1435_v36 = vmax.f32 %v1433_v33, %v1434_v40  ;;  %v2165_v44 = vsel %vm2136_vm1, %v1421_v37, -inf  ;;  %v2168_v13 = vsel %vm2136_vm1, %v1428_v2, -inf }
 0x147   : > { %v1500_v46 = vrot.slane %v1499_v41, 4  ;;  %v2166_v47 = vmax.f32 %v2164_v60, %v2165_v44  ;;  %v2169_v48 = vmax.f32 %v2167_v11, %v2168_v13  ;;  %v1494_v50 = vmax.f32 %v1492_v38, %v1493_v9 }
 0x148   : > { %v1508_v16 = vmax.f32 %v1506_v39, %v1507_v42  ;;  %v2171_v51 = vsel %vm2136_vm1, %v1435_v36, -inf  ;;  %v1514_v20 = vrot.slane %v1513_v43, 4  ;;  %v511_v55 = vmax.f32 %v385_v32, 0.0 }
 0x149   : > { %v1501_v54 = vmax.f32 %v1499_v41, %v1500_v46  ;;  %v2172_v57 = vmax.f32 %v2170_v12, %v2171_v51  ;;  %v2430_v59 = vsel %vm2416_vm2, %v2166_v47, %v2163_v58  ;;  %v1495_v21 = vrot.slane %v1494_v50, 2 }
 0x14a   : > { %v1509_v61 = vrot.slane %v1508_v16, 2  ;;  %v2431_v62 = vsel %vm2418_vm3, %v2169_v48, %v2430_v59  ;;  %v1515_v7 = vmax.f32 %v1513_v43, %v1514_v20  ;;  %v703_v0 = vcombine.high %v511_v55, %v511_v55 }
 0x14b   : > { %v1502_v63 = vrot.slane %v1501_v54, 2  ;;  %v2432_v60 = vsel %vm2420_vm4, %v2172_v57, %v2431_v62  ;;  %v1496_v3 = vmax.f32 %v1494_v50, %v1495_v21  ;;  %v710_v5 = vrot.slane %v511_v55, %v4047_v56 }
 0x14c   : > { %v1510_v4 = vmax.f32 %v1508_v16, %v1509_v61  ;;  %v2181_v10 = vmax.f32 %v4166_v8, %v2180_v23  ;;  %v2433_v11 = vsel %vm2422_vm5, %v2175_v19, %v2432_v60  ;;  %v717_v14 = vrot.slane %v703_v0, %v4047_v56 }
 0x14d   : > { %v1503_v12 = vmax.f32 %v1501_v54, %v1502_v63  ;;  %v2184_v17 = vmax.f32 %v4169_v45, %v4197_v24  ;;  %v2434_v18 = vsel %vm2424_vm6, %v2178_v29, %v2433_v11  ;;  %v718_v25 = vcombine.high %v710_v5, %v710_v5 }
 0x14e   : > { %v2435_v26 = vsel %vm2426_vm7, %v2181_v10, %v2434_v18  ;;  %v1497_v27 = vrot.slane %v1496_v3, 1  ;;  %v1516_v28 = vrot.slane %v1515_v7, 2  ;;  %v400_v22 = vadd.f32 %v3718_v6, %v4043_v53 }
 0x14f   : > { %v2436_v15 = vsel %vm2428_vm8, %v2184_v17, %v2435_v26  ;;  %v1511_v8 = vrot.slane %v1510_v4, 1  ;;  %v719_v23 = vcombine.high %v717_v14, %v717_v14  ;;  %v1464_v19 = vsel %vm1239_vm0, %v710_v5, -inf }
 0x150   : > { %2488 = vst.msk [vmem:[#allocation2 + $0x21] sm:$0xff] %vm2136_vm1, %v2436_v15  ;;  %v1504_v30 = vrot.slane %v1503_v12, 1  ;;  %v1465_v32 = vrot.slane %v1464_v19, 4  ;;  %v1471_v45 = vsel %vm1239_vm0, %v718_v25, -inf  ;;  %v1478_v29 = vsel %vm1239_vm0, %v717_v14, -inf }
 0x151   : > { %v1472_v24 = vrot.slane %v1471_v45, 4  ;;  %v1498_v49 = vmax.f32 %v1496_v3, %v1497_v27  ;;  %v1517_v1 = vmax.f32 %v1515_v7, %v1516_v28  ;;  %v1479_v31 = vrot.slane %v1478_v29, 4  ;;  %v3721_v3 = vpop.f32.mrf.mxu0 }
 0x152   : > { %v1466_v33 = vmax.f32 %v1464_v19, %v1465_v32  ;;  %v1512_v35 = vmax.f32 %v1510_v4, %v1511_v8  ;;  %v1485_v39 = vsel %vm1239_vm0, %v719_v23, -inf  ;;  %v514_v37 = vmax.f32 %v400_v22, 0.0 }
 0x153   : > { %v1473_v38 = vmax.f32 %v1471_v45, %v1472_v24  ;;  %v4231_v2 = vmax.f32 %v1503_v12, %v1504_v30  ;;  %v1480_v58 = vmax.f32 %v1478_v29, %v1479_v31  ;;  %v1486_v9 = vrot.slane %v1485_v39, 4 }
 0x154   : > { %v1467_v40 = vrot.slane %v1466_v33, 2  ;;  %v754_v42 = vcombine.high %v514_v37, %v514_v37  ;;  %v761_v43 = vrot.slane %v514_v37, %v4047_v56  ;;  %v395_v36 = vadd.f32 %v4043_v53, %v394_v34 }
 0x155   : > { %v1474_v41 = vrot.slane %v1473_v38, 2  ;;  %v1518_v44 = vrot.slane %v1517_v1, 1  ;;  %v1481_v46 = vrot.slane %v1480_v58, 2  ;;  %v1487_v47 = vmax.f32 %v1485_v39, %v1486_v9 }
 0x156   : > { %v1468_v13 = vmax.f32 %v1466_v33, %v1467_v40  ;;  %v768_v50 = vrot.slane %v754_v42, %v4047_v56  ;;  %v769_v16 = vcombine.high %v761_v43, %v761_v43  ;;  %v1548_v51 = vsel %vm1239_vm0, %v761_v43, -inf }
 0x157   : > { %v1475_v48 = vmax.f32 %v1473_v38, %v1474_v41  ;;  %v4238_v54 = vsel %vm2136_vm1, %v1498_v49, -inf  ;;  %v1482_v20 = vmax.f32 %v1480_v58, %v1481_v46  ;;  %v1488_v55 = vrot.slane %v1487_v47, 2 }
 0x158   : > { %v1549_v57 = vrot.slane %v1548_v51, 4  ;;  %v770_v59 = vcombine.high %v768_v50, %v768_v50  ;;  %v1555_v21 = vsel %vm1239_vm0, %v769_v16, -inf  ;;  %v1562_v61 = vsel %vm1239_vm0, %v768_v50, -inf }
 0x159   : > { %v513_v62 = vmax.f32 %v395_v36, 0.0  ;;  %v1469_v63 = vrot.slane %v1468_v13, 1  ;;  %v1476_v7 = vrot.slane %v1475_v48, 1  ;;  %v1489_v0 = vmax.f32 %v1487_v47, %v1488_v55 }
 0x15a   : > { %v1550_v60 = vmax.f32 %v1548_v51, %v1549_v57  ;;  %v4243_v4 = vsel %vm2136_vm1, %v1512_v35, -inf  ;;  %v1556_v5 = vrot.slane %v1555_v21, 4  ;;  %v1563_v6 = vrot.slane %v1562_v61, 4 }
 0x15b   : > { %v1569_v10 = vsel %vm1239_vm0, %v770_v59, -inf  ;;  %v4246_v11 = vmax.f32 %v1517_v1, %v1518_v44  ;;  %v1483_v12 = vrot.slane %v1482_v20, 1  ;;  %v1490_v14 = vrot.slane %v1489_v0, 1 }
 0x15c   : > { %v1551_v17 = vrot.slane %v1550_v60, 2  ;;  %v1557_v18 = vmax.f32 %v1555_v21, %v1556_v5  ;;  %v1564_v25 = vmax.f32 %v1562_v61, %v1563_v6  ;;  %v1570_v26 = vrot.slane %v1569_v10, 4 }
 0x15d   : > { %v410_v27 = vadd.f32 %v3721_v3, %v4043_v53  ;;  %v1470_v28 = vmax.f32 %v1468_v13, %v1469_v63  ;;  %v1477_v22 = vmax.f32 %v1475_v48, %v1476_v7  ;;  %v737_v8 = vcombine.high %v513_v62, %v513_v62 }
 0x15e   : > { %v1552_v15 = vmax.f32 %v1550_v60, %v1551_v17  ;;  %v1558_v23 = vrot.slane %v1557_v18, 2  ;;  %v1565_v19 = vrot.slane %v1564_v25, 2  ;;  %v1571_v30 = vmax.f32 %v1569_v10, %v1570_v26 }
 0x15f   : > { %v744_v32 = vrot.slane %v513_v62, %v4047_v56  ;;  %v1484_v45 = vmax.f32 %v1482_v20, %v1483_v12  ;;  %v1491_v24 = vmax.f32 %v1489_v0, %v1490_v14  ;;  %v751_v49 = vrot.slane %v737_v8, %v4047_v56 }
 0x160   : > { %v1553_v29 = vrot.slane %v1552_v15, 1  ;;  %v1559_v1 = vmax.f32 %v1557_v18, %v1558_v23  ;;  %v1566_v33 = vmax.f32 %v1564_v25, %v1565_v19  ;;  %v1572_v31 = vrot.slane %v1571_v30, 2 }
 0x161   : > { %v752_v34 = vcombine.high %v744_v32, %v744_v32  ;;  %v753_v53 = vcombine.high %v751_v49, %v751_v49  ;;  %v1520_v38 = vsel %vm1239_vm0, %v744_v32, -inf  ;;  %v1534_v39 = vsel %vm1239_vm0, %v751_v49, -inf }
 0x162   : > { %v1554_v35 = vmax.f32 %v1552_v15, %v1553_v29  ;;  %v1560_v37 = vrot.slane %v1559_v1, 1  ;;  %v1573_v40 = vmax.f32 %v1571_v30, %v1572_v31  ;;  %v1521_v58 = vrot.slane %v1520_v38, 4 }
 0x163   : > { %v516_v9 = vmax.f32 %v410_v27, 0.0  ;;  %v1567_v41 = vrot.slane %v1566_v33, 1  ;;  %v1527_v42 = vsel %vm1239_vm0, %v752_v34, -inf  ;;  %v1535_v43 = vrot.slane %v1534_v39, 4 }
 0x164   : > { %v1541_v36 = vsel %vm1239_vm0, %v753_v53, -inf  ;;  %v4257_v44 = vsel %vm2136_vm1, %v4231_v2, -inf  ;;  %v4260_v13 = vsel %vm2136_vm1, %v1470_v28, -inf  ;;  %v1574_v46 = vrot.slane %v1573_v40, 1 }
 0x165   : > { %v4263_v47 = vsel %vm2136_vm1, %v1554_v35, -inf  ;;  %v1522_v48 = vmax.f32 %v1520_v38, %v1521_v58  ;;  %v1528_v50 = vrot.slane %v1527_v42, 4  ;;  %v1536_v16 = vmax.f32 %v1534_v39, %v1535_v43 }
 0x166   : > { %v1542_v51 = vrot.slane %v1541_v36, 4  ;;  %v2188_v20 = vsel %vm2136_vm1, %v1477_v22, -inf  ;;  %v4267_v55 = vsel %vm2136_vm1, %v1484_v45, -inf  ;;  %v4270_v57 = vsel %vm2136_vm1, %v1491_v24, -inf  ;;  %v404_v24 = vpop.f32.mrf.mxu0 }
 0x167   : > { %v788_v2 = vcombine.high %v516_v9, %v516_v9  ;;  %v1561_v59 = vmax.f32 %v1559_v1, %v1560_v37  ;;  %v1568_v21 = vmax.f32 %v1566_v33, %v1567_v41  ;;  %v1523_v61 = vrot.slane %v1522_v48, 2 }
 0x168   : > { %v1529_v62 = vmax.f32 %v1527_v42, %v1528_v50  ;;  %v2199_v63 = vmax.f32 %v4238_v54, %v4263_v47  ;;  %v1537_v7 = vrot.slane %v1536_v16, 2  ;;  %v1543_v0 = vmax.f32 %v1541_v36, %v1542_v51  ;;  %v3724_v43 = vpop.f32.mrf.mxu0 }
 0x169   : > { %v795_v60 = vrot.slane %v516_v9, %v4047_v56  ;;  %v1575_v3 = vmax.f32 %v1573_v40, %v1574_v46  ;;  %v1524_v5 = vmax.f32 %v1522_v48, %v1523_v61  ;;  %v802_v10 = vrot.slane %v788_v2, %v4047_v56 }
 0x16a   : > { %v1530_v6 = vrot.slane %v1529_v62, 2  ;;  %v1538_v12 = vmax.f32 %v1536_v16, %v1537_v7  ;;  %v1544_v14 = vrot.slane %v1543_v0, 2  ;;  %v2201_v38 = vsel %vm2136_vm1, %v1561_v59, -inf }
 0x16b   : > { %v803_v17 = vcombine.high %v795_v60, %v795_v60  ;;  %v1604_v18 = vsel %vm1239_vm0, %v795_v60, -inf  ;;  %v1525_v25 = vrot.slane %v1524_v5, 1  ;;  %v804_v27 = vcombine.high %v802_v10, %v802_v10 }
 0x16c   : > { %v1531_v26 = vmax.f32 %v1529_v62, %v1530_v6  ;;  %v1605_v28 = vrot.slane %v1604_v18, 4  ;;  %v1539_v22 = vrot.slane %v1538_v12, 1  ;;  %v1545_v15 = vmax.f32 %v1543_v0, %v1544_v14 }
 0x16d   : > { %v1611_v8 = vsel %vm1239_vm0, %v803_v17, -inf  ;;  %v1618_v23 = vsel %vm1239_vm0, %v802_v10, -inf  ;;  %v1526_v19 = vmax.f32 %v1524_v5, %v1525_v25  ;;  %v1625_v33 = vsel %vm1239_vm0, %v804_v27, -inf }
 0x16e   : > { %v1532_v30 = vrot.slane %v1531_v26, 1  ;;  %v1606_v32 = vmax.f32 %v1604_v18, %v1605_v28  ;;  %v1612_v45 = vrot.slane %v1611_v8, 4  ;;  %v1540_v29 = vmax.f32 %v1538_v12, %v1539_v22 }
 0x16f   : > { %v1546_v49 = vrot.slane %v1545_v15, 1  ;;  %v1619_v1 = vrot.slane %v1618_v23, 4  ;;  %v2186_v34 = vsel %vm2136_vm1, %v1526_v19, -inf  ;;  %v1626_v50 = vrot.slane %v1625_v33, 4 }
 0x170   : > { %v1533_v31 = vmax.f32 %v1531_v26, %v1532_v30  ;;  %v1607_v35 = vrot.slane %v1606_v32, 2  ;;  %v1613_v53 = vmax.f32 %v1611_v8, %v1612_v45  ;;  %v2192_v37 = vsel %vm2136_vm1, %v1540_v29, -inf }
 0x171   : > { %v1547_v39 = vmax.f32 %v1545_v15, %v1546_v49  ;;  %v1620_v40 = vmax.f32 %v1618_v23, %v1619_v1  ;;  %v2187_v58 = vmax.f32 %v4260_v13, %v2186_v34  ;;  %v2193_v41 = vmax.f32 %v4267_v55, %v2192_v37  ;;  %v4293_v13 = vld [vmem:[%s5203_s2] ss:$0 sm:$0xff] }
 0x172   : > { %v2189_v9 = vsel %vm2136_vm1, %v1533_v31, -inf  ;;  %v1608_v42 = vmax.f32 %v1606_v32, %v1607_v35  ;;  %v1614_v48 = vrot.slane %v1613_v53, 2  ;;  %v2202_v16 = vmax.f32 %v4257_v44, %v2201_v38 }
 0x173   : > { %v2190_v36 = vmax.f32 %v2188_v20, %v2189_v9  ;;  %v2195_v46 = vsel %vm2136_vm1, %v1547_v39, -inf  ;;  %v2204_v51 = vsel %vm2136_vm1, %v1568_v21, -inf  ;;  %v405_v55 = vadd.f32 %v4293_v13, %v404_v24 }
 0x174   : > { %v2196_v2 = vmax.f32 %v4270_v57, %v2195_v46  ;;  %v1621_v20 = vrot.slane %v1620_v40, 2  ;;  %v1627_v61 = vmax.f32 %v1625_v33, %v1626_v50  ;;  %v420_v62 = vadd.f32 %v4293_v13, %v3724_v43  ;;  %v414_v43 = vpop.f32.mrf.mxu0 }
 0x175   : > { %v2437_v59 = vsel %vm2416_vm2, %v2190_v36, %v2187_v58  ;;  %v2207_v7 = vsel %vm2136_vm1, %v1575_v3, -inf  ;;  %v1609_v21 = vrot.slane %v1608_v42, 1  ;;  %v515_v0 = vmax.f32 %v405_v55, 0.0 }
 0x176   : > { %v2438_v44 = vsel %vm2418_vm3, %v2193_v41, %v2437_v59  ;;  %v4301_v60 = vmax.f32 %v1613_v53, %v1614_v48  ;;  %v1628_v5 = vrot.slane %v1627_v61, 2  ;;  %v518_v6 = vmax.f32 %v420_v62, 0.0 }
 0x177   : > { %v2439_v57 = vsel %vm2420_vm4, %v2196_v2, %v2438_v44  ;;  %v2206_v10 = vsel %vm2136_vm1, %v4246_v11, -inf  ;;  %v2205_v12 = vmax.f32 %v4243_v4, %v2204_v51  ;;  %v771_v14 = vcombine.high %v515_v0, %v515_v0 }
 0x178   : > { %v2440_v3 = vsel %vm2422_vm5, %v2199_v63, %v2439_v57  ;;  %v2208_v17 = vmax.f32 %v2206_v10, %v2207_v7  ;;  %v1622_v25 = vmax.f32 %v1620_v40, %v1621_v20  ;;  %v778_v26 = vrot.slane %v515_v0, %v4047_v56  ;;  %v3727_v57 = vpop.f32.mrf.mxu0 }
 0x179   : > { %v2441_v18 = vsel %vm2424_vm6, %v2202_v16, %v2440_v3  ;;  %v4313_v28 = vmax.f32 %v1608_v42, %v1609_v21  ;;  %v785_v11 = vrot.slane %v771_v14, %v4047_v56  ;;  %v822_v22 = vcombine.high %v518_v6, %v518_v6 }
 0x17a   : > { %v2442_v27 = vsel %vm2426_vm7, %v2205_v12, %v2441_v18  ;;  %v1616_v54 = vrot.slane %v4301_v60, 1  ;;  %v1629_v47 = vmax.f32 %v1627_v61, %v1628_v5  ;;  %v786_v63 = vcombine.high %v778_v26, %v778_v26 }
 0x17b   : > { %v2443_v4 = vsel %vm2428_vm8, %v2208_v17, %v2442_v27  ;;  %v787_v15 = vcombine.high %v785_v11, %v785_v11  ;;  %v1576_v8 = vsel %vm1239_vm0, %v778_v26, -inf  ;;  %v1590_v23 = vsel %vm1239_vm0, %v785_v11, -inf }
 0x17c   : > { %2489 = vst.msk [vmem:[#allocation2 + $0x31] sm:$0xff] %vm2136_vm1, %v2443_v4  ;;  %v829_v19 = vrot.slane %v518_v6, %v4047_v56  ;;  %v1623_v30 = vrot.slane %v1622_v25, 1  ;;  %v1577_v32 = vrot.slane %v1576_v8, 4  ;;  %v1583_v45 = vsel %vm1239_vm0, %v786_v63, -inf }
 0x17d   : > { %v1591_v24 = vrot.slane %v1590_v23, 4  ;;  %v1584_v29 = vrot.slane %v1583_v45, 4  ;;  %v1597_v49 = vsel %vm1239_vm0, %v787_v15, -inf  ;;  %v836_v1 = vrot.slane %v822_v22, %v4047_v56 }
 0x17e   : > { %v837_v33 = vcombine.high %v829_v19, %v829_v19  ;;  %v1630_v31 = vrot.slane %v1629_v47, 1  ;;  %v1578_v34 = vmax.f32 %v1576_v8, %v1577_v32  ;;  %v1598_v53 = vrot.slane %v1597_v49, 4  ;;  %v424_v8 = vpop.f32.mrf.mxu0 }
 0x17f   : > { %v1592_v35 = vmax.f32 %v1590_v23, %v1591_v24  ;;  %v1585_v38 = vmax.f32 %v1583_v45, %v1584_v29  ;;  %v838_v39 = vcombine.high %v836_v1, %v836_v1  ;;  %v1660_v37 = vsel %vm1239_vm0, %v829_v19, -inf }
 0x180   : > { %v1667_v40 = vsel %vm1239_vm0, %v837_v33, -inf  ;;  %v1579_v58 = vrot.slane %v1578_v34, 2  ;;  %v1599_v41 = vmax.f32 %v1597_v49, %v1598_v53  ;;  %v1661_v42 = vrot.slane %v1660_v37, 4 }
 0x181   : > { %v1593_v9 = vrot.slane %v1592_v35, 2  ;;  %v1586_v36 = vrot.slane %v1585_v38, 2  ;;  %v1668_v46 = vrot.slane %v1667_v40, 4  ;;  %v1674_v48 = vsel %vm1239_vm0, %v836_v1, -inf }
 0x182   : > { %v1681_v50 = vsel %vm1239_vm0, %v838_v39, -inf  ;;  %v1580_v16 = vmax.f32 %v1578_v34, %v1579_v58  ;;  %v1600_v2 = vrot.slane %v1599_v41, 2  ;;  %v1662_v55 = vmax.f32 %v1660_v37, %v1661_v42  ;;  %v3730_v34 = vpop.f32.mrf.mxu0 }
 0x183   : > { %v1594_v51 = vmax.f32 %v1592_v35, %v1593_v9  ;;  %v1587_v59 = vmax.f32 %v1585_v38, %v1586_v36  ;;  %v1669_v20 = vmax.f32 %v1667_v40, %v1668_v46  ;;  %v1675_v61 = vrot.slane %v1674_v48, 4 }
 0x184   : > { %v1682_v62 = vrot.slane %v1681_v50, 4  ;;  %v1581_v7 = vrot.slane %v1580_v16, 1  ;;  %v1601_v21 = vmax.f32 %v1599_v41, %v1600_v2  ;;  %v1663_v0 = vrot.slane %v1662_v55, 2 }
 0x185   : > { %v1595_v44 = vrot.slane %v1594_v51, 1  ;;  %v1588_v5 = vrot.slane %v1587_v59, 1  ;;  %v1670_v6 = vrot.slane %v1669_v20, 2  ;;  %v1676_v10 = vmax.f32 %v1674_v48, %v1675_v61 }
 0x186   : > { %v1683_v12 = vmax.f32 %v1681_v50, %v1682_v62  ;;  %v1617_v3 = vmax.f32 %v4301_v60, %v1616_v54  ;;  %v1624_v14 = vmax.f32 %v1622_v25, %v1623_v30  ;;  %v1602_v17 = vrot.slane %v1601_v21, 1 }
 0x187   : > { %v1664_v18 = vmax.f32 %v1662_v55, %v1663_v0  ;;  %v1631_v26 = vmax.f32 %v1629_v47, %v1630_v31  ;;  %v1671_v27 = vmax.f32 %v1669_v20, %v1670_v6  ;;  %v1677_v11 = vrot.slane %v1676_v10, 2 }
 0x188   : > { %v1684_v22 = vrot.slane %v1683_v12, 2  ;;  %v1582_v4 = vmax.f32 %v1580_v16, %v1581_v7  ;;  %v1596_v63 = vmax.f32 %v1594_v51, %v1595_v44  ;;  %v1589_v23 = vmax.f32 %v1587_v59, %v1588_v5 }
 0x189   : > { %v1665_v15 = vrot.slane %v1664_v18, 1  ;;  %v1603_v19 = vmax.f32 %v1601_v21, %v1602_v17  ;;  %v1678_v32 = vmax.f32 %v1676_v10, %v1677_v11  ;;  %v4332_v24 = vsel %vm2136_vm1, %v4313_v28, -inf }
 0x18a   : > { %v1685_v45 = vmax.f32 %v1683_v12, %v1684_v22  ;;  %v1672_v60 = vrot.slane %v1671_v27, 1  ;;  %v415_v25 = vadd.f32 %v4293_v13, %v414_v43  ;;  %v430_v54 = vadd.f32 %v4293_v13, %v3727_v57 }
 0x18b   : > { %v4337_v47 = vsel %vm2136_vm1, %v1617_v3, -inf  ;;  %v4340_v30 = vsel %vm2136_vm1, %v1624_v14, -inf  ;;  %v4343_v29 = vsel %vm2136_vm1, %v1631_v26, -inf  ;;  %v1666_v49 = vmax.f32 %v1664_v18, %v1665_v15 }
 0x18c   : > { %v1679_v1 = vrot.slane %v1678_v32, 1  ;;  %v1686_v33 = vrot.slane %v1685_v45, 1  ;;  %v517_v31 = vmax.f32 %v415_v25, 0.0  ;;  %v520_v28 = vmax.f32 %v430_v54, 0.0 }
 0x18d   : > { %v4346_v35 = vsel %vm2136_vm1, %v1582_v4, -inf  ;;  %v4349_v53 = vsel %vm2136_vm1, %v1589_v23, -inf  ;;  %v4352_v38 = vsel %vm2136_vm1, %v1596_v63, -inf  ;;  %v4355_v39 = vsel %vm2136_vm1, %v1603_v19, -inf }
 0x18e   : > { %v1673_v37 = vmax.f32 %v1671_v27, %v1672_v60  ;;  %v805_v40 = vcombine.high %v517_v31, %v517_v31  ;;  %v812_v58 = vrot.slane %v517_v31, %v4047_v56  ;;  %v856_v9 = vcombine.high %v520_v28, %v520_v28 }
 0x18f   : > { %v4359_v41 = vsel %vm2136_vm1, %v1666_v49, -inf  ;;  %v863_v42 = vrot.slane %v520_v28, %v4047_v56  ;;  %v425_v43 = vadd.f32 %v4293_v13, %v424_v8  ;;  %v4364_v36 = vadd.f32 %v4293_v13, %v3730_v34 }
 0x190   : > { %v1680_v46 = vmax.f32 %v1678_v32, %v1679_v1  ;;  %v1687_v48 = vmax.f32 %v1685_v45, %v1686_v33  ;;  %v819_v50 = vrot.slane %v805_v40, %v4047_v56  ;;  %v820_v16 = vcombine.high %v812_v58, %v812_v58 }
 0x191   : > { %v1632_v51 = vsel %vm1239_vm0, %v812_v58, -inf  ;;  %v870_v2 = vrot.slane %v856_v9, %v4047_v56  ;;  %v871_v55 = vcombine.high %v863_v42, %v863_v42  ;;  %v1716_v59 = vsel %vm1239_vm0, %v863_v42, -inf }
 0x192   : > { %v821_v20 = vcombine.high %v819_v50, %v819_v50  ;;  %v1633_v61 = vrot.slane %v1632_v51, 4  ;;  %v1639_v62 = vsel %vm1239_vm0, %v820_v16, -inf  ;;  %v1646_v7 = vsel %vm1239_vm0, %v819_v50, -inf }
 0x193   : > { %v1640_v44 = vrot.slane %v1639_v62, 4  ;;  %v1647_v21 = vrot.slane %v1646_v7, 4  ;;  %v872_v0 = vcombine.high %v870_v2, %v870_v2  ;;  %v1717_v57 = vrot.slane %v1716_v59, 4 }
 0x194   : > { %v1634_v5 = vmax.f32 %v1632_v51, %v1633_v61  ;;  %v1653_v6 = vsel %vm1239_vm0, %v821_v20, -inf  ;;  %v1723_v10 = vsel %vm1239_vm0, %v871_v55, -inf  ;;  %v1730_v12 = vsel %vm1239_vm0, %v870_v2, -inf }
 0x195   : > { %v1641_v3 = vmax.f32 %v1639_v62, %v1640_v44  ;;  %v1648_v14 = vmax.f32 %v1646_v7, %v1647_v21  ;;  %v1654_v17 = vrot.slane %v1653_v6, 4  ;;  %v1718_v18 = vmax.f32 %v1716_v59, %v1717_v57 }
 0x196   : > { %v1635_v26 = vrot.slane %v1634_v5, 2  ;;  %v1724_v27 = vrot.slane %v1723_v10, 4  ;;  %v1731_v11 = vrot.slane %v1730_v12, 4  ;;  %v1737_v22 = vsel %vm1239_vm0, %v872_v0, -inf }
 0x197   : > { %v1642_v4 = vrot.slane %v1641_v3, 2  ;;  %v1649_v63 = vrot.slane %v1648_v14, 2  ;;  %v1655_v15 = vmax.f32 %v1653_v6, %v1654_v17  ;;  %v1719_v8 = vrot.slane %v1718_v18, 2 }
 0x198   : > { %v1636_v23 = vmax.f32 %v1634_v5, %v1635_v26  ;;  %v1725_v19 = vmax.f32 %v1723_v10, %v1724_v27  ;;  %v1732_v32 = vmax.f32 %v1730_v12, %v1731_v11  ;;  %v1738_v45 = vrot.slane %v1737_v22, 4 }
 0x199   : > { %v2223_v60 = vmax.f32 %v4332_v24, %v4359_v41  ;;  %v1643_v25 = vmax.f32 %v1641_v3, %v1642_v4  ;;  %v1650_v54 = vmax.f32 %v1648_v14, %v1649_v63  ;;  %v1656_v49 = vrot.slane %v1655_v15, 2 }
 0x19a   : > { %v1637_v1 = vrot.slane %v1636_v23, 1  ;;  %v1720_v33 = vmax.f32 %v1718_v18, %v1719_v8  ;;  %v1726_v31 = vrot.slane %v1725_v19, 2  ;;  %v1739_v28 = vmax.f32 %v1737_v22, %v1738_v45 }
 0x19b   : > { %v1644_v34 = vrot.slane %v1643_v25, 1  ;;  %v1651_v40 = vrot.slane %v1650_v54, 1  ;;  %v1657_v58 = vmax.f32 %v1655_v15, %v1656_v49  ;;  %v1733_v9 = vrot.slane %v1732_v32, 2 }
 0x19c   : > { %v2225_v42 = vsel %vm2136_vm1, %v1673_v37, -inf  ;;  %v1638_v50 = vmax.f32 %v1636_v23, %v1637_v1  ;;  %v1727_v16 = vmax.f32 %v1725_v19, %v1726_v31  ;;  %v519_v51 = vmax.f32 %v425_v43, 0.0 }
 0x19d   : > { %v1645_v2 = vmax.f32 %v1643_v25, %v1644_v34  ;;  %v1652_v55 = vmax.f32 %v1650_v54, %v1651_v40  ;;  %v1658_v59 = vrot.slane %v1657_v58, 1  ;;  %v1740_v24 = vrot.slane %v1739_v28, 2 }
 0x19e   : > { %v2228_v41 = vsel %vm2136_vm1, %v1680_v46, -inf  ;;  %v2231_v20 = vsel %vm2136_vm1, %v1687_v48, -inf  ;;  %v2210_v61 = vsel %vm2136_vm1, %v1638_v50, -inf  ;;  %v1721_v62 = vrot.slane %v1720_v33, 1 }
 0x19f   : > { %v1659_v7 = vmax.f32 %v1657_v58, %v1658_v59  ;;  %v2213_v44 = vsel %vm2136_vm1, %v1645_v2, -inf  ;;  %v2216_v21 = vsel %vm2136_vm1, %v1652_v55, -inf  ;;  %v4384_v37 = vmax.f32 %v1732_v32, %v1733_v9 }
 0x1a0   : > { %v2211_v43 = vmax.f32 %v4346_v35, %v2210_v61  ;;  %v2214_v0 = vmax.f32 %v4349_v53, %v2213_v44  ;;  %v2217_v57 = vmax.f32 %v4352_v38, %v2216_v21  ;;  %v1728_v5 = vrot.slane %v1727_v16, 1 }
 0x1a1   : > { %v2226_v46 = vmax.f32 %v4337_v47, %v2225_v42  ;;  %v2219_v48 = vsel %vm2136_vm1, %v1659_v7, -inf  ;;  %v4391_v6 = vmax.f32 %v1739_v28, %v1740_v24  ;;  %v839_v10 = vcombine.high %v519_v51, %v519_v51 }
 0x1a2   : > { %v2229_v12 = vmax.f32 %v4340_v30, %v2228_v41  ;;  %v2232_v3 = vmax.f32 %v4343_v29, %v2231_v20  ;;  %v2220_v14 = vmax.f32 %v4355_v39, %v2219_v48  ;;  %v2444_v35 = vsel %vm2416_vm2, %v2214_v0, %v2211_v43 }
 0x1a3   : > { %v2445_v53 = vsel %vm2418_vm3, %v2217_v57, %v2444_v35  ;;  %v4398_v17 = vmax.f32 %v1720_v33, %v1721_v62  ;;  %v846_v38 = vrot.slane %v519_v51, %v4047_v56  ;;  %v853_v47 = vrot.slane %v839_v10, %v4047_v56 }
 0x1a4   : > { %v2446_v18 = vsel %vm2420_vm4, %v2220_v14, %v2445_v53  ;;  %v4403_v26 = vmax.f32 %v1727_v16, %v1728_v5  ;;  %v1735_v30 = vrot.slane %v4384_v37, 1  ;;  %v522_v29 = vmax.f32 %v4364_v36, 0.0  ;;  %v434_v36 = vpop.f32.mrf.mxu0 }
 0x1a5   : > { %v2447_v39 = vsel %vm2422_vm5, %v2223_v60, %v2446_v18  ;;  %v1742_v27 = vrot.slane %v4391_v6, 1  ;;  %v854_v11 = vcombine.high %v846_v38, %v846_v38  ;;  %v855_v22 = vcombine.high %v853_v47, %v853_v47 }
 0x1a6   : > { %v2448_v4 = vsel %vm2424_vm6, %v2226_v46, %v2447_v39  ;;  %v1688_v63 = vsel %vm1239_vm0, %v846_v38, -inf  ;;  %v1702_v15 = vsel %vm1239_vm0, %v853_v47, -inf  ;;  %v890_v8 = vcombine.high %v522_v29, %v522_v29 }
 0x1a7   : > { %v2449_v23 = vsel %vm2426_vm7, %v2229_v12, %v2448_v4  ;;  %v1689_v19 = vrot.slane %v1688_v63, 4  ;;  %v1695_v32 = vsel %vm1239_vm0, %v854_v11, -inf  ;;  %v1703_v45 = vrot.slane %v1702_v15, 4  ;;  %v3733_v11 = vpop.f32.mrf.mxu0 }
 0x1a8   : > { %v2450_v60 = vsel %vm2428_vm8, %v2232_v3, %v2449_v23  ;;  %v1696_v25 = vrot.slane %v1695_v32, 4  ;;  %v1709_v54 = vsel %vm1239_vm0, %v855_v22, -inf  ;;  %v897_v49 = vrot.slane %v522_v29, %v4047_v56 }
 0x1a9   : > { %2490 = vst.msk [vmem:[#allocation2 + $0x41] sm:$0xff] %vm2136_vm1, %v2450_v60  ;;  %v1690_v1 = vmax.f32 %v1688_v63, %v1689_v19  ;;  %v1704_v33 = vmax.f32 %v1702_v15, %v1703_v45  ;;  %v1710_v31 = vrot.slane %v1709_v54, 4  ;;  %v904_v28 = vrot.slane %v890_v8, %v4047_v56 }
 0x1aa   : > { %v1697_v34 = vmax.f32 %v1695_v32, %v1696_v25  ;;  %v905_v40 = vcombine.high %v897_v49, %v897_v49  ;;  %v1772_v58 = vsel %vm1239_vm0, %v897_v49, -inf  ;;  %v435_v9 = vadd.f32 %v4293_v13, %v434_v36 }
 0x1ab   : > { %v1691_v42 = vrot.slane %v1690_v1, 2  ;;  %v1705_v50 = vrot.slane %v1704_v33, 2  ;;  %v1711_v16 = vmax.f32 %v1709_v54, %v1710_v31  ;;  %v906_v51 = vcombine.high %v904_v28, %v904_v28 }
 0x1ac   : > { %v1698_v2 = vrot.slane %v1697_v34, 2  ;;  %v1773_v55 = vrot.slane %v1772_v58, 4  ;;  %v1779_v59 = vsel %vm1239_vm0, %v905_v40, -inf  ;;  %v1786_v24 = vsel %vm1239_vm0, %v904_v28, -inf }
 0x1ad   : > { %v1692_v41 = vmax.f32 %v1690_v1, %v1691_v42  ;;  %v1706_v20 = vmax.f32 %v1704_v33, %v1705_v50  ;;  %v1712_v61 = vrot.slane %v1711_v16, 2  ;;  %v1780_v62 = vrot.slane %v1779_v59, 4 }
 0x1ae   : > { %v1699_v7 = vmax.f32 %v1697_v34, %v1698_v2  ;;  %v1774_v44 = vmax.f32 %v1772_v58, %v1773_v55  ;;  %v1787_v21 = vrot.slane %v1786_v24, 4  ;;  %v1793_v43 = vsel %vm1239_vm0, %v906_v51, -inf }
 0x1af   : > { %v1736_v0 = vmax.f32 %v4384_v37, %v1735_v30  ;;  %v1693_v57 = vrot.slane %v1692_v41, 1  ;;  %v1713_v5 = vmax.f32 %v1711_v16, %v1712_v61  ;;  %v1781_v46 = vmax.f32 %v1779_v59, %v1780_v62 }
 0x1b0   : > { %v1707_v48 = vrot.slane %v1706_v20, 1  ;;  %v1775_v10 = vrot.slane %v1774_v44, 2  ;;  %v1788_v12 = vmax.f32 %v1786_v24, %v1787_v21  ;;  %v1794_v3 = vrot.slane %v1793_v43, 4 }
 0x1b1   : > { %v1743_v14 = vmax.f32 %v4391_v6, %v1742_v27  ;;  %v1700_v35 = vrot.slane %v1699_v7, 1  ;;  %v1782_v53 = vrot.slane %v1781_v46, 2  ;;  %v521_v38 = vmax.f32 %v435_v9, 0.0 }
 0x1b2   : > { %v1714_v47 = vrot.slane %v1713_v5, 1  ;;  %v1776_v18 = vmax.f32 %v1774_v44, %v1775_v10  ;;  %v1789_v29 = vrot.slane %v1788_v12, 2  ;;  %v1795_v39 = vmax.f32 %v1793_v43, %v1794_v3 }
 0x1b3   : > { %v4428_v37 = vsel %vm2136_vm1, %v4398_v17, -inf  ;;  %v4432_v30 = vsel %vm2136_vm1, %v4403_v26, -inf  ;;  %v4435_v22 = vsel %vm2136_vm1, %v1736_v0, -inf  ;;  %v1783_v6 = vmax.f32 %v1781_v46, %v1782_v53 }
 0x1b4   : > { %v1694_v27 = vmax.f32 %v1692_v41, %v1693_v57  ;;  %v1708_v4 = vmax.f32 %v1706_v20, %v1707_v48  ;;  %v1777_v63 = vrot.slane %v1776_v18, 1  ;;  %v1790_v15 = vmax.f32 %v1788_v12, %v1789_v29 }
 0x1b5   : > { %v1796_v8 = vrot.slane %v1795_v39, 2  ;;  %v873_v23 = vcombine.high %v521_v38, %v521_v38  ;;  %v880_v19 = vrot.slane %v521_v38, %v4047_v56  ;;  %v450_v32 = vadd.f32 %v4293_v13, %v3733_v11 }
 0x1b6   : > { %v4440_v17 = vsel %vm2136_vm1, %v1743_v14, -inf  ;;  %v1701_v45 = vmax.f32 %v1699_v7, %v1700_v35  ;;  %v1715_v26 = vmax.f32 %v1713_v5, %v1714_v47  ;;  %v1784_v36 = vrot.slane %v1783_v6, 1  ;;  %v444_v47 = vpop.f32.mrf.mxu0 }
 0x1b7   : > { %v1778_v60 = vmax.f32 %v1776_v18, %v1777_v63  ;;  %v887_v25 = vrot.slane %v873_v23, %v4047_v56  ;;  %v888_v54 = vcombine.high %v880_v19, %v880_v19  ;;  %v1744_v49 = vsel %vm1239_vm0, %v880_v19, -inf }
 0x1b8   : > { %v4445_v1 = vsel %vm2136_vm1, %v1694_v27, -inf  ;;  %v4448_v33 = vsel %vm2136_vm1, %v1708_v4, -inf  ;;  %v1791_v31 = vrot.slane %v1790_v15, 1  ;;  %v1745_v28 = vrot.slane %v1744_v49, 4 }
 0x1b9   : > { %v1797_v34 = vmax.f32 %v1795_v39, %v1796_v8  ;;  %v889_v40 = vcombine.high %v887_v25, %v887_v25  ;;  %v1751_v58 = vsel %vm1239_vm0, %v888_v54, -inf  ;;  %v524_v9 = vmax.f32 %v450_v32, 0.0 }
 0x1ba   : > { %v4452_v42 = vsel %vm2136_vm1, %v1701_v45, -inf  ;;  %v4455_v50 = vsel %vm2136_vm1, %v1715_v26, -inf  ;;  %v1785_v16 = vmax.f32 %v1783_v6, %v1784_v36  ;;  %v1746_v51 = vmax.f32 %v1744_v49, %v1745_v28 }
 0x1bb   : > { %v4458_v2 = vsel %vm2136_vm1, %v1778_v60, -inf  ;;  %v1752_v55 = vrot.slane %v1751_v58, 4  ;;  %v1758_v59 = vsel %vm1239_vm0, %v887_v25, -inf  ;;  %v1765_v24 = vsel %vm1239_vm0, %v889_v40, -inf }
 0x1bc   : > { %v1792_v41 = vmax.f32 %v1790_v15, %v1791_v31  ;;  %v1747_v20 = vrot.slane %v1746_v51, 2  ;;  %v1759_v61 = vrot.slane %v1758_v59, 4  ;;  %v1766_v62 = vrot.slane %v1765_v24, 4 }
 0x1bd   : > { %v1798_v7 = vrot.slane %v1797_v34, 1  ;;  %v1753_v44 = vmax.f32 %v1751_v58, %v1752_v55  ;;  %v924_v21 = vcombine.high %v524_v9, %v524_v9  ;;  %v931_v43 = vrot.slane %v524_v9, %v4047_v56 }
 0x1be   : > { %v2247_v0 = vmax.f32 %v4428_v37, %v4458_v2  ;;  %v1748_v57 = vmax.f32 %v1746_v51, %v1747_v20  ;;  %v1760_v5 = vmax.f32 %v1758_v59, %v1759_v61  ;;  %v1767_v46 = vmax.f32 %v1765_v24, %v1766_v62 }
 0x1bf   : > { %v1754_v48 = vrot.slane %v1753_v44, 2  ;;  %v938_v10 = vrot.slane %v924_v21, %v4047_v56  ;;  %v939_v12 = vcombine.high %v931_v43, %v931_v43  ;;  %v1828_v3 = vsel %vm1239_vm0, %v931_v43, -inf }
 0x1c0   : > { %v1749_v14 = vrot.slane %v1748_v57, 1  ;;  %v1761_v35 = vrot.slane %v1760_v5, 2  ;;  %v1768_v53 = vrot.slane %v1767_v46, 2  ;;  %v1829_v38 = vrot.slane %v1828_v3, 4 }
 0x1c1   : > { %v1755_v18 = vmax.f32 %v1753_v44, %v1754_v48  ;;  %v940_v29 = vcombine.high %v938_v10, %v938_v10  ;;  %v1835_v39 = vsel %vm1239_vm0, %v939_v12, -inf  ;;  %v1842_v11 = vsel %vm1239_vm0, %v938_v10, -inf  ;;  %v3736_v12 = vpop.f32.mrf.mxu0 }
 0x1c2   : > { %v1750_v6 = vmax.f32 %v1748_v57, %v1749_v14  ;;  %v1762_v27 = vmax.f32 %v1760_v5, %v1761_v35  ;;  %v1769_v4 = vmax.f32 %v1767_v46, %v1768_v53  ;;  %v1830_v63 = vmax.f32 %v1828_v3, %v1829_v38 }
 0x1c3   : > { %v1756_v15 = vrot.slane %v1755_v18, 1  ;;  %v1836_v8 = vrot.slane %v1835_v39, 4  ;;  %v1843_v23 = vrot.slane %v1842_v11, 4  ;;  %v445_v19 = vadd.f32 %v4293_v13, %v444_v47 }
 0x1c4   : > { %v1763_v32 = vrot.slane %v1762_v27, 1  ;;  %v1770_v45 = vrot.slane %v1769_v4, 1  ;;  %v2234_v26 = vsel %vm2136_vm1, %v1750_v6, -inf  ;;  %v1831_v36 = vrot.slane %v1830_v63, 2 }
 0x1c5   : > { %v1799_v60 = vmax.f32 %v1797_v34, %v1798_v7  ;;  %v1757_v25 = vmax.f32 %v1755_v18, %v1756_v15  ;;  %v1837_v54 = vmax.f32 %v1835_v39, %v1836_v8  ;;  %v1844_v49 = vmax.f32 %v1842_v11, %v1843_v23 }
 0x1c6   : > { %v1764_v31 = vmax.f32 %v1762_v27, %v1763_v32  ;;  %v1771_v28 = vmax.f32 %v1769_v4, %v1770_v45  ;;  %v2235_v40 = vmax.f32 %v4445_v1, %v2234_v26  ;;  %v1849_v58 = vsel %vm1239_vm0, %v940_v29, -inf }
 0x1c7   : > { %v2237_v9 = vsel %vm2136_vm1, %v1757_v25, -inf  ;;  %v1832_v51 = vmax.f32 %v1830_v63, %v1831_v36  ;;  %v1838_v55 = vrot.slane %v1837_v54, 2  ;;  %v523_v59 = vmax.f32 %v445_v19, 0.0 }
 0x1c8   : > { %v2238_v24 = vmax.f32 %v4452_v42, %v2237_v9  ;;  %v2240_v20 = vsel %vm2136_vm1, %v1764_v31, -inf  ;;  %v2243_v34 = vsel %vm2136_vm1, %v1771_v28, -inf  ;;  %v1845_v61 = vrot.slane %v1844_v49, 2 }
 0x1c9   : > { %v2249_v62 = vsel %vm2136_vm1, %v1785_v16, -inf  ;;  %v2252_v7 = vsel %vm2136_vm1, %v1792_v41, -inf  ;;  %v2241_v1 = vmax.f32 %v4448_v33, %v2240_v20  ;;  %v2244_v44 = vmax.f32 %v4455_v50, %v2243_v34 }
 0x1ca   : > { %v2255_v21 = vsel %vm2136_vm1, %v1799_v60, -inf  ;;  %v2451_v43 = vsel %vm2416_vm2, %v2238_v24, %v2235_v40  ;;  %v1850_v57 = vrot.slane %v1849_v58, 4  ;;  %v907_v5 = vcombine.high %v523_v59, %v523_v59 }
 0x1cb   : > { %v2452_v42 = vsel %vm2418_vm3, %v2241_v1, %v2451_v43  ;;  %v1833_v46 = vrot.slane %v1832_v51, 1  ;;  %v1839_v48 = vmax.f32 %v1837_v54, %v1838_v55  ;;  %v914_v10 = vrot.slane %v523_v59, %v4047_v56 }
 0x1cc   : > { %v2250_v16 = vmax.f32 %v4432_v30, %v2249_v62  ;;  %v2453_v41 = vsel %vm2420_vm4, %v2244_v44, %v2452_v42  ;;  %v1846_v33 = vmax.f32 %v1844_v49, %v1845_v61  ;;  %v921_v50 = vrot.slane %v907_v5, %v4047_v56 }
 0x1cd   : > { %v2253_v3 = vmax.f32 %v4435_v22, %v2252_v7  ;;  %v2256_v14 = vmax.f32 %v4440_v17, %v2255_v21  ;;  %v2454_v35 = vsel %vm2422_vm5, %v2247_v0, %v2453_v41  ;;  %v922_v53 = vcombine.high %v914_v10, %v914_v10  ;;  %v454_v22 = vpop.f32.mrf.mxu0 }
 0x1ce   : > { %v2455_v38 = vsel %vm2424_vm6, %v2250_v16, %v2454_v35  ;;  %v1851_v47 = vmax.f32 %v1849_v58, %v1850_v57  ;;  %v923_v18 = vcombine.high %v921_v50, %v921_v50  ;;  %v1800_v30 = vsel %vm1239_vm0, %v914_v10, -inf }
 0x1cf   : > { %v2456_v29 = vsel %vm2426_vm7, %v2253_v3, %v2455_v38  ;;  %v1834_v39 = vmax.f32 %v1832_v51, %v1833_v46  ;;  %v1840_v11 = vrot.slane %v1839_v48, 1  ;;  %v1801_v6 = vrot.slane %v1800_v30, 4  ;;  %v3739_v31 = vpop.f32.mrf.mxu0 }
 0x1d0   : > { %v2457_v17 = vsel %vm2428_vm8, %v2256_v14, %v2456_v29  ;;  %v1847_v27 = vrot.slane %v1846_v33, 1  ;;  %v1807_v37 = vsel %vm1239_vm0, %v922_v53, -inf  ;;  %v1814_v2 = vsel %vm1239_vm0, %v921_v50, -inf }
 0x1d1   : > { %2491 = vst.msk [vmem:[#allocation2 + $0x51] sm:$0xff] %vm2136_vm1, %v2457_v17  ;;  %v1802_v0 = vmax.f32 %v1800_v30, %v1801_v6  ;;  %v1808_v4 = vrot.slane %v1807_v37, 4  ;;  %v1815_v63 = vrot.slane %v1814_v2, 4  ;;  %v1821_v15 = vsel %vm1239_vm0, %v923_v18, -inf }
 0x1d2   : > { %v1852_v8 = vrot.slane %v1851_v47, 2  ;;  %v1822_v23 = vrot.slane %v1821_v15, 4  ;;  %v460_v19 = vadd.f32 %v4293_v13, %v3736_v12  ;;  %v455_v32 = vadd.f32 %v4293_v13, %v454_v22 }
 0x1d3   : > { %v1841_v45 = vmax.f32 %v1839_v48, %v1840_v11  ;;  %v1803_v26 = vrot.slane %v1802_v0, 2  ;;  %v1809_v36 = vmax.f32 %v1807_v37, %v1808_v4  ;;  %v1816_v60 = vmax.f32 %v1814_v2, %v1815_v63 }
 0x1d4   : > { %v4505_v25 = vsel %vm2136_vm1, %v1834_v39, -inf  ;;  %v1823_v54 = vmax.f32 %v1821_v15, %v1822_v23  ;;  %v526_v49 = vmax.f32 %v460_v19, 0.0  ;;  %v525_v9 = vmax.f32 %v455_v32, 0.0 }
 0x1d5   : > { %v1804_v28 = vmax.f32 %v1802_v0, %v1803_v26  ;;  %v1810_v40 = vrot.slane %v1809_v36, 2  ;;  %v1817_v58 = vrot.slane %v1816_v60, 2  ;;  %v4507_v51 = vmax.f32 %v1846_v33, %v1847_v27 }
 0x1d6   : > { %v1824_v55 = vrot.slane %v1823_v54, 2  ;;  %v958_v59 = vcombine.high %v526_v49, %v526_v49  ;;  %v965_v24 = vrot.slane %v526_v49, %v4047_v56  ;;  %v1853_v20 = vmax.f32 %v1851_v47, %v1852_v8 }
 0x1d7   : > { %v4511_v34 = vsel %vm2136_vm1, %v1841_v45, -inf  ;;  %v1811_v61 = vmax.f32 %v1809_v36, %v1810_v40  ;;  %v470_v62 = vadd.f32 %v4293_v13, %v3739_v31  ;;  %v1805_v7 = vrot.slane %v1804_v28, 1 }
 0x1d8   : > { %v972_v1 = vrot.slane %v958_v59, %v4047_v56  ;;  %v973_v44 = vcombine.high %v965_v24, %v965_v24  ;;  %v1884_v21 = vsel %vm1239_vm0, %v965_v24, -inf  ;;  %v1818_v43 = vmax.f32 %v1816_v60, %v1817_v58 }
 0x1d9   : > { %v1825_v57 = vmax.f32 %v1823_v54, %v1824_v55  ;;  %v1885_v5 = vrot.slane %v1884_v21, 4  ;;  %v941_v42 = vcombine.high %v525_v9, %v525_v9  ;;  %v1812_v46 = vrot.slane %v1811_v61, 1 }
 0x1da   : > { %v974_v48 = vcombine.high %v972_v1, %v972_v1  ;;  %v1891_v10 = vsel %vm1239_vm0, %v973_v44, -inf  ;;  %v1898_v12 = vsel %vm1239_vm0, %v972_v1, -inf  ;;  %v1854_v16 = vrot.slane %v1853_v20, 1 }
 0x1db   : > { %v1886_v41 = vmax.f32 %v1884_v21, %v1885_v5  ;;  %v948_v33 = vrot.slane %v525_v9, %v4047_v56  ;;  %v4519_v50 = vmax.f32 %v470_v62, 0.0  ;;  %v1806_v3 = vmax.f32 %v1804_v28, %v1805_v7 }
 0x1dc   : > { %v1892_v14 = vrot.slane %v1891_v10, 4  ;;  %v1899_v35 = vrot.slane %v1898_v12, 4  ;;  %v1905_v53 = vsel %vm1239_vm0, %v974_v48, -inf  ;;  %v1819_v38 = vrot.slane %v1818_v43, 1 }
 0x1dd   : > { %v1826_v47 = vrot.slane %v1825_v57, 1  ;;  %v1887_v18 = vrot.slane %v1886_v41, 2  ;;  %v1906_v30 = vrot.slane %v1905_v53, 4  ;;  %v1813_v29 = vmax.f32 %v1811_v61, %v1812_v46 }
 0x1de   : > { %v1893_v39 = vmax.f32 %v1891_v10, %v1892_v14  ;;  %v1900_v11 = vmax.f32 %v1898_v12, %v1899_v35  ;;  %v955_v6 = vrot.slane %v941_v42, %v4047_v56  ;;  %v956_v27 = vcombine.high %v948_v33, %v948_v33 }
 0x1df   : > { %v1888_v22 = vmax.f32 %v1886_v41, %v1887_v18  ;;  %v1907_v17 = vmax.f32 %v1905_v53, %v1906_v30  ;;  %v1856_v37 = vsel %vm1239_vm0, %v948_v33, -inf  ;;  %v1820_v60 = vmax.f32 %v1818_v43, %v1819_v38  ;;  %v464_v33 = vpop.f32.mrf.mxu0 }
 0x1e0   : > { %v1894_v2 = vrot.slane %v1893_v39, 2  ;;  %v1901_v0 = vrot.slane %v1900_v11, 2  ;;  %v957_v4 = vcombine.high %v955_v6, %v955_v6  ;;  %v1857_v63 = vrot.slane %v1856_v37, 4 }
 0x1e1   : > { %v1889_v15 = vrot.slane %v1888_v22, 1  ;;  %v1908_v8 = vrot.slane %v1907_v17, 2  ;;  %v1863_v23 = vsel %vm1239_vm0, %v956_v27, -inf  ;;  %v1870_v19 = vsel %vm1239_vm0, %v955_v6, -inf }
 0x1e2   : > { %v1895_v32 = vmax.f32 %v1893_v39, %v1894_v2  ;;  %v1902_v45 = vmax.f32 %v1900_v11, %v1901_v0  ;;  %v1858_v26 = vmax.f32 %v1856_v37, %v1857_v63  ;;  %v1864_v36 = vrot.slane %v1863_v23, 4 }
 0x1e3   : > { %v1909_v54 = vmax.f32 %v1907_v17, %v1908_v8  ;;  %v1871_v49 = vrot.slane %v1870_v19, 4  ;;  %v1877_v31 = vsel %vm1239_vm0, %v957_v4, -inf  ;;  %v1827_v28 = vmax.f32 %v1825_v57, %v1826_v47 }
 0x1e4   : > { %v1890_v40 = vmax.f32 %v1888_v22, %v1889_v15  ;;  %v1859_v58 = vrot.slane %v1858_v26, 2  ;;  %v1865_v9 = vmax.f32 %v1863_v23, %v1864_v36  ;;  %v1896_v55 = vrot.slane %v1895_v32, 1  ;;  %v2868_v36 = vld [vmem:[%s5204_s3 + $0x70] sm:$0xff] }
 0x1e5   : > { %v1903_v59 = vrot.slane %v1902_v45, 1  ;;  %v1872_v24 = vmax.f32 %v1870_v19, %v1871_v49  ;;  %v1878_v61 = vrot.slane %v1877_v31, 4  ;;  %v4527_v62 = vmax.f32 %v1853_v20, %v1854_v16 }
 0x1e6   : > { %v2257_v7 = vsel %vm2136_vm1, %v1806_v3, -inf  ;;  %v1910_v1 = vrot.slane %v1909_v54, 1  ;;  %v1860_v44 = vmax.f32 %v1858_v26, %v1859_v58  ;;  %v2260_v21 = vsel %vm2136_vm1, %v1813_v29, -inf  ;;  %v2869_v26 = vld [vmem:[%s5204_s3 + $0x78] sm:$0xff] }
 0x1e7   : > { %v1866_v43 = vrot.slane %v1865_v9, 2  ;;  %v1873_v5 = vrot.slane %v1872_v24, 2  ;;  %v1879_v42 = vmax.f32 %v1877_v31, %v1878_v61  ;;  %v2263_v57 = vsel %vm2136_vm1, %v1820_v60, -inf }
 0x1e8   : > { %v4533_v46 = vsel %vm2136_vm1, %v1827_v28, -inf  ;;  %v1861_v48 = vrot.slane %v1860_v44, 1  ;;  %v992_v10 = vcombine.high %v4519_v50, %v4519_v50  ;;  %v1897_v20 = vmax.f32 %v1895_v32, %v1896_v55  ;;  %v4569_v28 = vld [vmem:[#allocation2 + $0x11] sm:$0xff] }
 0x1e9   : > { %v1904_v12 = vmax.f32 %v1902_v45, %v1903_v59  ;;  %v4538_v16 = vsel %vm2136_vm1, %v1890_v40, -inf  ;;  %v1867_v41 = vmax.f32 %v1865_v9, %v1866_v43  ;;  %v1911_v3 = vmax.f32 %v1909_v54, %v1910_v1 }
 0x1ea   : > { %v1862_v14 = vmax.f32 %v1860_v44, %v1861_v48  ;;  %v1874_v35 = vmax.f32 %v1872_v24, %v1873_v5  ;;  %v1880_v53 = vrot.slane %v1879_v42, 2  ;;  %v999_v47 = vrot.slane %v4519_v50, %v4047_v56 }
 0x1eb   : > { %v1868_v38 = vrot.slane %v1867_v41, 1  ;;  %v1006_v18 = vrot.slane %v992_v10, %v4047_v56  ;;  %v3903_v11 = vmov 0.0   ;;  %v465_v50 = vadd.f32 %v4293_v13, %v464_v33  ;;  %v3742_v33 = vpop.f32.mrf.mxu0 }
 0x1ec   : > { %v1875_v30 = vrot.slane %v1874_v35, 1  ;;  %v1881_v29 = vmax.f32 %v1879_v42, %v1880_v53  ;;  %v2258_v39 = vsel %vm2136_vm1, %v1862_v14, -inf  ;;  %2329 = vst.msk [vmem:[#allocation2] sm:$0xff] %vm2136_vm1, %v3903_v11  ;;  %2332 = vst.msk [vmem:[#allocation2 + $0x90] sm:$0xff] %vm2136_vm1, %v3903_v11  ;;  %2903 = vmatprep.subr.mxu1 %v3903_v11  ;;  %v1007_v17 = vcombine.high %v999_v47, %v999_v47  ;;  %v2866_v42 = vld [vmem:[%s5204_s3 + $0x60] sm:$0xff] }
 0x1ed   : > { %2330 = vst.msk [vmem:[#allocation2 + $0x8] sm:$0x3] %vm1239_vm0, %v3903_v11  ;;  %2333 = vst.msk [vmem:[#allocation2 + $0x98] sm:$0x3] %vm1239_vm0, %v3903_v11  ;;  %v1869_v6 = vmax.f32 %v1867_v41, %v1868_v38  ;;  %v2259_v22 = vmax.f32 %v2257_v7, %v2258_v39  ;;  %v1008_v27 = vcombine.high %v1006_v18, %v1006_v18  ;;  %v1940_v0 = vsel %vm1239_vm0, %v999_v47, -inf }
 0x1ee   : > { %v1876_v37 = vmax.f32 %v1874_v35, %v1875_v30  ;;  %v1882_v2 = vrot.slane %v1881_v29, 1  ;;  %v1954_v4 = vsel %vm1239_vm0, %v1006_v18, -inf  ;;  %v1941_v15 = vrot.slane %v1940_v0, 4  ;;  %2904 = vmatpush1.msra.mxu1 %v2869_v26  ;;  %v2864_v18 = vld [vmem:[%s5204_s3 + $0x50] sm:$0xff]  ;;  %v2861_v26 = vld [vmem:[%s5204_s3 + $0x38] sm:$0xff] }
 0x1ef   : > { %v2261_v63 = vsel %vm2136_vm1, %v1869_v6, -inf  ;;  %v1947_v8 = vsel %vm1239_vm0, %v1007_v17, -inf  ;;  %v1955_v23 = vrot.slane %v1954_v4, 4  ;;  %v2271_v60 = vmax.f32 %v4505_v25, %v4538_v16  ;;  %2905 = vmatprep.subr.mxu1 %v3903_v11  ;;  %v2867_v25 = vld [vmem:[%s5204_s3 + $0x68] sm:$0xff]  ;;  %2344 = vst.msk [vmem:[#allocation2 + $0x19] sm:$0x1] %vm2335_vm9, %v3903_v11 }
 0x1f0   : > { %v1883_v19 = vmax.f32 %v1881_v29, %v1882_v2  ;;  %v2262_v13 = vmax.f32 %v2260_v21, %v2261_v63  ;;  %v2264_v32 = vsel %vm2136_vm1, %v1876_v37, -inf  ;;  %v1948_v45 = vrot.slane %v1947_v8, 4  ;;  %2906 = vmatpush1.msra.mxu1 %v2868_v36  ;;  %2336 = vst.msk [vmem:[#allocation2 + $0x10] sm:$0x1] %vm2335_vm9, %v3903_v11  ;;  %2337 = vst.msk [vmem:[#allocation2 + $0x20] sm:$0x1] %vm2335_vm9, %v3903_v11 }
 0x1f1   : > { %v2273_v54 = vsel %vm2136_vm1, %v1897_v20, -inf  ;;  %v2265_v49 = vmax.f32 %v2263_v57, %v2264_v32  ;;  %v1961_v31 = vsel %vm1239_vm0, %v1008_v27, -inf  ;;  %v2276_v40 = vsel %vm2136_vm1, %v1904_v12, -inf  ;;  %2907 = vmatprep.subr.mxu1 %v3903_v11  ;;  %v2863_v27 = vld [vmem:[%s5204_s3 + $0x48] sm:$0xff]  ;;  %2338 = vst.msk [vmem:[#allocation2 + $0x30] sm:$0x1] %vm2335_vm9, %v3903_v11 }
 0x1f2   : > { %v2267_v58 = vsel %vm2136_vm1, %v1883_v19, -inf  ;;  %v2458_v9 = vsel %vm2416_vm2, %v2262_v13, %v2259_v22  ;;  %v1962_v55 = vrot.slane %v1961_v31, 4  ;;  %v2279_v59 = vsel %vm2136_vm1, %v1911_v3, -inf  ;;  %2908 = vmatpush1.msra.mxu1 %v2867_v25  ;;  %2339 = vst.msk [vmem:[#allocation2 + $0x40] sm:$0x1] %vm2335_vm9, %v3903_v11 }
 0x1f3   : > { %v2268_v24 = vmax.f32 %v4533_v46, %v2267_v58  ;;  %v2459_v61 = vsel %vm2418_vm3, %v2265_v49, %v2458_v9  ;;  %v1942_v7 = vmax.f32 %v1940_v0, %v1941_v15  ;;  %v1949_v44 = vmax.f32 %v1947_v8, %v1948_v45  ;;  %2909 = vmatprep.subr.mxu1 %v3903_v11 }
 0x1f4   : > { %v2503_v1 = vld [vmem:[#allocation2 + $0x1] sm:$0xff]  ;;  %v1956_v21 = vmax.f32 %v1954_v4, %v1955_v23  ;;  %v527_v5 = vmax.f32 %v465_v50, 0.0  ;;  %v2275_v57 = vsel %vm2136_vm1, %v4507_v51, -inf  ;;  %v2274_v46 = vmax.f32 %v4511_v34, %v2273_v54  ;;  %v2865_v51 = vld [vmem:[%s5204_s3 + $0x58] sm:$0xff]  ;;  %2910 = vmatpush1.msra.mxu1 %v2866_v42  ;;  %v4610_v50 = vld [vmem:[%s5203_s2] ss:$0 sm:$0xff] }
 0x1f5   : > { %v3767_v43 = vpack.i.bf16 %v4569_v28, %v2503_v1  ;;  %v2460_v48 = vsel %vm2420_vm4, %v2268_v24, %v2459_v61  ;;  %v1963_v10 = vmax.f32 %v1961_v31, %v1962_v55  ;;  %v2278_v20 = vsel %vm2136_vm1, %v4527_v62, -inf  ;;  %2911 = vmatprep.subr.mxu1 %v3903_v11  ;;  %v2862_v23 = vld [vmem:[%s5204_s3 + $0x40] sm:$0xff]  ;;  %2340 = vst.msk [vmem:[#allocation2 + $0x50] sm:$0x1] %vm2335_vm9, %v3903_v11  ;;  %v474_v31 = vpop.f32.mrf.mxu0  ;;  %v2860_v55 = vld [vmem:[%s5204_s3 + $0x30] sm:$0xff] }
 0x1f6   : > { %v2277_v12 = vmax.f32 %v2275_v57, %v2276_v40  ;;  %v2461_v16 = vsel %vm2422_vm5, %v2271_v60, %v2460_v48  ;;  %v975_v41 = vcombine.high %v527_v5, %v527_v5  ;;  %v2280_v34 = vmax.f32 %v2278_v20, %v2279_v59  ;;  %2912 = vmatpush1.msra.mxu1 %v2865_v51 }
 0x1f7   : > { %3768 = vrot.lane.b32.xlu0 %v3767_v43, %s3904_s22  ;;  %v2462_v3 = vsel %vm2424_vm6, %v2274_v46, %v2461_v16  ;;  %v1943_v14 = vrot.slane %v1942_v7, 2  ;;  %v982_v62 = vrot.slane %v527_v5, %v4047_v56  ;;  %v1950_v53 = vrot.slane %v1949_v44, 2  ;;  %2913 = vmatprep.subr.mxu1 %v3903_v11  ;;  %2341 = vst.msk [vmem:[#allocation2 + $0x60] sm:$0x1] %vm2335_vm9, %v3903_v11 }
 0x1f8   : > { %v2463_v35 = vsel %vm2426_vm7, %v2277_v12, %v2462_v3  ;;  %v1957_v38 = vrot.slane %v1956_v21, 2  ;;  %v989_v47 = vrot.slane %v975_v41, %v4047_v56  ;;  %v1964_v29 = vrot.slane %v1963_v10, 2  ;;  %2914 = vmatpush1.msra.mxu1 %v2864_v18  ;;  %2342 = vst.msk [vmem:[#allocation2 + $0x70] sm:$0x1] %vm2335_vm9, %v3903_v11  ;;  %2343 = vst.msk [vmem:[#allocation2 + $0x80] sm:$0x1] %vm2335_vm9, %v3903_v11 }
 0x1f9   : > { %v2464_v30 = vsel %vm2428_vm8, %v2280_v34, %v2463_v35  ;;  %v990_v39 = vcombine.high %v982_v62, %v982_v62  ;;  %v480_v6 = vadd.f32 %v4610_v50, %v3742_v33  ;;  %v1912_v17 = vsel %vm1239_vm0, %v982_v62, -inf  ;;  %2915 = vmatprep.subr.mxu1 %v3903_v11  ;;  %2345 = vst.msk [vmem:[#allocation2 + $0x29] sm:$0x1] %vm2335_vm9, %v3903_v11  ;;  %v2858_v12 = vld [vmem:[%s5204_s3 + $0x20] sm:$0xff]  ;;  %v4684_v35 = vld [vmem:[#allocation2 + $0x12] sm:$0xff] }
 0x1fa   : > { %2492 = vst.msk [vmem:[#allocation2 + $0x61] sm:$0xff] %vm2136_vm1, %v2464_v30  ;;  %v991_v22 = vcombine.high %v989_v47, %v989_v47  ;;  %v1944_v37 = vmax.f32 %v1942_v7, %v1943_v14  ;;  %v1913_v2 = vrot.slane %v1912_v17, 4  ;;  %v1951_v4 = vmax.f32 %v1949_v44, %v1950_v53  ;;  %2916 = vmatpush1.msra.mxu1 %v2863_v27  ;;  %v2511_v62 = vld [vmem:[#allocation2 + $0x2] sm:$0xff] }
 0x1fb   : > { %v1919_v0 = vsel %vm1239_vm0, %v990_v39, -inf  ;;  %v1958_v63 = vmax.f32 %v1956_v21, %v1957_v38  ;;  %v1926_v8 = vsel %vm1239_vm0, %v989_v47, -inf  ;;  %v1965_v19 = vmax.f32 %v1963_v10, %v1964_v29  ;;  %2917 = vmatprep.subr.mxu1 %v3903_v11  ;;  %2346 = vst.msk [vmem:[#allocation2 + $0x39] sm:$0x1] %vm2335_vm9, %v3903_v11  ;;  %2347 = vst.msk [vmem:[#allocation2 + $0x49] sm:$0x1] %vm2335_vm9, %v3903_v11 }
 0x1fc   : > { %v1920_v15 = vrot.slane %v1919_v0, 4  ;;  %v530_v13 = vmax.f32 %v480_v6, 0.0  ;;  %v4625_v32 = vmax.f32 %v1912_v17, %v1913_v2  ;;  %v1933_v45 = vsel %vm1239_vm0, %v991_v22, -inf  ;;  %2348 = vst.msk [vmem:[#allocation2 + $0x59] sm:$0x1] %vm2335_vm9, %v3903_v11  ;;  %2918 = vmatpush1.msra.mxu1 %v2862_v23  ;;  %v2859_v21 = vld [vmem:[%s5204_s3 + $0x28] sm:$0xff] }
 0x1fd   : > { %v1927_v60 = vrot.slane %v1926_v8, 4  ;;  %2349 = vst.msk [vmem:[#allocation2 + $0x69] sm:$0x1] %vm2335_vm9, %v3903_v11  ;;  %2350 = vst.msk [vmem:[#allocation2 + $0x79] sm:$0x1] %vm2335_vm9, %v3903_v11  ;;  %v1945_v40 = vrot.slane %v1944_v37, 1  ;;  %2919 = vmatprep.subr.mxu1 %v3903_v11  ;;  %v475_v44 = vadd.f32 %v4610_v50, %v474_v31 }
 0x1fe   : > { %v1921_v36 = vmax.f32 %v1919_v0, %v1920_v15  ;;  %v1026_v54 = vcombine.high %v530_v13, %v530_v13  ;;  %v1033_v49 = vrot.slane %v530_v13, %v4047_v56  ;;  %2351 = vst.msk [vmem:[#allocation2 + $0x89] sm:$0x1] %vm2335_vm9, %v3903_v11  ;;  %v1952_v58 = vrot.slane %v1951_v4, 1  ;;  %2920 = vmatpush1.msra.mxu1 %v2861_v26  ;;  %v4703_v2 = vld [vmem:[#allocation2 + $0x20] sm:$0xff] }
 0x1ff   : > { %v1959_v9 = vrot.slane %v1958_v63, 1  ;;  %v1966_v25 = vrot.slane %v1965_v19, 1  ;;  %v1934_v59 = vrot.slane %v1933_v45, 4  ;;  %v1915_v7 = vrot.slane %v4625_v32, 2  ;;  %2921 = vmatprep.subr.mxu1 %v3903_v11 }
 0x200   : > { %v1040_v24 = vrot.slane %v1026_v54, %v4047_v56  ;;  %v1041_v61 = vcombine.high %v1033_v49, %v1033_v49  ;;  %v1996_v1 = vsel %vm1239_vm0, %v1033_v49, -inf  ;;  %v1922_v43 = vrot.slane %v1921_v36, 2  ;;  %2922 = vmatpush1.msra.mxu1 %v2860_v55  ;;  %v4686_v38 = vld [vmem:[#allocation2 + $0x22] sm:$0xff] }
 0x201   : > { %v1928_v5 = vmax.f32 %v1926_v8, %v1927_v60  ;;  %v1997_v57 = vrot.slane %v1996_v1, 4  ;;  %v1946_v46 = vmax.f32 %v1944_v37, %v1945_v40  ;;  %v1960_v48 = vmax.f32 %v1958_v63, %v1959_v9  ;;  %2923 = vmatprep.subr.mxu1 %v3903_v11  ;;  %3610 = vmatprep.mubr.msk.f32.mxu1 %vm2136_vm1, %v4686_v38  ;;  %v3745_v8 = vpop.f32.mrf.mxu0 }
 0x202   : > { %v1042_v42 = vcombine.high %v1040_v24, %v1040_v24  ;;  %v2003_v10 = vsel %vm1239_vm0, %v1041_v61, -inf  ;;  %v2010_v20 = vsel %vm1239_vm0, %v1040_v24, -inf  ;;  %v1953_v16 = vmax.f32 %v1951_v4, %v1952_v58  ;;  %2924 = vmatpush1.msra.mxu1 %v2859_v21 }
 0x203   : > { %v1967_v41 = vmax.f32 %v1965_v19, %v1966_v25  ;;  %v1935_v33 = vmax.f32 %v1933_v45, %v1934_v59  ;;  %v2004_v51 = vrot.slane %v2003_v10, 4  ;;  %v1998_v34 = vmax.f32 %v1996_v1, %v1997_v57  ;;  %2925 = vmatprep.subr.mxu1 %v3903_v11  ;;  %v4710_v45 = vld [vmem:[#allocation2 + $0x10] sm:$0xff] }
 0x204   : > { %v2011_v3 = vrot.slane %v2010_v20, 4  ;;  %v2017_v14 = vsel %vm1239_vm0, %v1042_v42, -inf  ;;  %v529_v53 = vmax.f32 %v475_v44, 0.0  ;;  %v1916_v47 = vmax.f32 %v4625_v32, %v1915_v7  ;;  %2926 = vmatpush1.msra.mxu1 %v2858_v12 }
 0x205   : > { %v1923_v18 = vmax.f32 %v1921_v36, %v1922_v43  ;;  %v1929_v30 = vrot.slane %v1928_v5, 2  ;;  %v4693_v29 = vsel %vm2136_vm1, %v1946_v46, -inf  ;;  %v2005_v39 = vmax.f32 %v2003_v10, %v2004_v51  ;;  %2927 = vmatprep.subr.mxu1 %v3903_v11 }
 0x206   : > { %v2018_v6 = vrot.slane %v2017_v14, 4  ;;  %v4697_v22 = vsel %vm2136_vm1, %v1953_v16, -inf  ;;  %v4700_v17 = vsel %vm2136_vm1, %v1960_v48, -inf  ;;  %v1936_v27 = vrot.slane %v1935_v33, 2 }
 0x207   : > { %v3772_v37 = vpack.i.bf16 %v4684_v35, %v2511_v62  ;;  %v4706_v0 = vsel %vm2136_vm1, %v1967_v41, -inf  ;;  %v1999_v4 = vrot.slane %v1998_v34, 2  ;;  %v2012_v63 = vmax.f32 %v2010_v20, %v2011_v3  ;;  %v2857_v41 = vld [vmem:[%s5204_s3 + $0x18] sm:$0xff] }
 0x208   : > { %v1009_v15 = vcombine.high %v529_v53, %v529_v53  ;;  %v1917_v23 = vrot.slane %v1916_v47, 1  ;;  %v1924_v19 = vrot.slane %v1923_v18, 1  ;;  %v1930_v13 = vmax.f32 %v1928_v5, %v1929_v30  ;;  %2928 = vmatpush1.msra.mxu1 %v2857_v41 }
 0x209   : > { %3773 = vrot.lane.b32.xlu0 %v3772_v37, %s3905_s16  ;;  %v1016_v32 = vrot.slane %v529_v53, %v4047_v56  ;;  %v2006_v26 = vrot.slane %v2005_v39, 2  ;;  %v2019_v36 = vmax.f32 %v2017_v14, %v2018_v6  ;;  %v3777_v54 = vpack.i.bf16 %v4703_v2, %v4710_v45  ;;  %2929 = vmatprep.subr.mxu1 %v3903_v11 }
 0x20a   : > { %v1023_v60 = vrot.slane %v1009_v15, %v4047_v56  ;;  %v1937_v49 = vmax.f32 %v1935_v33, %v1936_v27  ;;  %v490_v58 = vadd.f32 %v4610_v50, %v3745_v8  ;;  %v2000_v9 = vmax.f32 %v1998_v34, %v1999_v4  ;;  %v2856_v33 = vld [vmem:[%s5204_s3 + $0x10] sm:$0xff] }
 0x20b   : > { %v1024_v31 = vcombine.high %v1016_v32, %v1016_v32  ;;  %v1968_v40 = vsel %vm1239_vm0, %v1016_v32, -inf  ;;  %v2013_v55 = vrot.slane %v2012_v63, 2  ;;  %3778 = vrot.lane.b32.xlu1 %v3777_v54, %s3906_s17  ;;  %v1918_v24 = vmax.f32 %v1916_v47, %v1917_v23  ;;  %2930 = vmatpush1.msra.mxu1 %v2856_v33 }
 0x20c   : > { %v1025_v25 = vcombine.high %v1023_v60, %v1023_v60  ;;  %v1969_v59 = vrot.slane %v1968_v40, 4  ;;  %v1931_v61 = vrot.slane %v1930_v13, 1  ;;  %v1982_v1 = vsel %vm1239_vm0, %v1023_v60, -inf  ;;  %2931 = vmatprep.subr.mxu1 %v3903_v11 }
 0x20d   : > { %v1975_v7 = vsel %vm1239_vm0, %v1024_v31, -inf  ;;  %v1925_v44 = vmax.f32 %v1923_v18, %v1924_v19  ;;  %v2007_v21 = vmax.f32 %v2005_v39, %v2006_v26  ;;  %v2020_v43 = vrot.slane %v2019_v36, 2 }
 0x20e   : > { %v1970_v5 = vmax.f32 %v1968_v40, %v1969_v59  ;;  %v1938_v42 = vrot.slane %v1937_v49, 1  ;;  %v1976_v57 = vrot.slane %v1975_v7, 4  ;;  %v1983_v46 = vrot.slane %v1982_v1, 4 }
 0x20f   : > { %v1989_v48 = vsel %vm1239_vm0, %v1025_v25, -inf  ;;  %v2001_v10 = vrot.slane %v2000_v9, 1  ;;  %v2014_v20 = vmax.f32 %v2012_v63, %v2013_v55  ;;  %v532_v16 = vmax.f32 %v490_v58, 0.0 }
 0x210   : > { %v1971_v12 = vrot.slane %v1970_v5, 2  ;;  %v1932_v51 = vmax.f32 %v1930_v13, %v1931_v61  ;;  %v1977_v34 = vmax.f32 %v1975_v7, %v1976_v57  ;;  %v1984_v3 = vmax.f32 %v1982_v1, %v1983_v46 }
 0x211   : > { %v1990_v14 = vrot.slane %v1989_v48, 4  ;;  %v2281_v62 = vsel %vm2136_vm1, %v1918_v24, -inf  ;;  %v2008_v53 = vrot.slane %v2007_v21, 1  ;;  %v2021_v47 = vmax.f32 %v2019_v36, %v2020_v43 }
 0x212   : > { %v1972_v18 = vmax.f32 %v1970_v5, %v1971_v12  ;;  %v1939_v30 = vmax.f32 %v1937_v49, %v1938_v42  ;;  %v1978_v39 = vrot.slane %v1977_v34, 2  ;;  %v1985_v6 = vrot.slane %v1984_v3, 2  ;;  %v484_v5 = vpop.f32.mrf.mxu0 }
 0x213   : > { %v1991_v27 = vmax.f32 %v1989_v48, %v1990_v14  ;;  %v2002_v37 = vmax.f32 %v2000_v9, %v2001_v10  ;;  %v2015_v4 = vrot.slane %v2014_v20, 1  ;;  %v1067_v15 = vrot.slane %v532_v16, %v4047_v56 }
 0x214   : > { %v1973_v63 = vrot.slane %v1972_v18, 1  ;;  %v2284_v8 = vsel %vm2136_vm1, %v1925_v44, -inf  ;;  %v1979_v23 = vmax.f32 %v1977_v34, %v1978_v39  ;;  %v1986_v19 = vmax.f32 %v1984_v3, %v1985_v6  ;;  %v2855_v3 = vld [vmem:[%s5204_s3 + $0x8] sm:$0xff] }
 0x215   : > { %v1992_v13 = vrot.slane %v1991_v27, 2  ;;  %v2009_v32 = vmax.f32 %v2007_v21, %v2008_v53  ;;  %v2022_v26 = vrot.slane %v2021_v47, 1  ;;  %v1060_v60 = vcombine.high %v532_v16, %v532_v16  ;;  %2932 = vmatpush1.msra.mxu1 %v2855_v3 }
 0x216   : > { %v1974_v36 = vmax.f32 %v1972_v18, %v1973_v63  ;;  %v2287_v54 = vsel %vm2136_vm1, %v1932_v51, -inf  ;;  %v1980_v49 = vrot.slane %v1979_v23, 1  ;;  %v1987_v31 = vrot.slane %v1986_v19, 1  ;;  %2933 = vmatprep.subr.mxu1 %v3903_v11 }
 0x217   : > { %v1993_v40 = vmax.f32 %v1991_v27, %v1992_v13  ;;  %v2290_v58 = vsel %vm2136_vm1, %v1939_v30, -inf  ;;  %v2016_v9 = vmax.f32 %v2014_v20, %v2015_v4  ;;  %v2294_v55 = vsel %vm2136_vm1, %v2002_v37, -inf  ;;  %v3748_v27 = vpop.f32.mrf.mxu0 }
 0x218   : > { %v1075_v25 = vcombine.high %v1067_v15, %v1067_v15  ;;  %v1981_v59 = vmax.f32 %v1979_v23, %v1980_v49  ;;  %v1988_v24 = vmax.f32 %v1986_v19, %v1987_v31  ;;  %v2282_v7 = vsel %vm2136_vm1, %v1974_v36, -inf }
 0x219   : > { %v1994_v61 = vrot.slane %v1993_v40, 1  ;;  %v2023_v1 = vmax.f32 %v2021_v47, %v2022_v26  ;;  %v2297_v44 = vsel %vm2136_vm1, %v2009_v32, -inf  ;;  %v1074_v21 = vrot.slane %v1060_v60, %v4047_v56 }
 0x21a   : > { %v2052_v43 = vsel %vm1239_vm0, %v1067_v15, -inf  ;;  %v2285_v57 = vsel %vm2136_vm1, %v1981_v59, -inf  ;;  %v2288_v46 = vsel %vm2136_vm1, %v1988_v24, -inf  ;;  %v3787_v48 = vpack.i.bf16 %v4686_v38, %v4684_v35  ;;  %v2854_v35 = vld [vmem:[%s5204_s3] sm:$0xff] }
 0x21b   : > { %v1995_v42 = vmax.f32 %v1993_v40, %v1994_v61  ;;  %v2283_v10 = vmax.f32 %v2281_v62, %v2282_v7  ;;  %v2286_v20 = vmax.f32 %v2284_v8, %v2285_v57  ;;  %v2289_v12 = vmax.f32 %v2287_v54, %v2288_v46  ;;  %2934 = vmatpush1.msra.mxu1 %v2854_v35  ;;  %v4771_v54 = vld [vmem:[#allocation2 + $0x21] sm:$0xff] }
 0x21c   : > { %v2059_v16 = vsel %vm1239_vm0, %v1075_v25, -inf  ;;  %v2300_v41 = vsel %vm2136_vm1, %v2016_v9, -inf  ;;  %v2053_v51 = vrot.slane %v2052_v43, 4  ;;  %3788 = vrot.lane.b32.xlu0 %v3787_v48, %s3907_s25  ;;  %v485_v34 = vadd.f32 %v4610_v50, %v484_v5  ;;  %2963 = vmatprep.subr.mxu1 %v3903_v11  ;;  %v494_v48 = vpop.f32.mrf.mxu0 }
 0x21d   : > { %v2291_v33 = vsel %vm2136_vm1, %v1995_v42, -inf  ;;  %v2295_v14 = vmax.f32 %v4693_v29, %v2294_v55  ;;  %v2465_v53 = vsel %vm2416_vm2, %v2286_v20, %v2283_v10  ;;  %v2066_v47 = vsel %vm1239_vm0, %v1074_v21, -inf }
 0x21e   : > { %v2292_v62 = vmax.f32 %v2290_v58, %v2291_v33  ;;  %v2303_v18 = vsel %vm2136_vm1, %v2023_v1, -inf  ;;  %v2466_v30 = vsel %vm2418_vm3, %v2289_v12, %v2465_v53  ;;  %v2060_v39 = vrot.slane %v2059_v16, 4 }
 0x21f   : > { %v531_v6 = vmax.f32 %v485_v34, 0.0  ;;  %v2298_v37 = vmax.f32 %v4697_v22, %v2297_v44  ;;  %v2301_v4 = vmax.f32 %v4700_v17, %v2300_v41  ;;  %v1076_v63 = vcombine.high %v1074_v21, %v1074_v21 }
 0x220   : > { %v2467_v29 = vsel %vm2420_vm4, %v2292_v62, %v2466_v30  ;;  %v2054_v8 = vmax.f32 %v2052_v43, %v2053_v51  ;;  %v2067_v23 = vrot.slane %v2066_v47, 4  ;;  %v2304_v13 = vmax.f32 %v4706_v0, %v2303_v18 }
 0x221   : > { %v2468_v15 = vsel %vm2422_vm5, %v2295_v14, %v2467_v29  ;;  %v1043_v19 = vcombine.high %v531_v6, %v531_v6  ;;  %v1050_v26 = vrot.slane %v531_v6, %v4047_v56  ;;  %v500_v22 = vadd.f32 %v4610_v50, %v3748_v27 }
 0x222   : > { %v2469_v32 = vsel %vm2424_vm6, %v2298_v37, %v2468_v15  ;;  %v2061_v36 = vmax.f32 %v2059_v16, %v2060_v39  ;;  %v2073_v31 = vsel %vm1239_vm0, %v1076_v63, -inf  ;;  %v2055_v58 = vrot.slane %v2054_v8, 2 }
 0x223   : > { %v2470_v17 = vsel %vm2426_vm7, %v2301_v4, %v2469_v32  ;;  %v1057_v60 = vrot.slane %v1043_v19, %v4047_v56  ;;  %v1058_v40 = vcombine.high %v1050_v26, %v1050_v26  ;;  %v2024_v0 = vsel %vm1239_vm0, %v1050_v26, -inf  ;;  %v2870_v32 = vld [vmem:[%s5204_s3 + $0x80] sm:$0xff] }
 0x224   : > { %v2471_v49 = vsel %vm2428_vm8, %v2304_v13, %v2470_v17  ;;  %v2068_v9 = vmax.f32 %v2066_v47, %v2067_v23  ;;  %v2025_v25 = vrot.slane %v2024_v0, 4  ;;  %v534_v61 = vmax.f32 %v500_v22, 0.0  ;;  %v2871_v13 = vld [vmem:[%s5204_s3 + $0x88] sm:$0xff] }
 0x225   : > { %2493 = vst.msk [vmem:[#allocation2 + $0x71] sm:$0xff] %vm2136_vm1, %v2471_v49  ;;  %v1059_v55 = vcombine.high %v1057_v60, %v1057_v60  ;;  %v2031_v59 = vsel %vm1239_vm0, %v1058_v40, -inf  ;;  %v2038_v24 = vsel %vm1239_vm0, %v1057_v60, -inf  ;;  %v3782_v7 = vpack.i.bf16 %v4771_v54, %v4569_v28  ;;  %v4798_v60 = vld [vmem:[#allocation2 + $0x30] sm:$0xff]  ;;  %2964 = vmatpush2.msra.mxu1 %v2871_v13 }
 0x226   : > { %v2062_v1 = vrot.slane %v2061_v36, 2  ;;  %v2074_v44 = vrot.slane %v2073_v31, 4  ;;  %v2032_v21 = vrot.slane %v2031_v59, 4  ;;  %v2039_v43 = vrot.slane %v2038_v24, 4  ;;  %2965 = vmatprep.subr.mxu1 %v3903_v11 }
 0x227   : > { %v2026_v5 = vmax.f32 %v2024_v0, %v2025_v25  ;;  %v2045_v42 = vsel %vm1239_vm0, %v1059_v55, -inf  ;;  %v1094_v57 = vcombine.high %v534_v61, %v534_v61  ;;  %v1101_v46 = vrot.slane %v534_v61, %v4047_v56  ;;  %3783 = vrot.lane.b32.xlu1 %v3782_v7, %s3908_s30  ;;  %2966 = vmatpush2.msra.mxu1 %v2870_v32 }
 0x228   : > { %v2056_v10 = vmax.f32 %v2054_v8, %v2055_v58  ;;  %v2033_v20 = vmax.f32 %v2031_v59, %v2032_v21  ;;  %v2040_v12 = vmax.f32 %v2038_v24, %v2039_v43  ;;  %v2046_v16 = vrot.slane %v2045_v42, 4 }
 0x229   : > { %v1108_v28 = vrot.slane %v1094_v57, %v4047_v56  ;;  %v1109_v41 = vcombine.high %v1101_v46, %v1101_v46  ;;  %v2069_v33 = vrot.slane %v2068_v9, 2  ;;  %v2075_v51 = vmax.f32 %v2073_v31, %v2074_v44 }
 0x22a   : > { %v2108_v34 = vsel %vm1239_vm0, %v1101_v46, -inf  ;;  %v495_v3 = vadd.f32 %v4610_v50, %v494_v48  ;;  %v2063_v35 = vmax.f32 %v2061_v36, %v2062_v1  ;;  %v2027_v14 = vrot.slane %v2026_v5, 2 }
 0x22b   : > { %v1110_v62 = vcombine.high %v1108_v28, %v1108_v28  ;;  %v2115_v53 = vsel %vm1239_vm0, %v1109_v41, -inf  ;;  %v2034_v47 = vrot.slane %v2033_v20, 2  ;;  %v2122_v18 = vsel %vm1239_vm0, %v1108_v28, -inf }
 0x22c   : > { %v2041_v30 = vrot.slane %v2040_v12, 2  ;;  %v2047_v39 = vmax.f32 %v2045_v42, %v2046_v16  ;;  %v2109_v6 = vrot.slane %v2108_v34, 4  ;;  %v2057_v37 = vrot.slane %v2056_v10, 1 }
 0x22d   : > { %v2129_v27 = vsel %vm1239_vm0, %v1110_v62, -inf  ;;  %v4790_v4 = vmax.f32 %v2068_v9, %v2069_v33  ;;  %v2116_v29 = vrot.slane %v2115_v53, 4  ;;  %v533_v63 = vmax.f32 %v495_v3, 0.0 }
 0x22e   : > { %v2064_v15 = vrot.slane %v2063_v35, 1  ;;  %v2076_v50 = vrot.slane %v2075_v51, 2  ;;  %v2028_v8 = vmax.f32 %v2026_v5, %v2027_v14  ;;  %v2123_v23 = vrot.slane %v2122_v18, 4 }
 0x22f   : > { %v2130_v19 = vrot.slane %v2129_v27, 4  ;;  %v2035_v26 = vmax.f32 %v2033_v20, %v2034_v47  ;;  %v2042_v22 = vmax.f32 %v2040_v12, %v2041_v30  ;;  %v2048_v17 = vrot.slane %v2047_v39, 2  ;;  %v4817_v30 = vld [vmem:[#allocation2 + $0x40] sm:$0xff] }
 0x230   : > { %v2110_v36 = vmax.f32 %v2108_v34, %v2109_v6  ;;  %v4800_v49 = vmax.f32 %v2056_v10, %v2057_v37  ;;  %v2071_v31 = vrot.slane %v4790_v4, 1  ;;  %v2117_v40 = vmax.f32 %v2115_v53, %v2116_v29 }
 0x231   : > { %v1077_v0 = vcombine.high %v533_v63, %v533_v63  ;;  %v4804_v58 = vmax.f32 %v2063_v35, %v2064_v15  ;;  %v4806_v9 = vmax.f32 %v2075_v51, %v2076_v50  ;;  %v2029_v55 = vrot.slane %v2028_v8, 1  ;;  %v2553_v51 = vld [vmem:[#allocation2 + $0x31] sm:$0xff] }
 0x232   : > { %v2124_v25 = vmax.f32 %v2122_v18, %v2123_v23  ;;  %v2131_v59 = vmax.f32 %v2129_v27, %v2130_v19  ;;  %v1084_v24 = vrot.slane %v533_v63, %v4047_v56  ;;  %v3792_v7 = vpack.i.bf16 %v4798_v60, %v4703_v2 }
 0x233   : > { %v1091_v61 = vrot.slane %v1077_v0, %v4047_v56  ;;  %v2036_v1 = vrot.slane %v2035_v26, 1  ;;  %v2043_v44 = vrot.slane %v2042_v22, 1  ;;  %v2049_v21 = vmax.f32 %v2047_v39, %v2048_v17 }
 0x234   : > { %v2111_v43 = vrot.slane %v2110_v36, 2  ;;  %v2118_v5 = vrot.slane %v2117_v40, 2  ;;  %v1092_v42 = vcombine.high %v1084_v24, %v1084_v24  ;;  %v2080_v57 = vsel %vm1239_vm0, %v1084_v24, -inf  ;;  %3793 = vrot.lane.b32.xlu1 %v3792_v7, %s3909_s6 }
 0x235   : > { %v2094_v46 = vsel %vm1239_vm0, %v1091_v61, -inf  ;;  %v2078_v48 = vrot.slane %v4806_v9, 1  ;;  %v2030_v10 = vmax.f32 %v2028_v8, %v2029_v55  ;;  %v2125_v20 = vrot.slane %v2124_v25, 2  ;;  %v4821_v8 = vld [vmem:[#allocation2 + $0x32] sm:$0xff] }
 0x236   : > { %v1093_v12 = vcombine.high %v1091_v61, %v1091_v61  ;;  %v2132_v16 = vrot.slane %v2131_v59, 2  ;;  %v2081_v28 = vrot.slane %v2080_v57, 4  ;;  %v2087_v41 = vsel %vm1239_vm0, %v1092_v42, -inf }
 0x237   : > { %v2095_v33 = vrot.slane %v2094_v46, 4  ;;  %v2037_v34 = vmax.f32 %v2035_v26, %v2036_v1  ;;  %v2044_v3 = vmax.f32 %v2042_v22, %v2043_v44  ;;  %v2050_v35 = vrot.slane %v2049_v21, 1  ;;  %v4830_v1 = vld [vmem:[#allocation2 + $0x42] sm:$0xff] }
 0x238   : > { %v2088_v14 = vrot.slane %v2087_v41, 4  ;;  %v2112_v62 = vmax.f32 %v2110_v36, %v2111_v43  ;;  %v2119_v53 = vmax.f32 %v2117_v40, %v2118_v5  ;;  %v2082_v47 = vmax.f32 %v2080_v57, %v2081_v28  ;;  %v2530_v36 = vld [vmem:[#allocation2 + $0x41] sm:$0xff] }
 0x239   : > { %v2096_v18 = vmax.f32 %v2094_v46, %v2095_v33  ;;  %v2126_v39 = vmax.f32 %v2124_v25, %v2125_v20  ;;  %v2101_v27 = vsel %vm1239_vm0, %v1093_v12, -inf  ;;  %v3797_v37 = vpack.i.bf16 %v2553_v51, %v4771_v54  ;;  %v4836_v20 = vld [vmem:[#allocation2 + $0x50] sm:$0xff] }
 0x23a   : > { %v2089_v6 = vmax.f32 %v2087_v41, %v2088_v14  ;;  %v2133_v29 = vmax.f32 %v2131_v59, %v2132_v16  ;;  %v2083_v63 = vrot.slane %v2082_v47, 2  ;;  %v2102_v50 = vrot.slane %v2101_v27, 4 }
 0x23b   : > { %v2097_v15 = vrot.slane %v2096_v18, 2  ;;  %v2051_v23 = vmax.f32 %v2049_v21, %v2050_v35  ;;  %v2305_v19 = vsel %vm2136_vm1, %v2030_v10, -inf  ;;  %3798 = vrot.lane.b32.xlu0 %v3797_v37, %s3910_s11  ;;  %3803 = vrot.lane.b32.xlu1 %v3797_v37, %s3904_s22  ;;  %v3812_v32 = vpack.i.bf16 %v4817_v30, %v4798_v60  ;;  %v2555_v10 = vld [vmem:[#allocation2 + $0x51] sm:$0xff] }
 0x23c   : > { %v2090_v13 = vrot.slane %v2089_v6, 2  ;;  %v2113_v26 = vrot.slane %v2112_v62, 1  ;;  %v2084_v54 = vmax.f32 %v2082_v47, %v2083_v63  ;;  %v2103_v17 = vmax.f32 %v2101_v27, %v2102_v50 }
 0x23d   : > { %v2098_v22 = vmax.f32 %v2096_v18, %v2097_v15  ;;  %v2120_v40 = vrot.slane %v2119_v53, 1  ;;  %v2127_v0 = vrot.slane %v2126_v39, 1  ;;  %v3807_v25 = vpack.i.bf16 %v4821_v8, %v4686_v38 }
 0x23e   : > { %v2091_v55 = vmax.f32 %v2089_v6, %v2090_v13  ;;  %v2134_v59 = vrot.slane %v2133_v29, 1  ;;  %v2085_v24 = vrot.slane %v2084_v54, 1  ;;  %v2104_v7 = vrot.slane %v2103_v17, 2 }
 0x23f   : > { %v2099_v61 = vrot.slane %v2098_v22, 1  ;;  %v2308_v44 = vsel %vm2136_vm1, %v2037_v34, -inf  ;;  %v2311_v21 = vsel %vm2136_vm1, %v2044_v3, -inf  ;;  %3808 = vrot.lane.b32.xlu0 %v3807_v25, %s3905_s16  ;;  %3813 = vrot.lane.b32.xlu1 %v3812_v32, %s3906_s17  ;;  %v3817_v5 = vpack.i.bf16 %v2530_v36, %v2553_v51 }
 0x240   : > { %v2092_v43 = vrot.slane %v2091_v55, 1  ;;  %v2114_v42 = vmax.f32 %v2112_v62, %v2113_v26  ;;  %v2086_v57 = vmax.f32 %v2084_v54, %v2085_v24  ;;  %v2105_v38 = vmax.f32 %v2103_v17, %v2104_v7  ;;  %v2532_v26 = vld [vmem:[#allocation2 + $0x61] sm:$0xff]  ;;  %v4883_v7 = vld [vmem:[#allocation2 + $0x70] sm:$0xff] }
 0x241   : > { %v2100_v46 = vmax.f32 %v2098_v22, %v2099_v61  ;;  %v2121_v12 = vmax.f32 %v2119_v53, %v2120_v40  ;;  %v2128_v16 = vmax.f32 %v2126_v39, %v2127_v0  ;;  %v3822_v41 = vpack.i.bf16 %v4830_v1, %v4821_v8  ;;  %v4870_v54 = vld [vmem:[#allocation2 + $0x60] sm:$0xff] }
 0x242   : > { %v2093_v28 = vmax.f32 %v2091_v55, %v2092_v43  ;;  %v2135_v33 = vmax.f32 %v2133_v29, %v2134_v59  ;;  %v2106_v34 = vrot.slane %v2105_v38, 1  ;;  %v2306_v3 = vsel %vm2136_vm1, %v2086_v57, -inf }
 0x243   : > { %v2312_v35 = vsel %vm2136_vm1, %v2100_v46, -inf  ;;  %3818 = vrot.lane.b32.xlu0 %v3817_v5, %s3908_s30  ;;  %3823 = vrot.lane.b32.xlu1 %v3822_v41, %s3907_s25  ;;  %v3832_v62 = vpack.i.bf16 %v2555_v10, %v2530_v36  ;;  %v3827_v53 = vpack.i.bf16 %v4836_v20, %v4817_v30  ;;  %v2072_v47 = vmax.f32 %v4790_v4, %v2071_v31  ;;  %v4860_v31 = vld [vmem:[#allocation2 + $0x52] sm:$0xff] }
 0x244   : > { %v2309_v51 = vsel %vm2136_vm1, %v2093_v28, -inf  ;;  %v2313_v14 = vmax.f32 %v2311_v21, %v2312_v35  ;;  %v2107_v18 = vmax.f32 %v2105_v38, %v2106_v34  ;;  %v2307_v39 = vmax.f32 %v2305_v19, %v2306_v3  ;;  %v4887_v21 = vld [vmem:[#allocation2 + $0x62] sm:$0xff]  ;;  %v2557_v5 = vld [vmem:[#allocation2 + $0x71] sm:$0xff] }
 0x245   : > { %v2310_v6 = vmax.f32 %v2308_v44, %v2309_v51  ;;  %v2079_v27 = vmax.f32 %v4806_v9, %v2078_v48  ;;  %v2317_v37 = vsel %vm2136_vm1, %v4800_v49, -inf  ;;  %v2318_v29 = vsel %vm2136_vm1, %v2114_v42, -inf  ;;  %v4897_v46 = vld [vmem:[#allocation2 + $0x72] sm:$0xff] }
 0x246   : > { %v2314_v63 = vsel %vm2136_vm1, %v2051_v23, -inf  ;;  %v2321_v15 = vsel %vm2136_vm1, %v2121_v12, -inf  ;;  %v2315_v50 = vsel %vm2136_vm1, %v2107_v18, -inf  ;;  %v2324_v19 = vsel %vm2136_vm1, %v2128_v16, -inf  ;;  %v2551_v41 = vld [vmem:[#allocation2 + $0x90] sm:$0xff] }
 0x247   : > { %v2472_v4 = vsel %vm2416_vm2, %v2310_v6, %v2307_v39  ;;  %v2327_v13 = vsel %vm2136_vm1, %v2135_v33, -inf  ;;  %v2316_v9 = vmax.f32 %v2314_v63, %v2315_v50  ;;  %3833 = vrot.lane.b32.xlu1 %v3832_v62, %s3910_s11  ;;  %3828 = vrot.lane.b32.xlu0 %v3827_v53, %s3909_s6  ;;  %v2320_v49 = vsel %vm2136_vm1, %v4804_v58, -inf  ;;  %v2559_v34 = vld [vmem:[#allocation2 + $0x91] sm:$0xff]  ;;  %v2495_v53 = vld [vmem:[#allocation2] sm:$0xff] }
 0x248   : > { %v2473_v48 = vsel %vm2418_vm3, %v2313_v14, %v2472_v4  ;;  %v2323_v23 = vsel %vm2136_vm1, %v2072_v47, -inf  ;;  %v2319_v32 = vmax.f32 %v2317_v37, %v2318_v29  ;;  %v2326_v22 = vsel %vm2136_vm1, %v2079_v27, -inf }
 0x249   : > { %v2322_v17 = vmax.f32 %v2320_v49, %v2321_v15  ;;  %v2474_v36 = vsel %vm2420_vm4, %v2316_v9, %v2473_v48  ;;  %v3842_v40 = vpack.i.bf16 %v4860_v31, %v4830_v1  ;;  %v2325_v0 = vmax.f32 %v2323_v23, %v2324_v19 }
 0x24a   : > { %v2328_v55 = vmax.f32 %v2326_v22, %v2327_v13  ;;  %v2475_v25 = vsel %vm2422_vm5, %v2319_v32, %v2474_v36  ;;  %v3852_v59 = vpack.i.bf16 %v2532_v26, %v2555_v10  ;;  %v3847_v24 = vpack.i.bf16 %v4870_v54, %v4836_v20 }
 0x24b   : > { %v2476_v58 = vsel %vm2424_vm6, %v2322_v17, %v2475_v25  ;;  %3843 = vrot.lane.b32.xlu1 %v3842_v40, %s3905_s16  ;;  %3838 = vrot.lane.b32.xlu0 %v3832_v62, %s3904_s22  ;;  %v3862_v43 = vpack.i.bf16 %v4883_v7, %v4870_v54  ;;  %v3857_v42 = vpack.i.bf16 %v4887_v21, %v4860_v31  ;;  %vm3192_vm0 = vcmask 254976  }
 0x24c   : > { %v2477_v61 = vsel %vm2426_vm7, %v2325_v0, %v2476_v58  ;;  %v3867_v57 = vpack.i.bf16 %v2557_v5, %v2532_v26  ;;  %v3877_v10 = vpack.i.bf16 %v4897_v46, %v4887_v21 }
 0x24d   : > { %v2478_v44 = vsel %vm2428_vm8, %v2328_v55, %v2477_v61 }
 0x24e   : > { %2494 = vst.msk [vmem:[#allocation2 + $0x81] sm:$0xff] %vm2136_vm1, %v2478_v44 }
 0x24f   : > { %3853 = vrot.lane.b32.xlu1 %v3852_v59, %s3908_s30  ;;  %3848 = vrot.lane.b32.xlu0 %v3847_v24, %s3906_s17 }
 0x253   : > { %3858 = vrot.lane.b32.xlu0 %v3857_v42, %s3907_s25  ;;  %3863 = vrot.lane.b32.xlu1 %v3862_v43, %s3909_s6 }
 0x255   : > { %v2534_v38 = vld [vmem:[#allocation2 + $0x81] sm:$0xff] }
 0x256   : > { %v2526_v12 = vld [vmem:[#allocation2 + $0x80] sm:$0xff]  ;;  %v3887_v16 = vpack.i.bf16 %v2534_v38, %v2557_v5 }
 0x257   : > { %3868 = vrot.lane.b32.xlu0 %v3867_v57, %s3910_s11  ;;  %3873 = vrot.lane.b32.xlu1 %v3867_v57, %s3904_s22  ;;  %v3882_v28 = vpack.i.bf16 %v2526_v12, %v4883_v7  ;;  %v4911_v33 = vld [vmem:[#allocation2 + $0x82] sm:$0xff] }
 0x25b   : > { %3878 = vrot.lane.b32.xlu0 %v3877_v10, %s3905_s16  ;;  %2716 = vrot.lane.b32.xlu1 %v4897_v46, %s3907_s25 }
 0x25f   : > { %3888 = vrot.lane.b32.xlu0 %v3887_v16, %s3908_s30  ;;  %3883 = vrot.lane.b32.xlu1 %v3882_v28, %s3906_s17  ;;  %s222_s17 = scalar_lea.vmem %s5206_s5, %s3607_s13 }
 0x263   : > { %2748 = vrot.lane.b32.xlu0 %v2526_v12, %s3909_s6  ;;  %2780 = vrot.lane.b32.xlu1 %v2534_v38, %s3910_s11 }
 0x267   : > { %2718 = vrot.lane.b32.xlu0 %v4911_v33, %s3907_s25  ;;  %2750 = vrot.lane.b32.xlu1 %v2551_v41, %s3909_s6 }
 0x269   : > { %v3769_v3 = vpop.permute.xlu0 %3768 }
 0x26a   : > { %v3770_v62 = vunpack.i.l.bf16 %v3769_v3  ;;  %v3771_v6 = vunpack.i.h.bf16 %v3769_v3 }
 0x26b   : > { %2782 = vrot.lane.b32.xlu0 %v2559_v34, %s3910_s11 }
 0x26c   : > { %v2792_v27 = vsel %vm2136_vm1, %v2495_v53, %v3770_v62  ;;  %v2793_v48 = vsel %vm2136_vm1, %v4710_v45, %v3771_v6 }
 0x27b   : > { %v3774_v51 = vpop.permute.xlu0 %3773 }
 0x27c   : > { %v3775_v47 = vunpack.i.l.bf16 %v3774_v51  ;;  %v3776_v29 = vunpack.i.h.bf16 %v3774_v51 }
 0x27d   : > { %v3779_v35 = vpop.permute.xlu1 %3778 }
 0x27e   : > { %v3780_v18 = vunpack.i.l.bf16 %v3779_v35  ;;  %v2801_v63 = vsel %vm2800_vm10, %v2792_v27, %v3775_v47  ;;  %v3781_v50 = vunpack.i.h.bf16 %v3779_v35  ;;  %v2802_v23 = vsel %vm2800_vm10, %v2793_v48, %v3776_v29 }
 0x280   : > { %v2810_v4 = vsel %vm2809_vm11, %v2801_v63, %v3780_v18  ;;  %v2811_v32 = vsel %vm2809_vm11, %v2802_v23, %v3781_v50 }
 0x28e   : > { %v3789_v15 = vpop.permute.xlu0 %3788 }
 0x28f   : > { %v3790_v49 = vunpack.i.l.bf16 %v3789_v15  ;;  %v3791_v55 = vunpack.i.h.bf16 %v3789_v15 }
 0x299   : > { %v3784_v14 = vpop.permute.xlu1 %3783 }
 0x29a   : > { %v3785_v39 = vunpack.i.l.bf16 %v3784_v14  ;;  %v3786_v19 = vunpack.i.h.bf16 %v3784_v14 }
 0x29c   : > { %v2819_v13 = vsel %vm2818_vm12, %v2810_v4, %v3785_v39  ;;  %v2820_v22 = vsel %vm2818_vm12, %v2811_v32, %v3786_v19 }
 0x29d   : > { %v2828_v26 = vsel %vm2827_vm13, %v2819_v13, %v3790_v49  ;;  %v2829_v24 = vsel %vm2827_vm13, %v2820_v22, %v3791_v55 }
 0x2a6   : > { %v3794_v37 = vpop.permute.xlu1 %3793 }
 0x2a7   : > { %v3795_v9 = vunpack.i.l.bf16 %v3794_v37  ;;  %v3796_v17 = vunpack.i.h.bf16 %v3794_v37 }
 0x2a9   : > { %v2837_v0 = vsel %vm2836_vm14, %v2828_v26, %v3795_v9  ;;  %v2838_v5 = vsel %vm2836_vm14, %v2829_v24, %v3796_v17 }
 0x2ad   : > { %v3799_v36 = vpop.permute.xlu0 %3798  ;;  %v3804_v40 = vpop.permute.xlu1 %3803 }
 0x2ae   : > { %v3800_v25 = vunpack.i.l.bf16 %v3799_v36  ;;  %v3805_v58 = vunpack.i.l.bf16 %v3804_v40  ;;  %v3801_v45 = vunpack.i.h.bf16 %v3799_v36  ;;  %v3806_v61 = vunpack.i.h.bf16 %v3804_v40 }
 0x2b0   : > { %v2846_v59 = vsel %vm2845_vm15, %v2837_v0, %v3800_v25  ;;  %v2794_v57 = vsel %vm2136_vm1, %v4703_v2, %v3805_v58  ;;  %v2847_v12 = vsel %vm2845_vm15, %v2838_v5, %v3801_v45  ;;  %v2795_v16 = vsel %vm2136_vm1, %v4798_v60, %v3806_v61 }
 0x2b1   : > { %v3809_v44 = vpop.permute.xlu0 %3808  ;;  %2968 = vmatmul.mubr.f32.vlgmr.msra.gmra.mxu1 %v2846_v59  ;;  %v3814_v43 = vpop.permute.xlu1 %3813 }
 0x2b2   : > { %v3810_v42 = vunpack.i.l.bf16 %v3809_v44  ;;  %3611 = vmatprep.mubr.msk.f32.mxu1 %vm2136_vm1, %v4821_v8  ;;  %v3815_v38 = vunpack.i.l.bf16 %v3814_v43  ;;  %v3811_v10 = vunpack.i.h.bf16 %v3809_v44  ;;  %v3816_v28 = vunpack.i.h.bf16 %v3814_v43 }
 0x2b4   : > { %v2803_v3 = vsel %vm2800_vm10, %v2794_v57, %v3810_v42  ;;  %v2804_v51 = vsel %vm2800_vm10, %v2795_v16, %v3811_v10 }
 0x2b5   : > { %v3819_v41 = vpop.permute.xlu0 %3818  ;;  %2973 = vmatmul.mubr.f32.gmra.mxu1 %v2847_v12  ;;  %v3824_v34 = vpop.permute.xlu1 %3823  ;;  %v2812_v8 = vsel %vm2809_vm11, %v2803_v3, %v3815_v38  ;;  %v2813_v62 = vsel %vm2809_vm11, %v2804_v51, %v3816_v28 }
 0x2b6   : > { %v3820_v35 = vunpack.i.l.bf16 %v3819_v41  ;;  %3612 = vmatprep.mubr.msk.f32.mxu1 %vm2136_vm1, %v4830_v1  ;;  %v3825_v2 = vunpack.i.l.bf16 %v3824_v34  ;;  %v3821_v14 = vunpack.i.h.bf16 %v3819_v41  ;;  %v3826_v53 = vunpack.i.h.bf16 %v3824_v34 }
 0x2b8   : > { %v2821_v18 = vsel %vm2818_vm12, %v2812_v8, %v3820_v35  ;;  %v2822_v1 = vsel %vm2818_vm12, %v2813_v62, %v3821_v14 }
 0x2b9   : > { %v3834_v60 = vpop.permute.xlu1 %3833  ;;  %v3829_v47 = vpop.permute.xlu0 %3828  ;;  %v2830_v37 = vsel %vm2827_vm13, %v2821_v18, %v3825_v2  ;;  %v2831_v19 = vsel %vm2827_vm13, %v2822_v1, %v3826_v53 }
 0x2ba   : > { %v3835_v39 = vunpack.i.l.bf16 %v3834_v60  ;;  %v3831_v6 = vunpack.i.h.bf16 %v3829_v47  ;;  %v3830_v27 = vunpack.i.l.bf16 %v3829_v47  ;;  %v3836_v63 = vunpack.i.h.bf16 %v3834_v60 }
 0x2bc   : > { %v2839_v29 = vsel %vm2836_vm14, %v2830_v37, %v3830_v27  ;;  %v2840_v9 = vsel %vm2836_vm14, %v2831_v19, %v3831_v6  ;;  %v2567_v19 = vld [vmem:[#allocation2 + $0x92] sm:$0xff] }
 0x2bd   : > { %v3844_v15 = vpop.permute.xlu1 %3843  ;;  %v3839_v50 = vpop.permute.xlu0 %3838  ;;  %v2848_v4 = vsel %vm2845_vm15, %v2839_v29, %v3835_v39  ;;  %v2849_v22 = vsel %vm2845_vm15, %v2840_v9, %v3836_v63 }
 0x2be   : > { %v3840_v13 = vunpack.i.l.bf16 %v3839_v50  ;;  %2978 = vmatmul.mubr.f32.gmra.mxu1 %v2848_v4  ;;  %v3845_v48 = vunpack.i.l.bf16 %v3844_v15  ;;  %v3841_v49 = vunpack.i.h.bf16 %v3839_v50  ;;  %v3846_v17 = vunpack.i.h.bf16 %v3844_v15 }
 0x2bf   : > { %3613 = vmatprep.mubr.msk.f32.mxu1 %vm2136_vm1, %v4860_v31 }
 0x2c0   : > { %v2796_v23 = vsel %vm2136_vm1, %v4817_v30, %v3840_v13  ;;  %v2797_v40 = vsel %vm2136_vm1, %v4836_v20, %v3841_v49 }
 0x2c1   : > { %v3854_v32 = vpop.permute.xlu1 %3853  ;;  %v3849_v26 = vpop.permute.xlu0 %3848  ;;  %v2805_v25 = vsel %vm2800_vm10, %v2796_v23, %v3845_v48  ;;  %v2806_v59 = vsel %vm2800_vm10, %v2797_v40, %v3846_v17 }
 0x2c2   : > { %v3850_v36 = vunpack.i.l.bf16 %v3849_v26  ;;  %2983 = vmatmul.mubr.f32.gmra.mxu1 %v2849_v22  ;;  %v3855_v0 = vunpack.i.l.bf16 %v3854_v32  ;;  %v3851_v55 = vunpack.i.h.bf16 %v3849_v26  ;;  %v3856_v45 = vunpack.i.h.bf16 %v3854_v32  ;;  %v4996_v22 = vld [vmem:[%s5205_s4] ss:$0 sm:$0xff] }
 0x2c3   : > { %3614 = vmatprep.mubr.msk.f32.mxu1 %vm2136_vm1, %v4887_v21 }
 0x2c4   : > { %v2814_v31 = vsel %vm2809_vm11, %v2805_v25, %v3850_v36  ;;  %v2815_v44 = vsel %vm2809_vm11, %v2806_v59, %v3851_v55 }
 0x2c5   : > { %v3859_v30 = vpop.permute.xlu0 %3858  ;;  %v3864_v58 = vpop.permute.xlu1 %3863  ;;  %v2823_v20 = vsel %vm2818_vm12, %v2814_v31, %v3855_v0  ;;  %v2824_v12 = vsel %vm2818_vm12, %v2815_v44, %v3856_v45 }
 0x2c6   : > { %v3860_v24 = vunpack.i.l.bf16 %v3859_v30  ;;  %v3865_v61 = vunpack.i.l.bf16 %v3864_v58  ;;  %v3861_v43 = vunpack.i.h.bf16 %v3859_v30  ;;  %v3866_v42 = vunpack.i.h.bf16 %v3864_v58 }
 0x2c8   : > { %v2832_v5 = vsel %vm2827_vm13, %v2823_v20, %v3860_v24  ;;  %v2833_v16 = vsel %vm2827_vm13, %v2824_v12, %v3861_v43 }
 0x2c9   : > { %v3869_v57 = vpop.permute.xlu0 %3868  ;;  %v3874_v38 = vpop.permute.xlu1 %3873  ;;  %v2841_v21 = vsel %vm2836_vm14, %v2832_v5, %v3865_v61  ;;  %v2842_v2 = vsel %vm2836_vm14, %v2833_v16, %v3866_v42 }
 0x2ca   : > { %v3870_v10 = vunpack.i.l.bf16 %v3869_v57  ;;  %v3871_v28 = vunpack.i.h.bf16 %v3869_v57  ;;  %v3876_v41 = vunpack.i.h.bf16 %v3874_v38  ;;  %v3875_v34 = vunpack.i.l.bf16 %v3874_v38 }
 0x2cc   : > { %v2850_v3 = vsel %vm2845_vm15, %v2841_v21, %v3870_v10  ;;  %v2799_v62 = vsel %vm2136_vm1, %v4883_v7, %v3876_v41  ;;  %v2798_v53 = vsel %vm2136_vm1, %v4870_v54, %v3875_v34  ;;  %v2851_v60 = vsel %vm2845_vm15, %v2842_v2, %v3871_v28 }
 0x2cd   : > { %v3879_v35 = vpop.permute.xlu0 %3878  ;;  %2988 = vmatmul.mubr.f32.gmra.mxu1 %v2850_v3  ;;  %v2717_v8 = vpop.permute.xlu1 %2716 }
 0x2ce   : > { %3615 = vmatprep.mubr.msk.f32.mxu1 %vm2136_vm1, %v4897_v46  ;;  %v3881_v51 = vunpack.i.h.bf16 %v3879_v35  ;;  %v3880_v14 = vunpack.i.l.bf16 %v3879_v35 }
 0x2d0   : > { %v2808_v46 = vsel %vm2800_vm10, %v2799_v62, %v3881_v51  ;;  %v2807_v27 = vsel %vm2800_vm10, %v2798_v53, %v3880_v14 }
 0x2d1   : > { %v3889_v47 = vpop.permute.xlu0 %3888  ;;  %2993 = vmatmul.mubr.f32.gmra.mxu1 %v2851_v60  ;;  %v3884_v18 = vpop.permute.xlu1 %3883 }
 0x2d2   : > { %3616 = vmatprep.mubr.msk.f32.mxu1 %vm2136_vm1, %v4911_v33  ;;  %v3886_v39 = vunpack.i.h.bf16 %v3884_v18  ;;  %v3885_v6 = vunpack.i.l.bf16 %v3884_v18  ;;  %v3890_v37 = vunpack.i.l.bf16 %v3889_v47  ;;  %v3891_v54 = vunpack.i.h.bf16 %v3889_v47 }
 0x2d4   : > { %v2816_v7 = vsel %vm2809_vm11, %v2807_v27, %v3885_v6  ;;  %v2817_v1 = vsel %vm2809_vm11, %v2808_v46, %v3886_v39 }
 0x2d5   : > { %v2749_v29 = vpop.permute.xlu0 %2748  ;;  %v2825_v63 = vsel %vm2818_vm12, %v2816_v7, %v3890_v37  ;;  %v2781_v15 = vpop.permute.xlu1 %2780  ;;  %v2826_v4 = vsel %vm2818_vm12, %v2817_v1, %v3891_v54 }
 0x2d6   : > { %v2834_v50 = vsel %vm2827_vm13, %v2825_v63, %v2717_v8 }
 0x2d7   : > { %v2843_v33 = vsel %vm2836_vm14, %v2834_v50, %v2749_v29 }
 0x2d8   : > { %v2852_v13 = vsel %vm2845_vm15, %v2843_v33, %v2781_v15 }
 0x2d9   : > { %v2719_v9 = vpop.permute.xlu0 %2718  ;;  %v2751_v48 = vpop.permute.xlu1 %2750  ;;  %2998 = vmatmul.mubr.f32.gmra.mxu1 %v2852_v13 }
 0x2da   : > { %v2835_v49 = vsel %vm2827_vm13, %v2826_v4, %v2719_v9  ;;  %3617 = vmatprep.mubr.msk.f32.mxu1 %vm2136_vm1, %v2567_v19 }
 0x2db   : > { %v2844_v23 = vsel %vm2836_vm14, %v2835_v49, %v2751_v48 }
 0x2dd   : > { %v2783_v32 = vpop.permute.xlu0 %2782 }
 0x2de   : > { %v2853_v26 = vsel %vm2845_vm15, %v2844_v23, %v2783_v32 }
 0x2df   : > { %3003 = vmatmul.mubr.f32.gmra.mxu1 %v2853_v26 }
 0x371   : > { %v2969_v17 = vpop.f32.mrf.mxu1 }
 0x372   : > { %v2970_v36 = vadd.f32 %v4996_v22, %v2969_v17 }
 0x373   : > { %v2971_v40 = vpop.f32.mrf.mxu1 }
 0x374   : > { %v3008_v0 = vmax.f32 %v2970_v36, 0.0 }
 0x375   : > { %v2974_v55 = vpop.f32.mrf.mxu1 }
 0x376   : > { %v3024_v25 = vcombine.high %v3008_v0, %v3008_v0  ;;  %v3031_v31 = vrot.slane %v3008_v0, %v4047_v56  ;;  %v2975_v30 = vadd.f32 %v4996_v22, %v2974_v55 }
 0x377   : > { %v2976_v58 = vpop.f32.mrf.mxu1 }
 0x378   : > { %v3038_v45 = vrot.slane %v3024_v25, %v4047_v56  ;;  %v3039_v59 = vcombine.high %v3031_v31, %v3031_v31  ;;  %v3193_v24 = vsel %vm3192_vm0, %v3031_v31, -inf  ;;  %v3009_v61 = vmax.f32 %v2975_v30, 0.0 }
 0x379   : > { %v3194_v44 = vrot.slane %v3193_v24, 4 }
 0x37a   : > { %v3040_v43 = vcombine.high %v3038_v45, %v3038_v45  ;;  %v3200_v20 = vsel %vm3192_vm0, %v3039_v59, -inf  ;;  %v3207_v5 = vsel %vm3192_vm0, %v3038_v45, -inf  ;;  %v3041_v42 = vcombine.high %v3009_v61, %v3009_v61 }
 0x37b   : > { %v3195_v57 = vmax.f32 %v3193_v24, %v3194_v44  ;;  %v3201_v38 = vrot.slane %v3200_v20, 4  ;;  %v3208_v21 = vrot.slane %v3207_v5, 4  ;;  %v3048_v10 = vrot.slane %v3009_v61, %v4047_v56 }
 0x37c   : > { %v3214_v12 = vsel %vm3192_vm0, %v3040_v43, -inf  ;;  %v3055_v16 = vrot.slane %v3041_v42, %v4047_v56 }
 0x37d   : > { %v3196_v28 = vrot.slane %v3195_v57, 2  ;;  %v3202_v41 = vmax.f32 %v3200_v20, %v3201_v38  ;;  %v3209_v34 = vmax.f32 %v3207_v5, %v3208_v21  ;;  %v3215_v3 = vrot.slane %v3214_v12, 4 }
 0x37e   : > { %v3056_v35 = vcombine.high %v3048_v10, %v3048_v10  ;;  %v3057_v8 = vcombine.high %v3055_v16, %v3055_v16  ;;  %v3221_v2 = vsel %vm3192_vm0, %v3048_v10, -inf  ;;  %v3235_v51 = vsel %vm3192_vm0, %v3055_v16, -inf  ;;  %v2979_v14 = vpop.f32.mrf.mxu1 }
 0x37f   : > { %v3197_v62 = vmax.f32 %v3195_v57, %v3196_v28  ;;  %v3203_v53 = vrot.slane %v3202_v41, 2  ;;  %v3210_v60 = vrot.slane %v3209_v34, 2  ;;  %v3222_v47 = vrot.slane %v3221_v2, 4 }
 0x380   : > { %v3228_v18 = vsel %vm3192_vm0, %v3056_v35, -inf  ;;  %v3236_v39 = vrot.slane %v3235_v51, 4  ;;  %v3242_v6 = vsel %vm3192_vm0, %v3057_v8, -inf  ;;  %v2981_v46 = vpop.f32.mrf.mxu1  ;;  %v3216_v7 = vmax.f32 %v3214_v12, %v3215_v3 }
 0x381   : > { %v3204_v27 = vmax.f32 %v3202_v41, %v3203_v53  ;;  %v3211_v37 = vmax.f32 %v3209_v34, %v3210_v60  ;;  %v3198_v1 = vrot.slane %v3197_v62, 1  ;;  %v3223_v54 = vmax.f32 %v3221_v2, %v3222_v47 }
 0x382   : > { %v3229_v29 = vrot.slane %v3228_v18, 4  ;;  %v3237_v63 = vmax.f32 %v3235_v51, %v3236_v39  ;;  %v2984_v15 = vpop.f32.mrf.mxu1  ;;  %v3243_v50 = vrot.slane %v3242_v6, 4  ;;  %v3217_v49 = vrot.slane %v3216_v7, 2 }
 0x383   : > { %v3212_v33 = vrot.slane %v3211_v37, 1  ;;  %v3224_v4 = vrot.slane %v3223_v54, 2  ;;  %v3205_v48 = vrot.slane %v3204_v27, 1  ;;  %v3199_v23 = vmax.f32 %v3197_v62, %v3198_v1 }
 0x384   : > { %v3230_v19 = vmax.f32 %v3228_v18, %v3229_v29  ;;  %v3238_v13 = vrot.slane %v3237_v63, 2  ;;  %v2986_v9 = vpop.f32.mrf.mxu1  ;;  %v3244_v36 = vmax.f32 %v3242_v6, %v3243_v50  ;;  %v2980_v40 = vadd.f32 %v4996_v22, %v2979_v14 }
 0x385   : > { %v3225_v32 = vmax.f32 %v3223_v54, %v3224_v4  ;;  %v3213_v0 = vmax.f32 %v3211_v37, %v3212_v33  ;;  %v3206_v30 = vmax.f32 %v3204_v27, %v3205_v48  ;;  %v5013_v58 = vmax.f32 %v3216_v7, %v3217_v49 }
 0x386   : > { %v3231_v26 = vrot.slane %v3230_v19, 2  ;;  %v3239_v17 = vmax.f32 %v3237_v63, %v3238_v13  ;;  %v3010_v45 = vmax.f32 %v2980_v40, 0.0  ;;  %v2985_v59 = vadd.f32 %v4996_v22, %v2984_v15 }
 0x387   : > { %v3226_v55 = vrot.slane %v3225_v32, 1  ;;  %v5017_v24 = vsel %vm2800_vm10, %v3199_v23, -inf  ;;  %v3245_v20 = vrot.slane %v3244_v36, 2  ;;  %v5021_v38 = vsel %vm2800_vm10, %v3213_v0, -inf }
 0x388   : > { %v3232_v25 = vmax.f32 %v3230_v19, %v3231_v26  ;;  %v3240_v31 = vrot.slane %v3239_v17, 1  ;;  %v3058_v5 = vcombine.high %v3010_v45, %v3010_v45  ;;  %v3065_v42 = vrot.slane %v3010_v45, %v4047_v56 }
 0x389   : > { %v3227_v61 = vmax.f32 %v3225_v32, %v3226_v55  ;;  %v3011_v57 = vmax.f32 %v2985_v59, 0.0  ;;  %v5035_v35 = vsel %vm2800_vm10, %v3206_v30, -inf  ;;  %v3246_v27 = vmax.f32 %v3244_v36, %v3245_v20 }
 0x38a   : > { %v3233_v44 = vrot.slane %v3232_v25, 1  ;;  %v3241_v43 = vmax.f32 %v3239_v17, %v3240_v31  ;;  %v3072_v41 = vrot.slane %v3058_v5, %v4047_v56  ;;  %v3073_v34 = vcombine.high %v3065_v42, %v3065_v42 }
 0x38b   : > { %v5024_v10 = vsel %vm2800_vm10, %v3227_v61, -inf  ;;  %v3249_v2 = vsel %vm3192_vm0, %v3065_v42, -inf  ;;  %v3075_v51 = vcombine.high %v3011_v57, %v3011_v57  ;;  %v3082_v6 = vrot.slane %v3011_v57, %v4047_v56 }
 0x38c   : > { %v3234_v21 = vmax.f32 %v3232_v25, %v3233_v44  ;;  %v5027_v12 = vsel %vm2800_vm10, %v3241_v43, -inf  ;;  %v3419_v16 = vmax.f32 %v5017_v24, %v5024_v10  ;;  %v3074_v62 = vcombine.high %v3072_v41, %v3072_v41 }
 0x38d   : > { %v3425_v28 = vmax.f32 %v5021_v38, %v5027_v12  ;;  %v2989_v3 = vpop.f32.mrf.mxu1  ;;  %v3250_v53 = vrot.slane %v3249_v2, 4  ;;  %v3256_v60 = vsel %vm3192_vm0, %v3073_v34, -inf  ;;  %v3263_v39 = vsel %vm3192_vm0, %v3072_v41, -inf }
 0x38e   : > { %v5038_v8 = vsel %vm2800_vm10, %v3234_v21, -inf  ;;  %v3257_v18 = vrot.slane %v3256_v60, 4  ;;  %v3089_v46 = vrot.slane %v3075_v51, %v4047_v56  ;;  %v3264_v7 = vrot.slane %v3263_v39, 4 }
 0x38f   : > { %v3422_v14 = vmax.f32 %v5035_v35, %v5038_v8  ;;  %v2991_v47 = vpop.f32.mrf.mxu1  ;;  %v3251_v37 = vmax.f32 %v3249_v2, %v3250_v53  ;;  %v3270_v1 = vsel %vm3192_vm0, %v3074_v62, -inf  ;;  %v3090_v15 = vcombine.high %v3082_v6, %v3082_v6 }
 0x390   : > { %v3258_v29 = vmax.f32 %v3256_v60, %v3257_v18  ;;  %v3271_v63 = vrot.slane %v3270_v1, 4  ;;  %v3091_v50 = vcombine.high %v3089_v46, %v3089_v46  ;;  %v3265_v4 = vmax.f32 %v3263_v39, %v3264_v7 }
 0x391   : > { %v2994_v54 = vpop.f32.mrf.mxu1  ;;  %v3252_v33 = vrot.slane %v3251_v37, 2  ;;  %v3277_v19 = vsel %vm3192_vm0, %v3082_v6, -inf  ;;  %v3291_v13 = vsel %vm3192_vm0, %v3089_v46, -inf  ;;  %v3284_v32 = vsel %vm3192_vm0, %v3090_v15, -inf }
 0x392   : > { %v3259_v48 = vrot.slane %v3258_v29, 2  ;;  %v3272_v49 = vmax.f32 %v3270_v1, %v3271_v63  ;;  %v3278_v23 = vrot.slane %v3277_v19, 4  ;;  %v3266_v17 = vrot.slane %v3265_v4, 2 }
 0x393   : > { %v2996_v9 = vpop.f32.mrf.mxu1  ;;  %v3253_v26 = vmax.f32 %v3251_v37, %v3252_v33  ;;  %v3285_v36 = vrot.slane %v3284_v32, 4  ;;  %v3292_v40 = vrot.slane %v3291_v13, 4  ;;  %v3298_v55 = vsel %vm3192_vm0, %v3091_v50, -inf }
 0x394   : > { %v3279_v0 = vmax.f32 %v3277_v19, %v3278_v23  ;;  %v3219_v25 = vrot.slane %v5013_v58, 1  ;;  %v3247_v31 = vrot.slane %v3246_v27, 1  ;;  %v3260_v59 = vmax.f32 %v3258_v29, %v3259_v48 }
 0x395   : > { %v3286_v30 = vmax.f32 %v3284_v32, %v3285_v36  ;;  %v3293_v45 = vmax.f32 %v3291_v13, %v3292_v40  ;;  %v3299_v44 = vrot.slane %v3298_v55, 4  ;;  %v2990_v43 = vadd.f32 %v4996_v22, %v2989_v3 }
 0x396   : > { %v3280_v61 = vrot.slane %v3279_v0, 2  ;;  %v3254_v20 = vrot.slane %v3253_v26, 1  ;;  %v3267_v5 = vmax.f32 %v3265_v4, %v3266_v17  ;;  %v3273_v42 = vrot.slane %v3272_v49, 2 }
 0x397   : > { %v3287_v57 = vrot.slane %v3286_v30, 2  ;;  %v3294_v34 = vrot.slane %v3293_v45, 2  ;;  %v3300_v2 = vmax.f32 %v3298_v55, %v3299_v44  ;;  %v3220_v51 = vmax.f32 %v5013_v58, %v3219_v25 }
 0x398   : > { %v3281_v41 = vmax.f32 %v3279_v0, %v3280_v61  ;;  %v3248_v60 = vmax.f32 %v3246_v27, %v3247_v31  ;;  %v3261_v47 = vrot.slane %v3260_v59, 1  ;;  %v3255_v39 = vmax.f32 %v3253_v26, %v3254_v20 }
 0x399   : > { %v2999_v21 = vpop.f32.mrf.mxu1  ;;  %v3288_v62 = vmax.f32 %v3286_v30, %v3287_v57  ;;  %v3301_v18 = vrot.slane %v3300_v2, 2  ;;  %v3268_v6 = vrot.slane %v3267_v5, 1  ;;  %v3274_v46 = vmax.f32 %v3272_v49, %v3273_v42 }
 0x39a   : > { %v3012_v37 = vmax.f32 %v2990_v43, 0.0  ;;  %v3282_v3 = vrot.slane %v3281_v41, 1  ;;  %v3295_v1 = vmax.f32 %v3293_v45, %v3294_v34  ;;  %v2995_v29 = vadd.f32 %v4996_v22, %v2994_v54 }
 0x39b   : > { %v3001_v53 = vpop.f32.mrf.mxu1  ;;  %v3289_v7 = vrot.slane %v3288_v62, 1  ;;  %v5057_v63 = vsel %vm2800_vm10, %v3220_v51, -inf  ;;  %v3911_v27 = vmov 1934713408   ;;  %v5065_v4 = vsel %vm2800_vm10, %v3248_v60, -inf }
 0x39c   : > { %v3092_v15 = vcombine.high %v3012_v37, %v3012_v37  ;;  %v3099_v58 = vrot.slane %v3012_v37, %v4047_v56  ;;  %v5062_v33 = vunpack.c.l.s4 %v3911_v27  ;;  %v3262_v19 = vmax.f32 %v3260_v59, %v3261_v47 }
 0x39d   : > { %v3302_v13 = vmax.f32 %v3300_v2, %v3301_v18  ;;  %v3013_v9 = vmax.f32 %v2995_v29, 0.0  ;;  %v3269_v48 = vmax.f32 %v3267_v5, %v3268_v6  ;;  %v3275_v49 = vrot.slane %v3274_v46, 1 }
 0x39e   : > { %v5068_v54 = vsel %vm2800_vm10, %v3255_v39, -inf  ;;  %v3106_v23 = vrot.slane %v3092_v15, %v4047_v56  ;;  %v3283_v26 = vmax.f32 %v3281_v41, %v3282_v3  ;;  %v3290_v17 = vmax.f32 %v3288_v62, %v3289_v7 }
 0x39f   : > { %v5060_v50 = vpop.f32.mrf.mxu1  ;;  %v3296_v36 = vrot.slane %v3295_v1, 1  ;;  %v3107_v40 = vcombine.high %v3099_v58, %v3099_v58  ;;  %v3305_v55 = vsel %vm3192_vm0, %v3099_v58, -inf  ;;  %v3109_v31 = vcombine.high %v3013_v9, %v3013_v9 }
 0x3a0   : > { %v3108_v0 = vcombine.high %v3106_v23, %v3106_v23  ;;  %v3319_v25 = vsel %vm3192_vm0, %v3106_v23, -inf  ;;  %v3303_v30 = vrot.slane %v3302_v13, 1  ;;  %v3306_v45 = vrot.slane %v3305_v55, 4 }
 0x3a1   : > { %v3006_v32 = vpop.f32.mrf.mxu1  ;;  %v3312_v59 = vsel %vm3192_vm0, %v3107_v40, -inf  ;;  %v3320_v61 = vrot.slane %v3319_v25, 4  ;;  %v3116_v20 = vrot.slane %v3013_v9, %v4047_v56  ;;  %v3123_v5 = vrot.slane %v3109_v31, %v4047_v56 }
 0x3a2   : > { %v3313_v44 = vrot.slane %v3312_v59, 4  ;;  %v3326_v43 = vsel %vm3192_vm0, %v3108_v0, -inf  ;;  %v3307_v42 = vmax.f32 %v3305_v55, %v3306_v45  ;;  %v3000_v34 = vadd.f32 %v4996_v22, %v2999_v21 }
 0x3a3   : > { %v3321_v57 = vmax.f32 %v3319_v25, %v3320_v61  ;;  %v3327_v41 = vrot.slane %v3326_v43, 4  ;;  %v3124_v51 = vcombine.high %v3116_v20, %v3116_v20  ;;  %v3125_v62 = vcombine.high %v3123_v5, %v3123_v5 }
 0x3a4   : > { %v3314_v2 = vmax.f32 %v3312_v59, %v3313_v44  ;;  %v3333_v53 = vsel %vm3192_vm0, %v3116_v20, -inf  ;;  %v3308_v60 = vrot.slane %v3307_v42, 2  ;;  %v3347_v3 = vsel %vm3192_vm0, %v3123_v5, -inf }
 0x3a5   : > { %v3322_v47 = vrot.slane %v3321_v57, 2  ;;  %v3328_v18 = vmax.f32 %v3326_v43, %v3327_v41  ;;  %v3334_v39 = vrot.slane %v3333_v53, 4  ;;  %v3340_v37 = vsel %vm3192_vm0, %v3124_v51, -inf }
 0x3a6   : > { %v3315_v6 = vrot.slane %v3314_v2, 2  ;;  %v3354_v7 = vsel %vm3192_vm0, %v3125_v62, -inf  ;;  %v3309_v29 = vmax.f32 %v3307_v42, %v3308_v60  ;;  %v3341_v9 = vrot.slane %v3340_v37, 4 }
 0x3a7   : > { %v3323_v15 = vmax.f32 %v3321_v57, %v3322_v47  ;;  %v3329_v58 = vrot.slane %v3328_v18, 2  ;;  %v3335_v21 = vmax.f32 %v3333_v53, %v3334_v39  ;;  %v3348_v23 = vrot.slane %v3347_v3, 4 }
 0x3a8   : > { %v3316_v27 = vmax.f32 %v3314_v2, %v3315_v6  ;;  %v3355_v32 = vrot.slane %v3354_v7, 4  ;;  %v3276_v40 = vmax.f32 %v3274_v46, %v3275_v49  ;;  %v5083_v0 = vsel %vm2800_vm10, %v3262_v19, -inf }
 0x3a9   : > { %v3297_v55 = vmax.f32 %v3295_v1, %v3296_v36  ;;  %v3336_v25 = vrot.slane %v3335_v21, 2  ;;  %v5086_v31 = vsel %vm2800_vm10, %v3283_v26, -inf  ;;  %v3330_v45 = vmax.f32 %v3328_v18, %v3329_v58 }
 0x3aa   : > { %v3342_v59 = vmax.f32 %v3340_v37, %v3341_v9  ;;  %v3349_v61 = vmax.f32 %v3347_v3, %v3348_v23  ;;  %v3304_v44 = vmax.f32 %v3302_v13, %v3303_v30  ;;  %v5089_v43 = vsel %vm2800_vm10, %v3290_v17, -inf }
 0x3ab   : > { %v3310_v20 = vrot.slane %v3309_v29, 1  ;;  %v3014_v5 = vmax.f32 %v3000_v34, 0.0  ;;  %v3317_v42 = vrot.slane %v3316_v27, 1  ;;  %v3324_v57 = vrot.slane %v3323_v15, 1 }
 0x3ac   : > { %v3343_v46 = vrot.slane %v3342_v59, 2  ;;  %v3356_v49 = vmax.f32 %v3354_v7, %v3355_v32  ;;  %v5092_v19 = vsel %vm2800_vm10, %v3269_v48, -inf  ;;  %v5095_v1 = vsel %vm2800_vm10, %v3276_v40, -inf }
 0x3ad   : > { %v3431_v26 = vmax.f32 %v5068_v54, %v5086_v31  ;;  %v3337_v36 = vmax.f32 %v3335_v21, %v3336_v25  ;;  %v5100_v13 = vsel %vm2800_vm10, %v3297_v55, -inf  ;;  %v3331_v17 = vrot.slane %v3330_v45, 1 }
 0x3ae   : > { %v3344_v30 = vmax.f32 %v3342_v59, %v3343_v46  ;;  %v3350_v41 = vrot.slane %v3349_v61, 2  ;;  %v3434_v34 = vmax.f32 %v5083_v0, %v5089_v43  ;;  %v5105_v2 = vsel %vm2800_vm10, %v3304_v44, -inf }
 0x3af   : > { %v3126_v48 = vcombine.high %v3014_v5, %v3014_v5  ;;  %v3133_v51 = vrot.slane %v3014_v5, %v4047_v56  ;;  %v3311_v62 = vmax.f32 %v3309_v29, %v3310_v20  ;;  %v3318_v53 = vmax.f32 %v3316_v27, %v3317_v42 }
 0x3b0   : > { %v3325_v60 = vmax.f32 %v3323_v15, %v3324_v57  ;;  %v3357_v47 = vrot.slane %v3356_v49, 2  ;;  %v3338_v18 = vrot.slane %v3337_v36, 1  ;;  %v5110_v3 = vmax.f32 %v3330_v45, %v3331_v17 }
 0x3b1   : > { %v3140_v39 = vrot.slane %v3126_v48, %v4047_v56  ;;  %v3141_v6 = vcombine.high %v3133_v51, %v3133_v51  ;;  %v3361_v37 = vsel %vm3192_vm0, %v3133_v51, -inf  ;;  %v3345_v7 = vrot.slane %v3344_v30, 1 }
 0x3b2   : > { %v3351_v58 = vmax.f32 %v3349_v61, %v3350_v41  ;;  %v3005_v21 = vadd.f32 %v4996_v22, %v5060_v50  ;;  %v3362_v23 = vrot.slane %v3361_v37, 4  ;;  %v5117_v27 = vsel %vm2800_vm10, %v3311_v62, -inf }
 0x3b3   : > { %v3142_v9 = vcombine.high %v3140_v39, %v3140_v39  ;;  %v3368_v29 = vsel %vm3192_vm0, %v3141_v6, -inf  ;;  %v3375_v15 = vsel %vm3192_vm0, %v3140_v39, -inf  ;;  %v5120_v32 = vsel %vm2800_vm10, %v3325_v60, -inf }
 0x3b4   : > { %v3358_v40 = vmax.f32 %v3356_v49, %v3357_v47  ;;  %v3369_v55 = vrot.slane %v3368_v29, 4  ;;  %v5123_v25 = vsel %vm2800_vm10, %v3318_v53, -inf  ;;  %v3339_v45 = vmax.f32 %v3337_v36, %v3338_v18 }
 0x3b5   : > { %v3363_v59 = vmax.f32 %v3361_v37, %v3362_v23  ;;  %v3376_v22 = vrot.slane %v3375_v15, 4  ;;  %v3382_v61 = vsel %vm3192_vm0, %v3142_v9, -inf  ;;  %v3015_v44 = vmax.f32 %v3005_v21, 0.0 }
 0x3b6   : > { %v3370_v50 = vmax.f32 %v3368_v29, %v3369_v55  ;;  %v3428_v20 = vmax.f32 %v5057_v63, %v5065_v4  ;;  %v3346_v5 = vmax.f32 %v3344_v30, %v3345_v7  ;;  %v3352_v42 = vrot.slane %v3351_v58, 1 }
 0x3b7   : > { %v3377_v57 = vmax.f32 %v3375_v15, %v3376_v22  ;;  %v3383_v46 = vrot.slane %v3382_v61, 4  ;;  %v3359_v17 = vrot.slane %v3358_v40, 1  ;;  %v3364_v49 = vrot.slane %v3363_v59, 2 }
 0x3b8   : > { %v3143_v41 = vcombine.high %v3015_v44, %v3015_v44  ;;  %v3150_v48 = vrot.slane %v3015_v44, %v4047_v56  ;;  %v3371_v51 = vrot.slane %v3370_v50, 2  ;;  %v3481_v63 = vsel %vm2416_vm2, %v3422_v14, %v3419_v16 }
 0x3b9   : > { %v3378_v36 = vrot.slane %v3377_v57, 2  ;;  %v3384_v62 = vmax.f32 %v3382_v61, %v3383_v46  ;;  %v3442_v4 = vsel %vm2800_vm10, %v3339_v45, -inf  ;;  %v3353_v47 = vmax.f32 %v3351_v58, %v3352_v42 }
 0x3ba   : > { %v3157_v30 = vrot.slane %v3143_v41, %v4047_v56  ;;  %v3158_v53 = vcombine.high %v3150_v48, %v3150_v48  ;;  %v3389_v60 = vsel %vm3192_vm0, %v3150_v48, -inf  ;;  %v3445_v18 = vsel %vm2800_vm10, %v3346_v5, -inf }
 0x3bb   : > { %v3385_v39 = vrot.slane %v3384_v62, 2  ;;  %v3390_v6 = vrot.slane %v3389_v60, 4  ;;  %v3365_v37 = vmax.f32 %v3363_v59, %v3364_v49  ;;  %v3360_v35 = vmax.f32 %v3358_v40, %v3359_v17 }
 0x3bc   : > { %v3159_v7 = vcombine.high %v3157_v30, %v3157_v30  ;;  %v3396_v24 = vsel %vm3192_vm0, %v3158_v53, -inf  ;;  %v3403_v10 = vsel %vm3192_vm0, %v3157_v30, -inf  ;;  %v3372_v16 = vmax.f32 %v3370_v50, %v3371_v51 }
 0x3bd   : > { %v3379_v8 = vmax.f32 %v3377_v57, %v3378_v36  ;;  %v3391_v14 = vmax.f32 %v3389_v60, %v3390_v6  ;;  %v3443_v21 = vmax.f32 %v5117_v27, %v3442_v4  ;;  %v3397_v9 = vrot.slane %v3396_v24, 4 }
 0x3be   : > { %v3404_v23 = vrot.slane %v3403_v10, 4  ;;  %v3410_v58 = vsel %vm3192_vm0, %v3159_v7, -inf  ;;  %v3446_v29 = vmax.f32 %v5123_v25, %v3445_v18  ;;  %v3448_v15 = vsel %vm2800_vm10, %v3353_v47, -inf }
 0x3bf   : > { %v3386_v55 = vmax.f32 %v3384_v62, %v3385_v39  ;;  %v3392_v45 = vrot.slane %v3391_v14, 2  ;;  %v3366_v59 = vrot.slane %v3365_v37, 1  ;;  %v3398_v22 = vmax.f32 %v3396_v24, %v3397_v9 }
 0x3c0   : > { %v3405_v61 = vmax.f32 %v3403_v10, %v3404_v23  ;;  %v3411_v44 = vrot.slane %v3410_v58, 4  ;;  %v3373_v40 = vrot.slane %v3372_v16, 1  ;;  %v3380_v50 = vrot.slane %v3379_v8, 1 }
 0x3c1   : > { %v3393_v5 = vmax.f32 %v3391_v14, %v3392_v45  ;;  %v3482_v27 = vsel %vm2418_vm3, %v3425_v28, %v3481_v63  ;;  %v3399_v42 = vrot.slane %v3398_v22, 2  ;;  %v3449_v17 = vmax.f32 %v5120_v32, %v3448_v15 }
 0x3c2   : > { %v3406_v57 = vrot.slane %v3405_v61, 2  ;;  %v3412_v46 = vmax.f32 %v3410_v58, %v3411_v44  ;;  %v3483_v25 = vsel %vm2420_vm4, %v3428_v20, %v3482_v27  ;;  %v3451_v49 = vsel %vm2800_vm10, %v3360_v35, -inf }
 0x3c3   : > { %v3387_v41 = vrot.slane %v3386_v55, 1  ;;  %v3394_v48 = vrot.slane %v3393_v5, 1  ;;  %v3400_v51 = vmax.f32 %v3398_v22, %v3399_v42  ;;  %v3487_v4 = vsel %vm2416_vm2, %v3446_v29, %v3443_v21 }
 0x3c4   : > { %v3407_v36 = vmax.f32 %v3405_v61, %v3406_v57  ;;  %v3413_v62 = vrot.slane %v3412_v46, 2  ;;  %v3450_v38 = vsel %vm2800_vm10, %v5110_v3, -inf  ;;  %v3367_v12 = vmax.f32 %v3365_v37, %v3366_v59 }
 0x3c5   : > { %v3374_v28 = vmax.f32 %v3372_v16, %v3373_v40  ;;  %v3395_v63 = vmax.f32 %v3393_v5, %v3394_v48  ;;  %v3381_v30 = vmax.f32 %v3379_v8, %v3380_v50  ;;  %v3401_v53 = vrot.slane %v3400_v51, 1 }
 0x3c6   : > { %v3408_v20 = vrot.slane %v3407_v36, 1  ;;  %v3414_v60 = vmax.f32 %v3412_v46, %v3413_v62  ;;  %v3437_v32 = vmax.f32 %v5092_v19, %v5100_v13  ;;  %v3388_v47 = vmax.f32 %v3386_v55, %v3387_v41 }
 0x3c7   : > { %v3452_v18 = vmax.f32 %v3450_v38, %v3451_v49  ;;  %v3488_v39 = vsel %vm2418_vm3, %v3449_v17, %v3487_v4  ;;  %v3402_v6 = vmax.f32 %v3400_v51, %v3401_v53  ;;  %v3454_v10 = vsel %vm2800_vm10, %v3395_v63, -inf }
 0x3c8   : > { %v3409_v7 = vmax.f32 %v3407_v36, %v3408_v20  ;;  %v3415_v24 = vrot.slane %v3414_v60, 1  ;;  %v3453_v3 = vsel %vm2800_vm10, %v3367_v12, -inf  ;;  %v3456_v37 = vsel %vm2800_vm10, %v3374_v28, -inf }
 0x3c9   : > { %v3440_v35 = vmax.f32 %v5095_v1, %v5105_v2  ;;  %v3484_v19 = vsel %vm2416_vm2, %v3434_v34, %v3431_v26  ;;  %v3459_v13 = vsel %vm2800_vm10, %v3381_v30, -inf  ;;  %v3457_v8 = vsel %vm2800_vm10, %v3402_v6, -inf }
 0x3ca   : > { %v3416_v16 = vmax.f32 %v3414_v60, %v3415_v24  ;;  %v3460_v14 = vsel %vm2800_vm10, %v3409_v7, -inf  ;;  %v3455_v21 = vmax.f32 %v3453_v3, %v3454_v10  ;;  %v3458_v9 = vmax.f32 %v3456_v37, %v3457_v8 }
 0x3cb   : > { %v3461_v23 = vmax.f32 %v3459_v13, %v3460_v14  ;;  %v3489_v1 = vsel %vm2420_vm4, %v3452_v18, %v3488_v39  ;;  %v3462_v2 = vsel %vm2800_vm10, %v3388_v47, -inf  ;;  %v3485_v0 = vsel %vm2418_vm3, %v3437_v32, %v3484_v19 }
 0x3cc   : > { %v3463_v54 = vsel %vm2800_vm10, %v3416_v16, -inf  ;;  %v3490_v43 = vsel %vm2416_vm2, %v3458_v9, %v3455_v21  ;;  %v3497_v34 = vcombine.low %v3483_v25, %v3489_v1  ;;  %v3517_v58 = vunpack.c.0.s8 %v5062_v33 }
 0x3cd   : > { %v3464_v31 = vmax.f32 %v3462_v2, %v3463_v54  ;;  %v3491_v26 = vsel %vm2418_vm3, %v3461_v23, %v3490_v43  ;;  %v3486_v29 = vsel %vm2420_vm4, %v3440_v35, %v3485_v0 }
 0x3ce   : > { %v3504_v45 = vrot.slane %v3497_v34, %v4047_v56  ;;  %v3520_v22 = vsub.s32 %v3517_v58, %v4038_v52 }
 0x3cf   : > { %v3492_v15 = vsel %vm2420_vm4, %v3464_v31, %v3491_v26 }
 0x3d0   : > { %v3505_v55 = vcombine.low %v3486_v29, %v3492_v15 }
 0x3d2   : > { %v3512_v59 = vrot.slane %v3505_v55, %v4047_v56 }
 0x3d4   : > { %v3514_v61 = vcombine.high %v3504_v45, %v3512_v59  ;;  %v3513_v44 = vcombine.low %v3504_v45, %v3512_v59 }
 0x3d6   : > { %v3528_v40 = vrot.slane %v3514_v61, %v3520_v22  ;;  %v3521_v50 = vrot.slane %v3513_v44, %v3520_v22 }
 0x3d8   : > { %3536 = vrot.lane.b32.xlu0 %v3528_v40, %s3908_s30  ;;  %v3529_v33 = vcombine.high %v3521_v50, %v3903_v11  ;;  %v3530_v5 = vcombine.high %v3528_v40, %v3903_v11 }
 0x3da   : > { %3532 = vrot.lane.b32.xlu1 %v3529_v33, %s3905_s16 }
 0x3de   : > { %3540 = vrot.lane.b32.xlu1 %v3530_v5, %s3909_s6 }
 0x44a   : > { %v3537_v42 = vpop.permute.xlu0 %3536 }
 0x44c   : > { %v3533_v27 = vpop.permute.xlu1 %3532 }
 0x44d   : > { %v3543_v56 = vsel %vm2800_vm10, %v3521_v50, %v3533_v27 }
 0x44e   : > { %v3544_v52 = vsel %vm2818_vm12, %v3543_v56, %v3537_v42 }
 0x450   : > { %v3541_v57 = vpop.permute.xlu1 %3540 }
 0x451   : > { %v3545_v46 = vsel %vm2836_vm14, %v3544_v52, %v3541_v57 }
 0x452   : > { %3546 = vst [vmem:[%s222_s17] sm:$0xf] %v3545_v46 }
 0x453 PF: > { %s15_s18 = sadd.s32 1, %s3900_s18  }
 0x454   : > { %p12_p4 = scmp.ge.s32.totalorder %s15_s18, 4  }
 0x456   :  { %14 = sbr.rel (!%p12_p4) target bundleno = 1 (0x1), region = 73 }

</bundles_post_ra>
